<compile_context>
chip_gen: v7x
topology: tpu7x:2x2x1
jax: 0.10.0
libtpu: 0.0.40
codegen_flags: <defaults>
</compile_context>

<pallas_src>
import jax
import jax.numpy as jnp
import numpy as np
from jax import lax
from jax.experimental import pallas as pl
from jax.experimental.pallas import tpu as pltpu

# ---------------- model config (small test sizes) ----------------
OUTPUT_SIZE = 6
NUM_INPUT_FEATURES = 16
HIDDEN_DIM = 32
N_LAYERS = 2               # kernel below hard-codes the 2-layer stack
FFNN_LAYERS = 2            # -> exactly one ff layer before `final`
DROP_PROB = 0.1            # dropout is identity at inference time
STATIC_DIM = 10
LIST_UNIC_CAT = [6, 9]
EMBEDDING_DIMS = [3, 4]    # sum == 7
EMB_SUM = sum(EMBEDDING_DIMS)
AFTER_EMB_DIM = 7          # nn.Linear(sum(embedding_dims), 7)

BATCH = 8
SEQ = 8

# ---------------- packed weight-slab layout (single VMEM input) ----------------
def _r8(n):
    return ((n + 7) // 8) * 8

SLAB_LANES = 128
assert 4 * HIDDEN_DIM <= SLAB_LANES, "gate stack must fit 128 lanes"

R_WIH0 = 0                                        # (Din, 4H)
R_WHH0 = _r8(NUM_INPUT_FEATURES)                  # (H, 4H)
R_WIH1 = R_WHH0 + HIDDEN_DIM                      # (H, 4H)
R_WHH1 = R_WIH1 + HIDDEN_DIM                      # (H, 4H)
R_MISC = R_WHH1 + HIDDEN_DIM                      # 8 misc rows (biases, attn)
R_W1C = R_MISC + 8                                # W1^T rows for context
R_W1L = R_W1C + HIDDEN_DIM                        # W1^T rows for last_hidden
R_W1S = R_W1L + HIDDEN_DIM                        # W1^T rows for static
R_W1E = _r8(R_W1S + STATIC_DIM)                   # W1^T rows for cat7
R_WF = _r8(R_W1E + AFTER_EMB_DIM)                 # final.weight^T
R_TAB = R_WF + HIDDEN_DIM                         # emb tables folded thru Wae
TAB_ROWS = _r8(sum(LIST_UNIC_CAT))                # 16 (15 used)
SLAB_ROWS = R_TAB + TAB_ROWS                      # 256

# packed output: [h_l0 | h_l1 | c_l0 | c_l1 | out | pad] -> lane-dense width
PACK_WIDTH = ((4 * HIDDEN_DIM + OUTPUT_SIZE + 127) // 128) * 128   # 256


# ---------------- fused Pallas kernel ----------------
def _fused_forward_kernel(w_ref, x_ref, h0_ref, c0_ref, static_ref, cat_ref,
                          out_ref, outs1_scr):
    """Whole DroughtNetLSTM forward on one small batch block.

    w_ref:      (SLAB_ROWS, 128) packed f32 parameter slab (one DMA)
    x_ref:      (B, T, Din)      batch-first input (as in PyTorch)
    h0/c0_ref:  (2, B, H)        initial state per layer
    static_ref: (B, S)
    cat_ref:    (B, 2) int32     categorical indices
    out_ref:    (B, PACK_WIDTH)  packed [h_l0|h_l1|c_l0|c_l1|out|pad]
    outs1_scr:  (T, B, H)        VMEM scratch holding layer-1 outputs
    """
    B, T, Din = x_ref.shape
    H = HIDDEN_DIM
    OUT = OUTPUT_SIZE
    S = STATIC_DIM
    E = AFTER_EMB_DIM
    f32 = jnp.float32

    def cell(gates, c):
        # gates: (B, 4H) pre-activation in PyTorch order [i | f | g | o].
        sig = jax.nn.sigmoid(gates)              # one EUP push, full 4H vreg
        g = jnp.tanh(gates[:, 2 * H:3 * H])
        i = sig[:, 0:H]
        f = sig[:, H:2 * H]
        o = sig[:, 3 * H:4 * H]
        c_new = f * c + i * g
        h_new = o * jnp.tanh(c_new)
        # TODO(synk): at B=8 the gate math uses 32/128 lanes; a roll/mask
        # full-width scheme (or packing batch groups along lanes at larger B)
        # would raise VPU lane utilization.
        return h_new, c_new

    # ---- recurrent weights (live across the unrolled loop) ----
    whh0 = w_ref[R_WHH0:R_WHH0 + H, :]                         # (H, 4H)
    wih1 = w_ref[R_WIH1:R_WIH1 + H, :]                         # (H, 4H)
    whh1 = w_ref[R_WHH1:R_WHH1 + H, :]                         # (H, 4H)
    b1 = w_ref[R_MISC + 1:R_MISC + 2, :]                       # (1, 4H)

    # ---- layer-0 input projection hoisted over all timesteps (1 MXU push) ----
    x = x_ref[...]                                             # (B, T, Din)
    wih0 = w_ref[R_WIH0:R_WIH0 + Din, :]                       # (Din, 4H)
    b0 = w_ref[R_MISC + 0:R_MISC + 1, :]                       # (1, 4H)
    xp0 = (jnp.dot(x.reshape(B * T, Din), wih0,
                   preferred_element_type=f32) + b0).reshape(B, T, 4 * H)

    h0 = h0_ref[0]
    c0 = c0_ref[0]
    h1 = h0_ref[1]
    c1 = c0_ref[1]

    # ---- software-pipelined 2-layer recurrence -------------------------------
    # Layer-0 step t and layer-1 step t-1 are independent; both MXU pushes and
    # both nonlinearity pushes can be in flight in the same unrolled iteration.
    # Layer-1 outputs are streamed to VMEM scratch to keep vreg liveness low.
    h0, c0 = cell(xp0[:, 0, :] + jnp.dot(h0, whh0, preferred_element_type=f32), c0)
    prev0 = h0                                                 # layer-0 out, step 0
    for t in range(1, T):                                      # static -> fully unrolled
        g_l0 = xp0[:, t, :] + jnp.dot(h0, whh0, preferred_element_type=f32)
        g_l1 = (b1 + jnp.dot(prev0, wih1, preferred_element_type=f32)
                + jnp.dot(h1, whh1, preferred_element_type=f32))
        h0, c0 = cell(g_l0, c0)                                # layer 0, step t
        h1, c1 = cell(g_l1, c1)                                # layer 1, step t-1
        outs1_scr[t - 1] = h1
        prev0 = h0
    # epilogue: layer-1 step T-1
    g_l1 = (b1 + jnp.dot(prev0, wih1, preferred_element_type=f32)
            + jnp.dot(h1, whh1, preferred_element_type=f32))
    h1, c1 = cell(g_l1, c1)
    outs1_scr[T - 1] = h1
    last_hidden = h1                                           # (B, H)

    # ---- attention over time: one reduction over the whole scratch ----
    o_all = outs1_scr[...]                                     # (T, B, H)
    att_w = w_ref[R_MISC + 5:R_MISC + 6, 0:H].reshape(1, 1, H)
    att_b = w_ref[R_MISC + 6:R_MISC + 7, 0:1].reshape(1, 1, 1)
    scores = jnp.sum(o_all * att_w, axis=-1, keepdims=True) + att_b   # (T, B, 1)
    m = jnp.max(scores, axis=0, keepdims=True)
    e = jnp.exp(scores - m)
    attn = e / jnp.sum(e, axis=0, keepdims=True)               # (T, B, 1)
    context = jnp.sum(attn * o_all, axis=0)                    # (B, H)

    # ---- embeddings + after_embeddings, folded into a one-hot matmul ----
    # prepare_params pre-multiplied each embedding table by its slice of the
    # after_embeddings weight, so: pre = onehot @ table + bae; cat7 = relu(pre).
    cat0 = cat_ref[:, 0:1]
    cat1 = cat_ref[:, 1:2] + LIST_UNIC_CAT[0]
    iota = lax.broadcasted_iota(jnp.int32, (B, TAB_ROWS), 1)
    onehot = jnp.where((iota == cat0) | (iota == cat1), 1.0, 0.0).astype(f32)
    table = w_ref[R_TAB:R_TAB + TAB_ROWS, 0:E]                 # (16, 7)
    bae = w_ref[R_MISC + 4:R_MISC + 5, 0:E]                    # (1, 7)
    cat7 = jnp.maximum(
        jnp.dot(onehot, table, preferred_element_type=f32) + bae, 0.0)

    # ---- ff layer 0: W1 pre-split by row blocks (no concat / scratch trip) ----
    w1_ctx = w_ref[R_W1C:R_W1C + H, 0:H]
    w1_lst = w_ref[R_W1L:R_W1L + H, 0:H]
    w1_sta = w_ref[R_W1S:R_W1S + S, 0:H]
    w1_cat = w_ref[R_W1E:R_W1E + E, 0:H]
    bff = w_ref[R_MISC + 2:R_MISC + 3, 0:H]
    hff = (jnp.dot(context, w1_ctx, preferred_element_type=f32)
           + jnp.dot(last_hidden, w1_lst, preferred_element_type=f32)
           + jnp.dot(static_ref[...], w1_sta, preferred_element_type=f32)
           + jnp.dot(cat7, w1_cat, preferred_element_type=f32)
           + bff)                                              # (B, H)

    # ---- final projection ----
    wf = w_ref[R_WF:R_WF + H, 0:OUT]
    bf = w_ref[R_MISC + 3:R_MISC + 4, 0:OUT]
    out6 = jnp.dot(hff, wf, preferred_element_type=f32) + bf   # (B, OUT)

    # ---- single lane-dense packed output (one full-width store / one DMA) ----
    pad = jnp.zeros((B, PACK_WIDTH - (4 * H + OUT)), f32)
    out_ref[...] = jnp.concatenate([h0, h1, c0, c1, out6, pad], axis=-1)


# ---------------- wrappers ----------------
_VMEM = pl.BlockSpec(memory_space=pltpu.MemorySpace.VMEM)


def _fused_forward(w_slab, x, h0, c0, static, cat_i32):
    B, T, _ = x.shape
    # NOTE: working set is ~150 KiB, so no grid / BlockSpec tiling is needed.
    # For production batch sizes, add a leading batch grid axis with
    # dimension_semantics=("parallel",) (v7x: 2 TensorCores) and re-budget
    # VMEM against v7x's 64 MiB physical / 32 MiB scoped limit
    # (vmem_limit_bytes).  bf16 matmul inputs (keeping f32 accumulation) are a
    # further v6e/v7x option once the 1e-4 validation tolerance is relaxed.
    return pl.pallas_call(
        _fused_forward_kernel,
        out_shape=jax.ShapeDtypeStruct((B, PACK_WIDTH), jnp.float32),
        in_specs=[_VMEM] * 6,
        out_specs=_VMEM,
        scratch_shapes=[pltpu.VMEM((T, B, HIDDEN_DIM), jnp.float32)],
    )(w_slab, x, h0, c0, static, cat_i32)


def prepare_params(params):
    """One-time packing of ALL parameters into a single (SLAB_ROWS,128) slab."""
    H, Din = HIDDEN_DIM, NUM_INPUT_FEATURES
    S, OUT, E = STATIC_DIM, OUTPUT_SIZE, AFTER_EMB_DIM
    g = lambda k: np.asarray(params[k], np.float32)

    slab = np.zeros((SLAB_ROWS, SLAB_LANES), np.float32)
    slab[R_WIH0:R_WIH0 + Din, :4 * H] = g("lstm.weight_ih_l0").T
    slab[R_WHH0:R_WHH0 + H, :4 * H] = g("lstm.weight_hh_l0").T
    slab[R_WIH1:R_WIH1 + H, :4 * H] = g("lstm.weight_ih_l1").T
    slab[R_WHH1:R_WHH1 + H, :4 * H] = g("lstm.weight_hh_l1").T
    slab[R_MISC + 0, :4 * H] = g("lstm.bias_ih_l0") + g("lstm.bias_hh_l0")
    slab[R_MISC + 1, :4 * H] = g("lstm.bias_ih_l1") + g("lstm.bias_hh_l1")
    slab[R_MISC + 2, :H] = g("ff0.bias")
    slab[R_MISC + 3, :OUT] = g("final.bias")
    slab[R_MISC + 4, :E] = g("after_embeddings.bias")
    slab[R_MISC + 5, :H] = g("attention.weight")[0]
    slab[R_MISC + 6, 0] = g("attention.bias")[0]

    w1t = g("ff0.weight").T                                    # (2H+S+E, H)
    slab[R_W1C:R_W1C + H, :H] = w1t[0:H]
    slab[R_W1L:R_W1L + H, :H] = w1t[H:2 * H]
    slab[R_W1S:R_W1S + S, :H] = w1t[2 * H:2 * H + S]
    slab[R_W1E:R_W1E + E, :H] = w1t[2 * H + S:2 * H + S + E]
    slab[R_WF:R_WF + H, :OUT] = g("final.weight").T

    # Fold each embedding table through its slice of the after_embeddings
    # linear: pre_act = onehot @ table + bias (dropout is identity).
    wae = g("after_embeddings.weight")                         # (E, sum(emb_dims))
    col, row = 0, 0
    for i, d in enumerate(EMBEDDING_DIMS):
        tab = g(f"emb_{i}") @ wae[:, col:col + d].T            # (n_i, E)
        slab[R_TAB + row:R_TAB + row + tab.shape[0], :E] = tab
        col += d
        row += tab.shape[0]

    return {"slab": jnp.asarray(slab)}


@jax.jit
def drought_net_forward(prepped, x, hidden, static, cat):
    x = x.astype(jnp.float32)
    static = static.astype(jnp.float32)
    h0, c0 = hidden
    packed = _fused_forward(prepped["slab"], x, h0, c0, static,
                            cat.astype(jnp.int32))
    H = HIDDEN_DIM
    hn = jnp.stack([packed[:, 0:H], packed[:, H:2 * H]])
    cn = jnp.stack([packed[:, 2 * H:3 * H], packed[:, 3 * H:4 * H]])
    out = packed[:, 4 * H:4 * H + OUTPUT_SIZE]
    return out.reshape(x.shape[0], -1), (hn, cn)


# ---------------- deterministic parameter init ----------------
def init_params(key):
    keys = iter(jax.random.split(key, 32))
    p = {}
    for i, (n, d) in enumerate(zip(LIST_UNIC_CAT, EMBEDDING_DIMS)):
        p[f"emb_{i}"] = 0.1 * jax.random.normal(next(keys), (n, d), jnp.float32)
    p["after_embeddings.weight"] = 0.1 * jax.random.normal(
        next(keys), (AFTER_EMB_DIM, EMB_SUM), jnp.float32)
    p["after_embeddings.bias"] = 0.1 * jax.random.normal(
        next(keys), (AFTER_EMB_DIM,), jnp.float32)
    for l in range(N_LAYERS):
        in_dim = NUM_INPUT_FEATURES if l == 0 else HIDDEN_DIM
        p[f"lstm.weight_ih_l{l}"] = 0.1 * jax.random.normal(
            next(keys), (4 * HIDDEN_DIM, in_dim), jnp.float32)
        p[f"lstm.weight_hh_l{l}"] = 0.1 * jax.random.normal(
            next(keys), (4 * HIDDEN_DIM, HIDDEN_DIM), jnp.float32)
        p[f"lstm.bias_ih_l{l}"] = 0.1 * jax.random.normal(
            next(keys), (4 * HIDDEN_DIM,), jnp.float32)
        p[f"lstm.bias_hh_l{l}"] = 0.1 * jax.random.normal(
            next(keys), (4 * HIDDEN_DIM,), jnp.float32)
    p["attention.weight"] = 0.1 * jax.random.normal(next(keys), (1, HIDDEN_DIM), jnp.float32)
    p["attention.bias"] = 0.1 * jax.random.normal(next(keys), (1,), jnp.float32)
    p["ff0.weight"] = 0.1 * jax.random.normal(
        next(keys), (HIDDEN_DIM, 2 * HIDDEN_DIM + STATIC_DIM + AFTER_EMB_DIM), jnp.float32)
    p["ff0.bias"] = 0.1 * jax.random.normal(next(keys), (HIDDEN_DIM,), jnp.float32)
    p["final.weight"] = 0.1 * jax.random.normal(next(keys), (OUTPUT_SIZE, HIDDEN_DIM), jnp.float32)
    p["final.bias"] = 0.1 * jax.random.normal(next(keys), (OUTPUT_SIZE,), jnp.float32)
    return p


# ---------------- pure-JAX reference for validation ----------------
def reference_forward(params, x, hidden, static, cat):
    h0_all, c0_all = hidden

    def lstm_layer_ref(x_bf, h0, c0, wih, whh, bih, bhh):
        def step(carry, xt):
            h, c = carry
            gates = xt @ wih.T + h @ whh.T + bih + bhh
            i, f, g, o = jnp.split(gates, 4, axis=-1)
            i, f, o = jax.nn.sigmoid(i), jax.nn.sigmoid(f), jax.nn.sigmoid(o)
            g = jnp.tanh(g)
            c = f * c + i * g
            h = o * jnp.tanh(c)
            return (h, c), h
        (hT, cT), outs = lax.scan(step, (h0, c0), jnp.transpose(x_bf, (1, 0, 2)))
        return jnp.transpose(outs, (1, 0, 2)), hT, cT

    out = x.astype(jnp.float32)
    hs, cs = [], []
    for l in range(N_LAYERS):
        out, hT, cT = lstm_layer_ref(out, h0_all[l], c0_all[l],
                                     params[f"lstm.weight_ih_l{l}"],
                                     params[f"lstm.weight_hh_l{l}"],
                                     params[f"lstm.bias_ih_l{l}"],
                                     params[f"lstm.bias_hh_l{l}"])
        hs.append(hT)
        cs.append(cT)
    lstm_out = out
    last_hidden = lstm_out[:, -1, :]
    scores = lstm_out @ params["attention.weight"].T + params["attention.bias"]
    attn = jax.nn.softmax(scores, axis=1)
    context = jnp.sum(attn * lstm_out, axis=1)
    att_out = jnp.concatenate([context, last_hidden], axis=1)
    embs = [jnp.take(params[f"emb_{i}"], cat[:, i].astype(jnp.int32), axis=0)
            for i in range(len(LIST_UNIC_CAT))]
    catv = jnp.concatenate(embs, axis=1)
    catv = jnp.maximum(
        catv @ params["after_embeddings.weight"].T + params["after_embeddings.bias"], 0.0)
    ff_in = jnp.concatenate([att_out, static.astype(jnp.float32), catv], axis=1)
    h1 = ff_in @ params["ff0.weight"].T + params["ff0.bias"]
    o = h1 @ params["final.weight"].T + params["final.bias"]
    return o.reshape(x.shape[0], -1), (jnp.stack(hs), jnp.stack(cs))


if __name__ == "__main__":
    key = jax.random.PRNGKey(0)
    kp, kx, ks, kc = jax.random.split(key, 4)
    params = init_params(kp)
    prepped = prepare_params(params)        # one-time weight packing

    x = jax.random.normal(kx, (BATCH, SEQ, NUM_INPUT_FEATURES), jnp.float32)
    static = jax.random.normal(ks, (BATCH, STATIC_DIM), jnp.float32)
    cat = jnp.stack(
        [jax.random.randint(jax.random.fold_in(kc, i), (BATCH,), 0, n)
         for i, n in enumerate(LIST_UNIC_CAT)], axis=1)
    hidden = (jnp.zeros((N_LAYERS, BATCH, HIDDEN_DIM), jnp.float32),
              jnp.zeros((N_LAYERS, BATCH, HIDDEN_DIM), jnp.float32))

    out, (h_n, c_n) = jax.block_until_ready(
        drought_net_forward(prepped, x, hidden, static, cat))

    ref_out, (ref_h, ref_c) = reference_forward(params, x, hidden, static, cat)
    np.testing.assert_allclose(np.asarray(out), np.asarray(ref_out), rtol=1e-4, atol=1e-4)
    np.testing.assert_allclose(np.asarray(h_n), np.asarray(ref_h), rtol=1e-4, atol=1e-4)
    np.testing.assert_allclose(np.asarray(c_n), np.asarray(ref_c), rtol=1e-4, atol=1e-4)
    print("KERNEL_OK")
</pallas_src>

<mosaic_0001>
module attributes {stable_mosaic.version = 11 : i64} {
  func.func @_fused_forward_kernel(%arg0: memref<256x128xf32, #tpu.memory_space<vmem>>, %arg1: memref<8x8x16xf32, #tpu.memory_space<vmem>>, %arg2: memref<2x8x32xf32, #tpu.memory_space<vmem>>, %arg3: memref<2x8x32xf32, #tpu.memory_space<vmem>>, %arg4: memref<8x10xf32, #tpu.memory_space<vmem>>, %arg5: memref<8x2xi32, #tpu.memory_space<vmem>>, %arg6: memref<8x256xf32, #tpu.memory_space<vmem>>, %arg7: memref<8x8x32xf32, #tpu.memory_space<vmem>>) attributes {dimension_semantics = [], scalar_prefetch = 0 : i64, scratch_operands = 1 : i64, tpu.core_type = #tpu.core_type<tc>} {
    %c16 = arith.constant 16 : index
    %c0 = arith.constant 0 : index
    %0 = vector.load %arg0[%c16, %c0] : memref<256x128xf32, #tpu.memory_space<vmem>>, vector<32x128xf32>
    %c48 = arith.constant 48 : index
    %c0_0 = arith.constant 0 : index
    %1 = vector.load %arg0[%c48, %c0_0] : memref<256x128xf32, #tpu.memory_space<vmem>>, vector<32x128xf32>
    %c80 = arith.constant 80 : index
    %c0_1 = arith.constant 0 : index
    %2 = vector.load %arg0[%c80, %c0_1] : memref<256x128xf32, #tpu.memory_space<vmem>>, vector<32x128xf32>
    %c113 = arith.constant 113 : index
    %c0_2 = arith.constant 0 : index
    %3 = vector.load %arg0[%c113, %c0_2] : memref<256x128xf32, #tpu.memory_space<vmem>>, vector<1x128xf32>
    %c0_3 = arith.constant 0 : index
    %c0_4 = arith.constant 0 : index
    %c0_5 = arith.constant 0 : index
    %4 = vector.load %arg1[%c0_3, %c0_4, %c0_5] : memref<8x8x16xf32, #tpu.memory_space<vmem>>, vector<8x8x16xf32>
    %c0_6 = arith.constant 0 : index
    %c0_7 = arith.constant 0 : index
    %5 = vector.load %arg0[%c0_6, %c0_7] : memref<256x128xf32, #tpu.memory_space<vmem>>, vector<16x128xf32>
    %c112 = arith.constant 112 : index
    %c0_8 = arith.constant 0 : index
    %6 = vector.load %arg0[%c112, %c0_8] : memref<256x128xf32, #tpu.memory_space<vmem>>, vector<1x128xf32>
    %7 = vector.shape_cast %4 : vector<8x8x16xf32> to vector<64x16xf32>
    %cst = arith.constant dense<0.000000e+00> : vector<64x128xf32>
    %8 = tpu.matmul %7, %5, %cst {dimension_numbers = #tpu.dot_dimension_numbers<[1], [0], [0], [1], [0, 0, 1, 1], [], []>} : vector<64x16xf32>, vector<16x128xf32>, vector<64x128xf32> -> vector<64x128xf32>
    %9 = vector.broadcast %6 : vector<1x128xf32> to vector<64x128xf32>
    %10 = arith.addf %8, %9 : vector<64x128xf32>
    %11 = vector.shape_cast %10 : vector<64x128xf32> to vector<8x8x128xf32>
    %c0_9 = arith.constant 0 : index
    %c0_10 = arith.constant 0 : index
    %c0_11 = arith.constant 0 : index
    %12 = vector.load %arg2[%c0_9, %c0_10, %c0_11] : memref<2x8x32xf32, #tpu.memory_space<vmem>>, vector<1x8x32xf32>
    %13 = vector.shape_cast %12 : vector<1x8x32xf32> to vector<8x32xf32>
    %c0_12 = arith.constant 0 : index
    %c0_13 = arith.constant 0 : index
    %c0_14 = arith.constant 0 : index
    %14 = vector.load %arg3[%c0_12, %c0_13, %c0_14] : memref<2x8x32xf32, #tpu.memory_space<vmem>>, vector<1x8x32xf32>
    %15 = vector.shape_cast %14 : vector<1x8x32xf32> to vector<8x32xf32>
    %c1 = arith.constant 1 : index
    %c0_15 = arith.constant 0 : index
    %c0_16 = arith.constant 0 : index
    %16 = vector.load %arg2[%c1, %c0_15, %c0_16] : memref<2x8x32xf32, #tpu.memory_space<vmem>>, vector<1x8x32xf32>
    %17 = vector.shape_cast %16 : vector<1x8x32xf32> to vector<8x32xf32>
    %c1_17 = arith.constant 1 : index
    %c0_18 = arith.constant 0 : index
    %c0_19 = arith.constant 0 : index
    %18 = vector.load %arg3[%c1_17, %c0_18, %c0_19] : memref<2x8x32xf32, #tpu.memory_space<vmem>>, vector<1x8x32xf32>
    %19 = vector.shape_cast %18 : vector<1x8x32xf32> to vector<8x32xf32>
    %20 = vector.extract_strided_slice %11 {offsets = [0, 0, 0], sizes = [8, 1, 128], strides = [1, 1, 1]} : vector<8x8x128xf32> to vector<8x1x128xf32>
    %21 = vector.shape_cast %20 : vector<8x1x128xf32> to vector<8x128xf32>
    %cst_20 = arith.constant dense<0.000000e+00> : vector<8x128xf32>
    %22 = tpu.matmul %13, %0, %cst_20 {dimension_numbers = #tpu.dot_dimension_numbers<[1], [0], [0], [1], [0, 0, 1, 1], [], []>} : vector<8x32xf32>, vector<32x128xf32>, vector<8x128xf32> -> vector<8x128xf32>
    %23 = arith.addf %21, %22 : vector<8x128xf32>
    %24 = arith.negf %23 : vector<8x128xf32>
    %25 = math.exp %24 : vector<8x128xf32>
    %cst_21 = arith.constant 1.000000e+00 : f32
    %26 = vector.broadcast %cst_21 : f32 to vector<8x128xf32>
    %27 = arith.addf %26, %25 : vector<8x128xf32>
    %28 = arith.divf %26, %27 : vector<8x128xf32>
    %29 = vector.extract_strided_slice %23 {offsets = [0, 64], sizes = [8, 32], strides = [1, 1]} : vector<8x128xf32> to vector<8x32xf32>
    %30 = math.tanh %29 : vector<8x32xf32>
    %31 = vector.extract_strided_slice %28 {offsets = [0, 0], sizes = [8, 32], strides = [1, 1]} : vector<8x128xf32> to vector<8x32xf32>
    %32 = vector.extract_strided_slice %28 {offsets = [0, 32], sizes = [8, 32], strides = [1, 1]} : vector<8x128xf32> to vector<8x32xf32>
    %33 = vector.extract_strided_slice %28 {offsets = [0, 96], sizes = [8, 32], strides = [1, 1]} : vector<8x128xf32> to vector<8x32xf32>
    %34 = arith.mulf %32, %15 : vector<8x32xf32>
    %35 = arith.mulf %31, %30 : vector<8x32xf32>
    %36 = arith.addf %34, %35 : vector<8x32xf32>
    %37 = math.tanh %36 : vector<8x32xf32>
    %38 = arith.mulf %33, %37 : vector<8x32xf32>
    %39 = vector.extract_strided_slice %11 {offsets = [0, 1, 0], sizes = [8, 1, 128], strides = [1, 1, 1]} : vector<8x8x128xf32> to vector<8x1x128xf32>
    %40 = vector.shape_cast %39 : vector<8x1x128xf32> to vector<8x128xf32>
    %cst_22 = arith.constant dense<0.000000e+00> : vector<8x128xf32>
    %41 = tpu.matmul %38, %0, %cst_22 {dimension_numbers = #tpu.dot_dimension_numbers<[1], [0], [0], [1], [0, 0, 1, 1], [], []>} : vector<8x32xf32>, vector<32x128xf32>, vector<8x128xf32> -> vector<8x128xf32>
    %42 = arith.addf %40, %41 : vector<8x128xf32>
    %cst_23 = arith.constant dense<0.000000e+00> : vector<8x128xf32>
    %43 = tpu.matmul %38, %1, %cst_23 {dimension_numbers = #tpu.dot_dimension_numbers<[1], [0], [0], [1], [0, 0, 1, 1], [], []>} : vector<8x32xf32>, vector<32x128xf32>, vector<8x128xf32> -> vector<8x128xf32>
    %44 = vector.broadcast %3 : vector<1x128xf32> to vector<8x128xf32>
    %45 = arith.addf %44, %43 : vector<8x128xf32>
    %cst_24 = arith.constant dense<0.000000e+00> : vector<8x128xf32>
    %46 = tpu.matmul %17, %2, %cst_24 {dimension_numbers = #tpu.dot_dimension_numbers<[1], [0], [0], [1], [0, 0, 1, 1], [], []>} : vector<8x32xf32>, vector<32x128xf32>, vector<8x128xf32> -> vector<8x128xf32>
    %47 = arith.addf %45, %46 : vector<8x128xf32>
    %48 = arith.negf %42 : vector<8x128xf32>
    %49 = math.exp %48 : vector<8x128xf32>
    %cst_25 = arith.constant 1.000000e+00 : f32
    %50 = vector.broadcast %cst_25 : f32 to vector<8x128xf32>
    %51 = arith.addf %50, %49 : vector<8x128xf32>
    %52 = arith.divf %50, %51 : vector<8x128xf32>
    %53 = vector.extract_strided_slice %42 {offsets = [0, 64], sizes = [8, 32], strides = [1, 1]} : vector<8x128xf32> to vector<8x32xf32>
    %54 = math.tanh %53 : vector<8x32xf32>
    %55 = vector.extract_strided_slice %52 {offsets = [0, 0], sizes = [8, 32], strides = [1, 1]} : vector<8x128xf32> to vector<8x32xf32>
    %56 = vector.extract_strided_slice %52 {offsets = [0, 32], sizes = [8, 32], strides = [1, 1]} : vector<8x128xf32> to vector<8x32xf32>
    %57 = vector.extract_strided_slice %52 {offsets = [0, 96], sizes = [8, 32], strides = [1, 1]} : vector<8x128xf32> to vector<8x32xf32>
    %58 = arith.mulf %56, %36 : vector<8x32xf32>
    %59 = arith.mulf %55, %54 : vector<8x32xf32>
    %60 = arith.addf %58, %59 : vector<8x32xf32>
    %61 = math.tanh %60 : vector<8x32xf32>
    %62 = arith.mulf %57, %61 : vector<8x32xf32>
    %63 = arith.negf %47 : vector<8x128xf32>
    %64 = math.exp %63 : vector<8x128xf32>
    %cst_26 = arith.constant 1.000000e+00 : f32
    %65 = vector.broadcast %cst_26 : f32 to vector<8x128xf32>
    %66 = arith.addf %65, %64 : vector<8x128xf32>
    %67 = arith.divf %65, %66 : vector<8x128xf32>
    %68 = vector.extract_strided_slice %47 {offsets = [0, 64], sizes = [8, 32], strides = [1, 1]} : vector<8x128xf32> to vector<8x32xf32>
    %69 = math.tanh %68 : vector<8x32xf32>
    %70 = vector.extract_strided_slice %67 {offsets = [0, 0], sizes = [8, 32], strides = [1, 1]} : vector<8x128xf32> to vector<8x32xf32>
    %71 = vector.extract_strided_slice %67 {offsets = [0, 32], sizes = [8, 32], strides = [1, 1]} : vector<8x128xf32> to vector<8x32xf32>
    %72 = vector.extract_strided_slice %67 {offsets = [0, 96], sizes = [8, 32], strides = [1, 1]} : vector<8x128xf32> to vector<8x32xf32>
    %73 = arith.mulf %71, %19 : vector<8x32xf32>
    %74 = arith.mulf %70, %69 : vector<8x32xf32>
    %75 = arith.addf %73, %74 : vector<8x32xf32>
    %76 = math.tanh %75 : vector<8x32xf32>
    %77 = arith.mulf %72, %76 : vector<8x32xf32>
    %c0_27 = arith.constant 0 : index
    %c0_28 = arith.constant 0 : index
    %c0_29 = arith.constant 0 : index
    %78 = vector.load %arg7[%c0_27, %c0_28, %c0_29] : memref<8x8x32xf32, #tpu.memory_space<vmem>>, vector<1x8x32xf32>
    %79 = vector.shape_cast %78 : vector<1x8x32xf32> to vector<8x32xf32>
    %80 = vector.shape_cast %77 : vector<8x32xf32> to vector<1x8x32xf32>
    tpu.vector_store %arg7[%c0_27, %c0_28, %c0_29], %80 {strides = array<i32>} : memref<8x8x32xf32, #tpu.memory_space<vmem>>, vector<1x8x32xf32>,
    %81 = vector.extract_strided_slice %11 {offsets = [0, 2, 0], sizes = [8, 1, 128], strides = [1, 1, 1]} : vector<8x8x128xf32> to vector<8x1x128xf32>
    %82 = vector.shape_cast %81 : vector<8x1x128xf32> to vector<8x128xf32>
    %cst_30 = arith.constant dense<0.000000e+00> : vector<8x128xf32>
    %83 = tpu.matmul %62, %0, %cst_30 {dimension_numbers = #tpu.dot_dimension_numbers<[1], [0], [0], [1], [0, 0, 1, 1], [], []>} : vector<8x32xf32>, vector<32x128xf32>, vector<8x128xf32> -> vector<8x128xf32>
    %84 = arith.addf %82, %83 : vector<8x128xf32>
    %cst_31 = arith.constant dense<0.000000e+00> : vector<8x128xf32>
    %85 = tpu.matmul %62, %1, %cst_31 {dimension_numbers = #tpu.dot_dimension_numbers<[1], [0], [0], [1], [0, 0, 1, 1], [], []>} : vector<8x32xf32>, vector<32x128xf32>, vector<8x128xf32> -> vector<8x128xf32>
    %86 = vector.broadcast %3 : vector<1x128xf32> to vector<8x128xf32>
    %87 = arith.addf %86, %85 : vector<8x128xf32>
    %cst_32 = arith.constant dense<0.000000e+00> : vector<8x128xf32>
    %88 = tpu.matmul %77, %2, %cst_32 {dimension_numbers = #tpu.dot_dimension_numbers<[1], [0], [0], [1], [0, 0, 1, 1], [], []>} : vector<8x32xf32>, vector<32x128xf32>, vector<8x128xf32> -> vector<8x128xf32>
    %89 = arith.addf %87, %88 : vector<8x128xf32>
    %90 = arith.negf %84 : vector<8x128xf32>
    %91 = math.exp %90 : vector<8x128xf32>
    %cst_33 = arith.constant 1.000000e+00 : f32
    %92 = vector.broadcast %cst_33 : f32 to vector<8x128xf32>
    %93 = arith.addf %92, %91 : vector<8x128xf32>
    %94 = arith.divf %92, %93 : vector<8x128xf32>
    %95 = vector.extract_strided_slice %84 {offsets = [0, 64], sizes = [8, 32], strides = [1, 1]} : vector<8x128xf32> to vector<8x32xf32>
    %96 = math.tanh %95 : vector<8x32xf32>
    %97 = vector.extract_strided_slice %94 {offsets = [0, 0], sizes = [8, 32], strides = [1, 1]} : vector<8x128xf32> to vector<8x32xf32>
    %98 = vector.extract_strided_slice %94 {offsets = [0, 32], sizes = [8, 32], strides = [1, 1]} : vector<8x128xf32> to vector<8x32xf32>
    %99 = vector.extract_strided_slice %94 {offsets = [0, 96], sizes = [8, 32], strides = [1, 1]} : vector<8x128xf32> to vector<8x32xf32>
    %100 = arith.mulf %98, %60 : vector<8x32xf32>
    %101 = arith.mulf %97, %96 : vector<8x32xf32>
    %102 = arith.addf %100, %101 : vector<8x32xf32>
    %103 = math.tanh %102 : vector<8x32xf32>
    %104 = arith.mulf %99, %103 : vector<8x32xf32>
    %105 = arith.negf %89 : vector<8x128xf32>
    %106 = math.exp %105 : vector<8x128xf32>
    %cst_34 = arith.constant 1.000000e+00 : f32
    %107 = vector.broadcast %cst_34 : f32 to vector<8x128xf32>
    %108 = arith.addf %107, %106 : vector<8x128xf32>
    %109 = arith.divf %107, %108 : vector<8x128xf32>
    %110 = vector.extract_strided_slice %89 {offsets = [0, 64], sizes = [8, 32], strides = [1, 1]} : vector<8x128xf32> to vector<8x32xf32>
    %111 = math.tanh %110 : vector<8x32xf32>
    %112 = vector.extract_strided_slice %109 {offsets = [0, 0], sizes = [8, 32], strides = [1, 1]} : vector<8x128xf32> to vector<8x32xf32>
    %113 = vector.extract_strided_slice %109 {offsets = [0, 32], sizes = [8, 32], strides = [1, 1]} : vector<8x128xf32> to vector<8x32xf32>
    %114 = vector.extract_strided_slice %109 {offsets = [0, 96], sizes = [8, 32], strides = [1, 1]} : vector<8x128xf32> to vector<8x32xf32>
    %115 = arith.mulf %113, %75 : vector<8x32xf32>
    %116 = arith.mulf %112, %111 : vector<8x32xf32>
    %117 = arith.addf %115, %116 : vector<8x32xf32>
    %118 = math.tanh %117 : vector<8x32xf32>
    %119 = arith.mulf %114, %118 : vector<8x32xf32>
    %c1_35 = arith.constant 1 : index
    %c0_36 = arith.constant 0 : index
    %c0_37 = arith.constant 0 : index
    %120 = vector.load %arg7[%c1_35, %c0_36, %c0_37] : memref<8x8x32xf32, #tpu.memory_space<vmem>>, vector<1x8x32xf32>
    %121 = vector.shape_cast %120 : vector<1x8x32xf32> to vector<8x32xf32>
    %122 = vector.shape_cast %119 : vector<8x32xf32> to vector<1x8x32xf32>
    tpu.vector_store %arg7[%c1_35, %c0_36, %c0_37], %122 {strides = array<i32>} : memref<8x8x32xf32, #tpu.memory_space<vmem>>, vector<1x8x32xf32>,
    %123 = vector.extract_strided_slice %11 {offsets = [0, 3, 0], sizes = [8, 1, 128], strides = [1, 1, 1]} : vector<8x8x128xf32> to vector<8x1x128xf32>
    %124 = vector.shape_cast %123 : vector<8x1x128xf32> to vector<8x128xf32>
    %cst_38 = arith.constant dense<0.000000e+00> : vector<8x128xf32>
    %125 = tpu.matmul %104, %0, %cst_38 {dimension_numbers = #tpu.dot_dimension_numbers<[1], [0], [0], [1], [0, 0, 1, 1], [], []>} : vector<8x32xf32>, vector<32x128xf32>, vector<8x128xf32> -> vector<8x128xf32>
    %126 = arith.addf %124, %125 : vector<8x128xf32>
    %cst_39 = arith.constant dense<0.000000e+00> : vector<8x128xf32>
    %127 = tpu.matmul %104, %1, %cst_39 {dimension_numbers = #tpu.dot_dimension_numbers<[1], [0], [0], [1], [0, 0, 1, 1], [], []>} : vector<8x32xf32>, vector<32x128xf32>, vector<8x128xf32> -> vector<8x128xf32>
    %128 = vector.broadcast %3 : vector<1x128xf32> to vector<8x128xf32>
    %129 = arith.addf %128, %127 : vector<8x128xf32>
    %cst_40 = arith.constant dense<0.000000e+00> : vector<8x128xf32>
    %130 = tpu.matmul %119, %2, %cst_40 {dimension_numbers = #tpu.dot_dimension_numbers<[1], [0], [0], [1], [0, 0, 1, 1], [], []>} : vector<8x32xf32>, vector<32x128xf32>, vector<8x128xf32> -> vector<8x128xf32>
    %131 = arith.addf %129, %130 : vector<8x128xf32>
    %132 = arith.negf %126 : vector<8x128xf32>
    %133 = math.exp %132 : vector<8x128xf32>
    %cst_41 = arith.constant 1.000000e+00 : f32
    %134 = vector.broadcast %cst_41 : f32 to vector<8x128xf32>
    %135 = arith.addf %134, %133 : vector<8x128xf32>
    %136 = arith.divf %134, %135 : vector<8x128xf32>
    %137 = vector.extract_strided_slice %126 {offsets = [0, 64], sizes = [8, 32], strides = [1, 1]} : vector<8x128xf32> to vector<8x32xf32>
    %138 = math.tanh %137 : vector<8x32xf32>
    %139 = vector.extract_strided_slice %136 {offsets = [0, 0], sizes = [8, 32], strides = [1, 1]} : vector<8x128xf32> to vector<8x32xf32>
    %140 = vector.extract_strided_slice %136 {offsets = [0, 32], sizes = [8, 32], strides = [1, 1]} : vector<8x128xf32> to vector<8x32xf32>
    %141 = vector.extract_strided_slice %136 {offsets = [0, 96], sizes = [8, 32], strides = [1, 1]} : vector<8x128xf32> to vector<8x32xf32>
    %142 = arith.mulf %140, %102 : vector<8x32xf32>
    %143 = arith.mulf %139, %138 : vector<8x32xf32>
    %144 = arith.addf %142, %143 : vector<8x32xf32>
    %145 = math.tanh %144 : vector<8x32xf32>
    %146 = arith.mulf %141, %145 : vector<8x32xf32>
    %147 = arith.negf %131 : vector<8x128xf32>
    %148 = math.exp %147 : vector<8x128xf32>
    %cst_42 = arith.constant 1.000000e+00 : f32
    %149 = vector.broadcast %cst_42 : f32 to vector<8x128xf32>
    %150 = arith.addf %149, %148 : vector<8x128xf32>
    %151 = arith.divf %149, %150 : vector<8x128xf32>
    %152 = vector.extract_strided_slice %131 {offsets = [0, 64], sizes = [8, 32], strides = [1, 1]} : vector<8x128xf32> to vector<8x32xf32>
    %153 = math.tanh %152 : vector<8x32xf32>
    %154 = vector.extract_strided_slice %151 {offsets = [0, 0], sizes = [8, 32], strides = [1, 1]} : vector<8x128xf32> to vector<8x32xf32>
    %155 = vector.extract_strided_slice %151 {offsets = [0, 32], sizes = [8, 32], strides = [1, 1]} : vector<8x128xf32> to vector<8x32xf32>
    %156 = vector.extract_strided_slice %151 {offsets = [0, 96], sizes = [8, 32], strides = [1, 1]} : vector<8x128xf32> to vector<8x32xf32>
    %157 = arith.mulf %155, %117 : vector<8x32xf32>
    %158 = arith.mulf %154, %153 : vector<8x32xf32>
    %159 = arith.addf %157, %158 : vector<8x32xf32>
    %160 = math.tanh %159 : vector<8x32xf32>
    %161 = arith.mulf %156, %160 : vector<8x32xf32>
    %c2 = arith.constant 2 : index
    %c0_43 = arith.constant 0 : index
    %c0_44 = arith.constant 0 : index
    %162 = vector.load %arg7[%c2, %c0_43, %c0_44] : memref<8x8x32xf32, #tpu.memory_space<vmem>>, vector<1x8x32xf32>
    %163 = vector.shape_cast %162 : vector<1x8x32xf32> to vector<8x32xf32>
    %164 = vector.shape_cast %161 : vector<8x32xf32> to vector<1x8x32xf32>
    tpu.vector_store %arg7[%c2, %c0_43, %c0_44], %164 {strides = array<i32>} : memref<8x8x32xf32, #tpu.memory_space<vmem>>, vector<1x8x32xf32>,
    %165 = vector.extract_strided_slice %11 {offsets = [0, 4, 0], sizes = [8, 1, 128], strides = [1, 1, 1]} : vector<8x8x128xf32> to vector<8x1x128xf32>
    %166 = vector.shape_cast %165 : vector<8x1x128xf32> to vector<8x128xf32>
    %cst_45 = arith.constant dense<0.000000e+00> : vector<8x128xf32>
    %167 = tpu.matmul %146, %0, %cst_45 {dimension_numbers = #tpu.dot_dimension_numbers<[1], [0], [0], [1], [0, 0, 1, 1], [], []>} : vector<8x32xf32>, vector<32x128xf32>, vector<8x128xf32> -> vector<8x128xf32>
    %168 = arith.addf %166, %167 : vector<8x128xf32>
    %cst_46 = arith.constant dense<0.000000e+00> : vector<8x128xf32>
    %169 = tpu.matmul %146, %1, %cst_46 {dimension_numbers = #tpu.dot_dimension_numbers<[1], [0], [0], [1], [0, 0, 1, 1], [], []>} : vector<8x32xf32>, vector<32x128xf32>, vector<8x128xf32> -> vector<8x128xf32>
    %170 = vector.broadcast %3 : vector<1x128xf32> to vector<8x128xf32>
    %171 = arith.addf %170, %169 : vector<8x128xf32>
    %cst_47 = arith.constant dense<0.000000e+00> : vector<8x128xf32>
    %172 = tpu.matmul %161, %2, %cst_47 {dimension_numbers = #tpu.dot_dimension_numbers<[1], [0], [0], [1], [0, 0, 1, 1], [], []>} : vector<8x32xf32>, vector<32x128xf32>, vector<8x128xf32> -> vector<8x128xf32>
    %173 = arith.addf %171, %172 : vector<8x128xf32>
    %174 = arith.negf %168 : vector<8x128xf32>
    %175 = math.exp %174 : vector<8x128xf32>
    %cst_48 = arith.constant 1.000000e+00 : f32
    %176 = vector.broadcast %cst_48 : f32 to vector<8x128xf32>
    %177 = arith.addf %176, %175 : vector<8x128xf32>
    %178 = arith.divf %176, %177 : vector<8x128xf32>
    %179 = vector.extract_strided_slice %168 {offsets = [0, 64], sizes = [8, 32], strides = [1, 1]} : vector<8x128xf32> to vector<8x32xf32>
    %180 = math.tanh %179 : vector<8x32xf32>
    %181 = vector.extract_strided_slice %178 {offsets = [0, 0], sizes = [8, 32], strides = [1, 1]} : vector<8x128xf32> to vector<8x32xf32>
    %182 = vector.extract_strided_slice %178 {offsets = [0, 32], sizes = [8, 32], strides = [1, 1]} : vector<8x128xf32> to vector<8x32xf32>
    %183 = vector.extract_strided_slice %178 {offsets = [0, 96], sizes = [8, 32], strides = [1, 1]} : vector<8x128xf32> to vector<8x32xf32>
    %184 = arith.mulf %182, %144 : vector<8x32xf32>
    %185 = arith.mulf %181, %180 : vector<8x32xf32>
    %186 = arith.addf %184, %185 : vector<8x32xf32>
    %187 = math.tanh %186 : vector<8x32xf32>
    %188 = arith.mulf %183, %187 : vector<8x32xf32>
    %189 = arith.negf %173 : vector<8x128xf32>
    %190 = math.exp %189 : vector<8x128xf32>
    %cst_49 = arith.constant 1.000000e+00 : f32
    %191 = vector.broadcast %cst_49 : f32 to vector<8x128xf32>
    %192 = arith.addf %191, %190 : vector<8x128xf32>
    %193 = arith.divf %191, %192 : vector<8x128xf32>
    %194 = vector.extract_strided_slice %173 {offsets = [0, 64], sizes = [8, 32], strides = [1, 1]} : vector<8x128xf32> to vector<8x32xf32>
    %195 = math.tanh %194 : vector<8x32xf32>
    %196 = vector.extract_strided_slice %193 {offsets = [0, 0], sizes = [8, 32], strides = [1, 1]} : vector<8x128xf32> to vector<8x32xf32>
    %197 = vector.extract_strided_slice %193 {offsets = [0, 32], sizes = [8, 32], strides = [1, 1]} : vector<8x128xf32> to vector<8x32xf32>
    %198 = vector.extract_strided_slice %193 {offsets = [0, 96], sizes = [8, 32], strides = [1, 1]} : vector<8x128xf32> to vector<8x32xf32>
    %199 = arith.mulf %197, %159 : vector<8x32xf32>
    %200 = arith.mulf %196, %195 : vector<8x32xf32>
    %201 = arith.addf %199, %200 : vector<8x32xf32>
    %202 = math.tanh %201 : vector<8x32xf32>
    %203 = arith.mulf %198, %202 : vector<8x32xf32>
    %c3 = arith.constant 3 : index
    %c0_50 = arith.constant 0 : index
    %c0_51 = arith.constant 0 : index
    %204 = vector.load %arg7[%c3, %c0_50, %c0_51] : memref<8x8x32xf32, #tpu.memory_space<vmem>>, vector<1x8x32xf32>
    %205 = vector.shape_cast %204 : vector<1x8x32xf32> to vector<8x32xf32>
    %206 = vector.shape_cast %203 : vector<8x32xf32> to vector<1x8x32xf32>
    tpu.vector_store %arg7[%c3, %c0_50, %c0_51], %206 {strides = array<i32>} : memref<8x8x32xf32, #tpu.memory_space<vmem>>, vector<1x8x32xf32>,
    %207 = vector.extract_strided_slice %11 {offsets = [0, 5, 0], sizes = [8, 1, 128], strides = [1, 1, 1]} : vector<8x8x128xf32> to vector<8x1x128xf32>
    %208 = vector.shape_cast %207 : vector<8x1x128xf32> to vector<8x128xf32>
    %cst_52 = arith.constant dense<0.000000e+00> : vector<8x128xf32>
    %209 = tpu.matmul %188, %0, %cst_52 {dimension_numbers = #tpu.dot_dimension_numbers<[1], [0], [0], [1], [0, 0, 1, 1], [], []>} : vector<8x32xf32>, vector<32x128xf32>, vector<8x128xf32> -> vector<8x128xf32>
    %210 = arith.addf %208, %209 : vector<8x128xf32>
    %cst_53 = arith.constant dense<0.000000e+00> : vector<8x128xf32>
    %211 = tpu.matmul %188, %1, %cst_53 {dimension_numbers = #tpu.dot_dimension_numbers<[1], [0], [0], [1], [0, 0, 1, 1], [], []>} : vector<8x32xf32>, vector<32x128xf32>, vector<8x128xf32> -> vector<8x128xf32>
    %212 = vector.broadcast %3 : vector<1x128xf32> to vector<8x128xf32>
    %213 = arith.addf %212, %211 : vector<8x128xf32>
    %cst_54 = arith.constant dense<0.000000e+00> : vector<8x128xf32>
    %214 = tpu.matmul %203, %2, %cst_54 {dimension_numbers = #tpu.dot_dimension_numbers<[1], [0], [0], [1], [0, 0, 1, 1], [], []>} : vector<8x32xf32>, vector<32x128xf32>, vector<8x128xf32> -> vector<8x128xf32>
    %215 = arith.addf %213, %214 : vector<8x128xf32>
    %216 = arith.negf %210 : vector<8x128xf32>
    %217 = math.exp %216 : vector<8x128xf32>
    %cst_55 = arith.constant 1.000000e+00 : f32
    %218 = vector.broadcast %cst_55 : f32 to vector<8x128xf32>
    %219 = arith.addf %218, %217 : vector<8x128xf32>
    %220 = arith.divf %218, %219 : vector<8x128xf32>
    %221 = vector.extract_strided_slice %210 {offsets = [0, 64], sizes = [8, 32], strides = [1, 1]} : vector<8x128xf32> to vector<8x32xf32>
    %222 = math.tanh %221 : vector<8x32xf32>
    %223 = vector.extract_strided_slice %220 {offsets = [0, 0], sizes = [8, 32], strides = [1, 1]} : vector<8x128xf32> to vector<8x32xf32>
    %224 = vector.extract_strided_slice %220 {offsets = [0, 32], sizes = [8, 32], strides = [1, 1]} : vector<8x128xf32> to vector<8x32xf32>
    %225 = vector.extract_strided_slice %220 {offsets = [0, 96], sizes = [8, 32], strides = [1, 1]} : vector<8x128xf32> to vector<8x32xf32>
    %226 = arith.mulf %224, %186 : vector<8x32xf32>
    %227 = arith.mulf %223, %222 : vector<8x32xf32>
    %228 = arith.addf %226, %227 : vector<8x32xf32>
    %229 = math.tanh %228 : vector<8x32xf32>
    %230 = arith.mulf %225, %229 : vector<8x32xf32>
    %231 = arith.negf %215 : vector<8x128xf32>
    %232 = math.exp %231 : vector<8x128xf32>
    %cst_56 = arith.constant 1.000000e+00 : f32
    %233 = vector.broadcast %cst_56 : f32 to vector<8x128xf32>
    %234 = arith.addf %233, %232 : vector<8x128xf32>
    %235 = arith.divf %233, %234 : vector<8x128xf32>
    %236 = vector.extract_strided_slice %215 {offsets = [0, 64], sizes = [8, 32], strides = [1, 1]} : vector<8x128xf32> to vector<8x32xf32>
    %237 = math.tanh %236 : vector<8x32xf32>
    %238 = vector.extract_strided_slice %235 {offsets = [0, 0], sizes = [8, 32], strides = [1, 1]} : vector<8x128xf32> to vector<8x32xf32>
    %239 = vector.extract_strided_slice %235 {offsets = [0, 32], sizes = [8, 32], strides = [1, 1]} : vector<8x128xf32> to vector<8x32xf32>
    %240 = vector.extract_strided_slice %235 {offsets = [0, 96], sizes = [8, 32], strides = [1, 1]} : vector<8x128xf32> to vector<8x32xf32>
    %241 = arith.mulf %239, %201 : vector<8x32xf32>
    %242 = arith.mulf %238, %237 : vector<8x32xf32>
    %243 = arith.addf %241, %242 : vector<8x32xf32>
    %244 = math.tanh %243 : vector<8x32xf32>
    %245 = arith.mulf %240, %244 : vector<8x32xf32>
    %c4 = arith.constant 4 : index
    %c0_57 = arith.constant 0 : index
    %c0_58 = arith.constant 0 : index
    %246 = vector.load %arg7[%c4, %c0_57, %c0_58] : memref<8x8x32xf32, #tpu.memory_space<vmem>>, vector<1x8x32xf32>
    %247 = vector.shape_cast %246 : vector<1x8x32xf32> to vector<8x32xf32>
    %248 = vector.shape_cast %245 : vector<8x32xf32> to vector<1x8x32xf32>
    tpu.vector_store %arg7[%c4, %c0_57, %c0_58], %248 {strides = array<i32>} : memref<8x8x32xf32, #tpu.memory_space<vmem>>, vector<1x8x32xf32>,
    %249 = vector.extract_strided_slice %11 {offsets = [0, 6, 0], sizes = [8, 1, 128], strides = [1, 1, 1]} : vector<8x8x128xf32> to vector<8x1x128xf32>
    %250 = vector.shape_cast %249 : vector<8x1x128xf32> to vector<8x128xf32>
    %cst_59 = arith.constant dense<0.000000e+00> : vector<8x128xf32>
    %251 = tpu.matmul %230, %0, %cst_59 {dimension_numbers = #tpu.dot_dimension_numbers<[1], [0], [0], [1], [0, 0, 1, 1], [], []>} : vector<8x32xf32>, vector<32x128xf32>, vector<8x128xf32> -> vector<8x128xf32>
    %252 = arith.addf %250, %251 : vector<8x128xf32>
    %cst_60 = arith.constant dense<0.000000e+00> : vector<8x128xf32>
    %253 = tpu.matmul %230, %1, %cst_60 {dimension_numbers = #tpu.dot_dimension_numbers<[1], [0], [0], [1], [0, 0, 1, 1], [], []>} : vector<8x32xf32>, vector<32x128xf32>, vector<8x128xf32> -> vector<8x128xf32>
    %254 = vector.broadcast %3 : vector<1x128xf32> to vector<8x128xf32>
    %255 = arith.addf %254, %253 : vector<8x128xf32>
    %cst_61 = arith.constant dense<0.000000e+00> : vector<8x128xf32>
    %256 = tpu.matmul %245, %2, %cst_61 {dimension_numbers = #tpu.dot_dimension_numbers<[1], [0], [0], [1], [0, 0, 1, 1], [], []>} : vector<8x32xf32>, vector<32x128xf32>, vector<8x128xf32> -> vector<8x128xf32>
    %257 = arith.addf %255, %256 : vector<8x128xf32>
    %258 = arith.negf %252 : vector<8x128xf32>
    %259 = math.exp %258 : vector<8x128xf32>
    %cst_62 = arith.constant 1.000000e+00 : f32
    %260 = vector.broadcast %cst_62 : f32 to vector<8x128xf32>
    %261 = arith.addf %260, %259 : vector<8x128xf32>
    %262 = arith.divf %260, %261 : vector<8x128xf32>
    %263 = vector.extract_strided_slice %252 {offsets = [0, 64], sizes = [8, 32], strides = [1, 1]} : vector<8x128xf32> to vector<8x32xf32>
    %264 = math.tanh %263 : vector<8x32xf32>
    %265 = vector.extract_strided_slice %262 {offsets = [0, 0], sizes = [8, 32], strides = [1, 1]} : vector<8x128xf32> to vector<8x32xf32>
    %266 = vector.extract_strided_slice %262 {offsets = [0, 32], sizes = [8, 32], strides = [1, 1]} : vector<8x128xf32> to vector<8x32xf32>
    %267 = vector.extract_strided_slice %262 {offsets = [0, 96], sizes = [8, 32], strides = [1, 1]} : vector<8x128xf32> to vector<8x32xf32>
    %268 = arith.mulf %266, %228 : vector<8x32xf32>
    %269 = arith.mulf %265, %264 : vector<8x32xf32>
    %270 = arith.addf %268, %269 : vector<8x32xf32>
    %271 = math.tanh %270 : vector<8x32xf32>
    %272 = arith.mulf %267, %271 : vector<8x32xf32>
    %273 = arith.negf %257 : vector<8x128xf32>
    %274 = math.exp %273 : vector<8x128xf32>
    %cst_63 = arith.constant 1.000000e+00 : f32
    %275 = vector.broadcast %cst_63 : f32 to vector<8x128xf32>
    %276 = arith.addf %275, %274 : vector<8x128xf32>
    %277 = arith.divf %275, %276 : vector<8x128xf32>
    %278 = vector.extract_strided_slice %257 {offsets = [0, 64], sizes = [8, 32], strides = [1, 1]} : vector<8x128xf32> to vector<8x32xf32>
    %279 = math.tanh %278 : vector<8x32xf32>
    %280 = vector.extract_strided_slice %277 {offsets = [0, 0], sizes = [8, 32], strides = [1, 1]} : vector<8x128xf32> to vector<8x32xf32>
    %281 = vector.extract_strided_slice %277 {offsets = [0, 32], sizes = [8, 32], strides = [1, 1]} : vector<8x128xf32> to vector<8x32xf32>
    %282 = vector.extract_strided_slice %277 {offsets = [0, 96], sizes = [8, 32], strides = [1, 1]} : vector<8x128xf32> to vector<8x32xf32>
    %283 = arith.mulf %281, %243 : vector<8x32xf32>
    %284 = arith.mulf %280, %279 : vector<8x32xf32>
    %285 = arith.addf %283, %284 : vector<8x32xf32>
    %286 = math.tanh %285 : vector<8x32xf32>
    %287 = arith.mulf %282, %286 : vector<8x32xf32>
    %c5 = arith.constant 5 : index
    %c0_64 = arith.constant 0 : index
    %c0_65 = arith.constant 0 : index
    %288 = vector.load %arg7[%c5, %c0_64, %c0_65] : memref<8x8x32xf32, #tpu.memory_space<vmem>>, vector<1x8x32xf32>
    %289 = vector.shape_cast %288 : vector<1x8x32xf32> to vector<8x32xf32>
    %290 = vector.shape_cast %287 : vector<8x32xf32> to vector<1x8x32xf32>
    tpu.vector_store %arg7[%c5, %c0_64, %c0_65], %290 {strides = array<i32>} : memref<8x8x32xf32, #tpu.memory_space<vmem>>, vector<1x8x32xf32>,
    %291 = vector.extract_strided_slice %11 {offsets = [0, 7, 0], sizes = [8, 1, 128], strides = [1, 1, 1]} : vector<8x8x128xf32> to vector<8x1x128xf32>
    %292 = vector.shape_cast %291 : vector<8x1x128xf32> to vector<8x128xf32>
    %cst_66 = arith.constant dense<0.000000e+00> : vector<8x128xf32>
    %293 = tpu.matmul %272, %0, %cst_66 {dimension_numbers = #tpu.dot_dimension_numbers<[1], [0], [0], [1], [0, 0, 1, 1], [], []>} : vector<8x32xf32>, vector<32x128xf32>, vector<8x128xf32> -> vector<8x128xf32>
    %294 = arith.addf %292, %293 : vector<8x128xf32>
    %cst_67 = arith.constant dense<0.000000e+00> : vector<8x128xf32>
    %295 = tpu.matmul %272, %1, %cst_67 {dimension_numbers = #tpu.dot_dimension_numbers<[1], [0], [0], [1], [0, 0, 1, 1], [], []>} : vector<8x32xf32>, vector<32x128xf32>, vector<8x128xf32> -> vector<8x128xf32>
    %296 = vector.broadcast %3 : vector<1x128xf32> to vector<8x128xf32>
    %297 = arith.addf %296, %295 : vector<8x128xf32>
    %cst_68 = arith.constant dense<0.000000e+00> : vector<8x128xf32>
    %298 = tpu.matmul %287, %2, %cst_68 {dimension_numbers = #tpu.dot_dimension_numbers<[1], [0], [0], [1], [0, 0, 1, 1], [], []>} : vector<8x32xf32>, vector<32x128xf32>, vector<8x128xf32> -> vector<8x128xf32>
    %299 = arith.addf %297, %298 : vector<8x128xf32>
    %300 = arith.negf %294 : vector<8x128xf32>
    %301 = math.exp %300 : vector<8x128xf32>
    %cst_69 = arith.constant 1.000000e+00 : f32
    %302 = vector.broadcast %cst_69 : f32 to vector<8x128xf32>
    %303 = arith.addf %302, %301 : vector<8x128xf32>
    %304 = arith.divf %302, %303 : vector<8x128xf32>
    %305 = vector.extract_strided_slice %294 {offsets = [0, 64], sizes = [8, 32], strides = [1, 1]} : vector<8x128xf32> to vector<8x32xf32>
    %306 = math.tanh %305 : vector<8x32xf32>
    %307 = vector.extract_strided_slice %304 {offsets = [0, 0], sizes = [8, 32], strides = [1, 1]} : vector<8x128xf32> to vector<8x32xf32>
    %308 = vector.extract_strided_slice %304 {offsets = [0, 32], sizes = [8, 32], strides = [1, 1]} : vector<8x128xf32> to vector<8x32xf32>
    %309 = vector.extract_strided_slice %304 {offsets = [0, 96], sizes = [8, 32], strides = [1, 1]} : vector<8x128xf32> to vector<8x32xf32>
    %310 = arith.mulf %308, %270 : vector<8x32xf32>
    %311 = arith.mulf %307, %306 : vector<8x32xf32>
    %312 = arith.addf %310, %311 : vector<8x32xf32>
    %313 = math.tanh %312 : vector<8x32xf32>
    %314 = arith.mulf %309, %313 : vector<8x32xf32>
    %315 = arith.negf %299 : vector<8x128xf32>
    %316 = math.exp %315 : vector<8x128xf32>
    %cst_70 = arith.constant 1.000000e+00 : f32
    %317 = vector.broadcast %cst_70 : f32 to vector<8x128xf32>
    %318 = arith.addf %317, %316 : vector<8x128xf32>
    %319 = arith.divf %317, %318 : vector<8x128xf32>
    %320 = vector.extract_strided_slice %299 {offsets = [0, 64], sizes = [8, 32], strides = [1, 1]} : vector<8x128xf32> to vector<8x32xf32>
    %321 = math.tanh %320 : vector<8x32xf32>
    %322 = vector.extract_strided_slice %319 {offsets = [0, 0], sizes = [8, 32], strides = [1, 1]} : vector<8x128xf32> to vector<8x32xf32>
    %323 = vector.extract_strided_slice %319 {offsets = [0, 32], sizes = [8, 32], strides = [1, 1]} : vector<8x128xf32> to vector<8x32xf32>
    %324 = vector.extract_strided_slice %319 {offsets = [0, 96], sizes = [8, 32], strides = [1, 1]} : vector<8x128xf32> to vector<8x32xf32>
    %325 = arith.mulf %323, %285 : vector<8x32xf32>
    %326 = arith.mulf %322, %321 : vector<8x32xf32>
    %327 = arith.addf %325, %326 : vector<8x32xf32>
    %328 = math.tanh %327 : vector<8x32xf32>
    %329 = arith.mulf %324, %328 : vector<8x32xf32>
    %c6 = arith.constant 6 : index
    %c0_71 = arith.constant 0 : index
    %c0_72 = arith.constant 0 : index
    %330 = vector.load %arg7[%c6, %c0_71, %c0_72] : memref<8x8x32xf32, #tpu.memory_space<vmem>>, vector<1x8x32xf32>
    %331 = vector.shape_cast %330 : vector<1x8x32xf32> to vector<8x32xf32>
    %332 = vector.shape_cast %329 : vector<8x32xf32> to vector<1x8x32xf32>
    tpu.vector_store %arg7[%c6, %c0_71, %c0_72], %332 {strides = array<i32>} : memref<8x8x32xf32, #tpu.memory_space<vmem>>, vector<1x8x32xf32>,
    %cst_73 = arith.constant dense<0.000000e+00> : vector<8x128xf32>
    %333 = tpu.matmul %314, %1, %cst_73 {dimension_numbers = #tpu.dot_dimension_numbers<[1], [0], [0], [1], [0, 0, 1, 1], [], []>} : vector<8x32xf32>, vector<32x128xf32>, vector<8x128xf32> -> vector<8x128xf32>
    %334 = vector.broadcast %3 : vector<1x128xf32> to vector<8x128xf32>
    %335 = arith.addf %334, %333 : vector<8x128xf32>
    %cst_74 = arith.constant dense<0.000000e+00> : vector<8x128xf32>
    %336 = tpu.matmul %329, %2, %cst_74 {dimension_numbers = #tpu.dot_dimension_numbers<[1], [0], [0], [1], [0, 0, 1, 1], [], []>} : vector<8x32xf32>, vector<32x128xf32>, vector<8x128xf32> -> vector<8x128xf32>
    %337 = arith.addf %335, %336 : vector<8x128xf32>
    %338 = arith.negf %337 : vector<8x128xf32>
    %339 = math.exp %338 : vector<8x128xf32>
    %cst_75 = arith.constant 1.000000e+00 : f32
    %340 = vector.broadcast %cst_75 : f32 to vector<8x128xf32>
    %341 = arith.addf %340, %339 : vector<8x128xf32>
    %342 = arith.divf %340, %341 : vector<8x128xf32>
    %343 = vector.extract_strided_slice %337 {offsets = [0, 64], sizes = [8, 32], strides = [1, 1]} : vector<8x128xf32> to vector<8x32xf32>
    %344 = math.tanh %343 : vector<8x32xf32>
    %345 = vector.extract_strided_slice %342 {offsets = [0, 0], sizes = [8, 32], strides = [1, 1]} : vector<8x128xf32> to vector<8x32xf32>
    %346 = vector.extract_strided_slice %342 {offsets = [0, 32], sizes = [8, 32], strides = [1, 1]} : vector<8x128xf32> to vector<8x32xf32>
    %347 = vector.extract_strided_slice %342 {offsets = [0, 96], sizes = [8, 32], strides = [1, 1]} : vector<8x128xf32> to vector<8x32xf32>
    %348 = arith.mulf %346, %327 : vector<8x32xf32>
    %349 = arith.mulf %345, %344 : vector<8x32xf32>
    %350 = arith.addf %348, %349 : vector<8x32xf32>
    %351 = math.tanh %350 : vector<8x32xf32>
    %352 = arith.mulf %347, %351 : vector<8x32xf32>
    %c7 = arith.constant 7 : index
    %c0_76 = arith.constant 0 : index
    %c0_77 = arith.constant 0 : index
    %353 = vector.load %arg7[%c7, %c0_76, %c0_77] : memref<8x8x32xf32, #tpu.memory_space<vmem>>, vector<1x8x32xf32>
    %354 = vector.shape_cast %353 : vector<1x8x32xf32> to vector<8x32xf32>
    %355 = vector.shape_cast %352 : vector<8x32xf32> to vector<1x8x32xf32>
    tpu.vector_store %arg7[%c7, %c0_76, %c0_77], %355 {strides = array<i32>} : memref<8x8x32xf32, #tpu.memory_space<vmem>>, vector<1x8x32xf32>,
    %c0_78 = arith.constant 0 : index
    %c0_79 = arith.constant 0 : index
    %c0_80 = arith.constant 0 : index
    %356 = vector.load %arg7[%c0_78, %c0_79, %c0_80] : memref<8x8x32xf32, #tpu.memory_space<vmem>>, vector<8x8x32xf32>
    %c117 = arith.constant 117 : index
    %c0_81 = arith.constant 0 : index
    %357 = vector.load %arg0[%c117, %c0_81] : memref<256x128xf32, #tpu.memory_space<vmem>>, vector<1x32xf32>
    %358 = vector.shape_cast %357 : vector<1x32xf32> to vector<1x1x32xf32>
    %c118 = arith.constant 118 : index
    %c0_82 = arith.constant 0 : index
    %359 = vector.load %arg0[%c118, %c0_82] : memref<256x128xf32, #tpu.memory_space<vmem>>, vector<1x1xf32>
    %360 = vector.shape_cast %359 : vector<1x1xf32> to vector<1x1x1xf32>
    %361 = vector.broadcast %358 : vector<1x1x32xf32> to vector<8x8x32xf32>
    %362 = arith.mulf %356, %361 : vector<8x8x32xf32>
    %cst_83 = arith.constant dense<0.000000e+00> : vector<8x8xf32>
    %363 = vector.multi_reduction <add>, %362, %cst_83 [2] : vector<8x8x32xf32> to vector<8x8xf32>
    %364 = vector.shape_cast %363 : vector<8x8xf32> to vector<8x8x1xf32>
    %365 = vector.broadcast %360 : vector<1x1x1xf32> to vector<8x8x1xf32>
    %366 = arith.addf %364, %365 : vector<8x8x1xf32>
    %cst_84 = arith.constant dense<0xFF800000> : vector<8x1xf32>
    %367 = vector.multi_reduction <maximumf>, %366, %cst_84 [0] : vector<8x8x1xf32> to vector<8x1xf32>
    %368 = vector.shape_cast %367 : vector<8x1xf32> to vector<1x8x1xf32>
    %369 = vector.broadcast %368 : vector<1x8x1xf32> to vector<8x8x1xf32>
    %370 = arith.subf %366, %369 : vector<8x8x1xf32>
    %371 = math.exp %370 : vector<8x8x1xf32>
    %cst_85 = arith.constant dense<0.000000e+00> : vector<8x1xf32>
    %372 = vector.multi_reduction <add>, %371, %cst_85 [0] : vector<8x8x1xf32> to vector<8x1xf32>
    %373 = vector.shape_cast %372 : vector<8x1xf32> to vector<1x8x1xf32>
    %374 = vector.broadcast %373 : vector<1x8x1xf32> to vector<8x8x1xf32>
    %375 = arith.divf %371, %374 : vector<8x8x1xf32>
    %376 = vector.broadcast %375 : vector<8x8x1xf32> to vector<8x8x32xf32>
    %377 = arith.mulf %376, %356 : vector<8x8x32xf32>
    %cst_86 = arith.constant dense<0.000000e+00> : vector<8x32xf32>
    %378 = vector.multi_reduction <add>, %377, %cst_86 [0] : vector<8x8x32xf32> to vector<8x32xf32>
    %c0_87 = arith.constant 0 : index
    %c0_88 = arith.constant 0 : index
    %379 = vector.load %arg5[%c0_87, %c0_88] : memref<8x2xi32, #tpu.memory_space<vmem>>, vector<8x1xi32>
    %c0_89 = arith.constant 0 : index
    %c1_90 = arith.constant 1 : index
    %380 = vector.load %arg5[%c0_89, %c1_90] : memref<8x2xi32, #tpu.memory_space<vmem>>, vector<8x1xi32>
    %c6_i32 = arith.constant 6 : i32
    %381 = vector.broadcast %c6_i32 : i32 to vector<8x1xi32>
    %382 = arith.addi %380, %381 : vector<8x1xi32>
    %383 = tpu.iota {dimensions = array<i32: 1>} : vector<8x16xi32>
    %384 = vector.broadcast %379 : vector<8x1xi32> to vector<8x16xi32>
    %385 = arith.cmpi eq, %383, %384 : vector<8x16xi32>
    %386 = vector.broadcast %382 : vector<8x1xi32> to vector<8x16xi32>
    %387 = arith.cmpi eq, %383, %386 : vector<8x16xi32>
    %388 = arith.ori %385, %387 : vector<8x16xi1>
    %cst_91 = arith.constant 1.000000e+00 : f32
    %cst_92 = arith.constant 0.000000e+00 : f32
    %389 = vector.broadcast %cst_91 : f32 to vector<8x16xf32>
    %390 = vector.broadcast %cst_92 : f32 to vector<8x16xf32>
    %391 = arith.select %388, %389, %390 : vector<8x16xi1>, vector<8x16xf32>
    %c240 = arith.constant 240 : index
    %c0_93 = arith.constant 0 : index
    %392 = vector.load %arg0[%c240, %c0_93] : memref<256x128xf32, #tpu.memory_space<vmem>>, vector<16x7xf32>
    %c116 = arith.constant 116 : index
    %c0_94 = arith.constant 0 : index
    %393 = vector.load %arg0[%c116, %c0_94] : memref<256x128xf32, #tpu.memory_space<vmem>>, vector<1x7xf32>
    %cst_95 = arith.constant dense<0.000000e+00> : vector<8x7xf32>
    %394 = tpu.matmul %391, %392, %cst_95 {dimension_numbers = #tpu.dot_dimension_numbers<[1], [0], [0], [1], [0, 0, 1, 1], [], []>} : vector<8x16xf32>, vector<16x7xf32>, vector<8x7xf32> -> vector<8x7xf32>
    %395 = vector.broadcast %393 : vector<1x7xf32> to vector<8x7xf32>
    %396 = arith.addf %394, %395 : vector<8x7xf32>
    %cst_96 = arith.constant 0.000000e+00 : f32
    %397 = vector.broadcast %cst_96 : f32 to vector<8x7xf32>
    %398 = arith.maximumf %396, %397 : vector<8x7xf32>
    %c120 = arith.constant 120 : index
    %c0_97 = arith.constant 0 : index
    %399 = vector.load %arg0[%c120, %c0_97] : memref<256x128xf32, #tpu.memory_space<vmem>>, vector<32x32xf32>
    %c152 = arith.constant 152 : index
    %c0_98 = arith.constant 0 : index
    %400 = vector.load %arg0[%c152, %c0_98] : memref<256x128xf32, #tpu.memory_space<vmem>>, vector<32x32xf32>
    %c184 = arith.constant 184 : index
    %c0_99 = arith.constant 0 : index
    %401 = vector.load %arg0[%c184, %c0_99] : memref<256x128xf32, #tpu.memory_space<vmem>>, vector<10x32xf32>
    %c200 = arith.constant 200 : index
    %c0_100 = arith.constant 0 : index
    %402 = vector.load %arg0[%c200, %c0_100] : memref<256x128xf32, #tpu.memory_space<vmem>>, vector<7x32xf32>
    %c114 = arith.constant 114 : index
    %c0_101 = arith.constant 0 : index
    %403 = vector.load %arg0[%c114, %c0_101] : memref<256x128xf32, #tpu.memory_space<vmem>>, vector<1x32xf32>
    %cst_102 = arith.constant dense<0.000000e+00> : vector<8x32xf32>
    %404 = tpu.matmul %378, %399, %cst_102 {dimension_numbers = #tpu.dot_dimension_numbers<[1], [0], [0], [1], [0, 0, 1, 1], [], []>} : vector<8x32xf32>, vector<32x32xf32>, vector<8x32xf32> -> vector<8x32xf32>
    %cst_103 = arith.constant dense<0.000000e+00> : vector<8x32xf32>
    %405 = tpu.matmul %352, %400, %cst_103 {dimension_numbers = #tpu.dot_dimension_numbers<[1], [0], [0], [1], [0, 0, 1, 1], [], []>} : vector<8x32xf32>, vector<32x32xf32>, vector<8x32xf32> -> vector<8x32xf32>
    %406 = arith.addf %404, %405 : vector<8x32xf32>
    %c0_104 = arith.constant 0 : index
    %c0_105 = arith.constant 0 : index
    %407 = vector.load %arg4[%c0_104, %c0_105] : memref<8x10xf32, #tpu.memory_space<vmem>>, vector<8x10xf32>
    %cst_106 = arith.constant dense<0.000000e+00> : vector<8x32xf32>
    %408 = tpu.matmul %407, %401, %cst_106 {dimension_numbers = #tpu.dot_dimension_numbers<[1], [0], [0], [1], [0, 0, 1, 1], [], []>} : vector<8x10xf32>, vector<10x32xf32>, vector<8x32xf32> -> vector<8x32xf32>
    %409 = arith.addf %406, %408 : vector<8x32xf32>
    %cst_107 = arith.constant dense<0.000000e+00> : vector<8x32xf32>
    %410 = tpu.matmul %398, %402, %cst_107 {dimension_numbers = #tpu.dot_dimension_numbers<[1], [0], [0], [1], [0, 0, 1, 1], [], []>} : vector<8x7xf32>, vector<7x32xf32>, vector<8x32xf32> -> vector<8x32xf32>
    %411 = arith.addf %409, %410 : vector<8x32xf32>
    %412 = vector.broadcast %403 : vector<1x32xf32> to vector<8x32xf32>
    %413 = arith.addf %411, %412 : vector<8x32xf32>
    %c208 = arith.constant 208 : index
    %c0_108 = arith.constant 0 : index
    %414 = vector.load %arg0[%c208, %c0_108] : memref<256x128xf32, #tpu.memory_space<vmem>>, vector<32x6xf32>
    %c115 = arith.constant 115 : index
    %c0_109 = arith.constant 0 : index
    %415 = vector.load %arg0[%c115, %c0_109] : memref<256x128xf32, #tpu.memory_space<vmem>>, vector<1x6xf32>
    %cst_110 = arith.constant dense<0.000000e+00> : vector<8x6xf32>
    %416 = tpu.matmul %413, %414, %cst_110 {dimension_numbers = #tpu.dot_dimension_numbers<[1], [0], [0], [1], [0, 0, 1, 1], [], []>} : vector<8x32xf32>, vector<32x6xf32>, vector<8x6xf32> -> vector<8x6xf32>
    %417 = vector.broadcast %415 : vector<1x6xf32> to vector<8x6xf32>
    %418 = arith.addf %416, %417 : vector<8x6xf32>
    %cst_111 = arith.constant 0.000000e+00 : f32
    %419 = vector.broadcast %cst_111 : f32 to vector<8x122xf32>
    %420 = tpu.concatenate %314, %352, %312, %350, %418, %419 in 1 : vector<8x32xf32>, vector<8x32xf32>, vector<8x32xf32>, vector<8x32xf32>, vector<8x6xf32>, vector<8x122xf32> -> vector<8x256xf32>
    %c0_112 = arith.constant 0 : index
    %c0_113 = arith.constant 0 : index
    %421 = vector.load %arg6[%c0_112, %c0_113] : memref<8x256xf32, #tpu.memory_space<vmem>>, vector<8x256xf32>
    tpu.vector_store %arg6[%c0_112, %c0_113], %420 {strides = array<i32>} : memref<8x256xf32, #tpu.memory_space<vmem>>, vector<8x256xf32>,
    return
  }
}

</mosaic_0001>

<bundles_post_ra>
// kernel: drought_net_forward.1
= control target key start
LH: loop header
LB: loop body
LE: loop exit
PB: predicated region body
PF: predicated region fallthrough
CT: control target
= control target key end

     0   :  { %11 = vsyncpa [#allocation4], 0  ;;  %s8068_s0 = inlined_call_operand.hbm [shape: f32[256,128], index: 0, kind: input, shape index: {}]   ;;  %s8069_s1 = inlined_call_operand.hbm [shape: f32[8,8,16], index: 1, kind: input, shape index: {}]   ;;  %s8070_s2 = inlined_call_operand.vmem [shape: f32[2,8,32], index: 2, kind: input, shape index: {}]   ;;  %s8071_s3 = inlined_call_operand.hbm [shape: f32[2,8,32], index: 3, kind: input, shape index: {}]   ;;  %s8072_s4 = inlined_call_operand.vmem [shape: f32[8,10], index: 4, kind: input, shape index: {}]   ;;  %s8073_s5 = inlined_call_operand.vmem [shape: s32[8,2], index: 5, kind: input, shape index: {}]   ;;  %s8074_s6 = inlined_call_operand.vmem [shape: f32[8,256], index: 6, kind: output, shape index: {}]  }
   0x1   :  { %12 = vsyncpa [#allocation6], 0  ;;  %s6592_s21 = smov [#allocation5]   ;;  %s6593_s23 = smov [#allocation3]  }
   0x2   :  { %s30_s22 = sshll.u32 %s6592_s21, 4  ;;  %s18_s24 = sshll.u32 %s6593_s23, 4  ;;  %s31_s22 = int_to_ptr.vmem [resolvable:$true] %s30_s22  ;;  %s6640_s24 = int_to_ptr.vmem [resolvable:$true] %s18_s24 }
   0x3   :  { %s6522_s27 = scalar_lea.hbm %s8069_s1, 1024 }
   0x4   :  { %p6523_p0 = scmp.ne.s32.totalorder %s8069_s1, %s6522_s27  ;;  %p6526_p1 = scmp.lt.u32.totalorder %s6522_s27, %s8069_s1 }
   0x6   :  { %p6528_p2 = pnand %p6526_p1, %p6523_p0 }
   0x8   :  { %6531 = shalt.err (!%p6528_p2)
}
   0x9   :  { %s6532_s8 = scalar_lea.vmem %s31_s22, 1024  ;;  %p6537_p4 = scmp.lt.s32.totalorder %s31_s22, %s31_s22 }
   0xa   :  { %p6533_p3 = scmp.ne.s32.totalorder %s31_s22, %s6532_s8  ;;  %p6538_p5 = scmp.lt.s32.totalorder %s6532_s8, %s6532_s8 }
   0xc   :  { %p6539_p6 = por %p6538_p5, %p6537_p4 }
   0xe   :  { %p6540_p7 = pnand %p6539_p6, %p6533_p3 }
  0x10   :  { %6543 = shalt.err (!%p6540_p7)
}
  0x11   :  { %s6594_s9 = smov 128   ;;  %s6595_s10 = smov 8  }
  0x12   :  { %36 = dma.hbm_to_vmem [thread:$0]  %s8069_s1, 1024, %s31_s22, [#allocation6], %s6594_s9, %s6594_s9, %s6595_s10  }
  0x13   :  { %s6544_s15 = scalar_lea.hbm %s8068_s0, 4096 }
  0x14   :  { %p6545_p8 = scmp.ne.s32.totalorder %s8068_s0, %s6544_s15  ;;  %p6548_p9 = scmp.lt.u32.totalorder %s6544_s15, %s8068_s0 }
  0x16   :  { %p6550_p10 = pnand %p6548_p9, %p6545_p8 }
  0x18   :  { %6553 = shalt.err (!%p6550_p10)
}
  0x19   :  { %s6554_s20 = scalar_lea.vmem %s6640_s24, 4096  ;;  %p6559_p12 = scmp.lt.s32.totalorder %s6640_s24, %s6640_s24 }
  0x1a   :  { %p6555_p11 = scmp.ne.s32.totalorder %s6640_s24, %s6554_s20  ;;  %p6560_p13 = scmp.lt.s32.totalorder %s6554_s20, %s6554_s20 }
  0x1c   :  { %p6561_p0 = por %p6560_p13, %p6559_p12 }
  0x1e   :  { %p6562_p1 = pnand %p6561_p0, %p6555_p11 }
  0x20   :  { %6565 = shalt.err (!%p6562_p1)
}
  0x21   :  { %24 = dma.hbm_to_vmem [thread:$0]  %s8068_s0, 4096, %s6640_s24, [#allocation4], %s6594_s9, %s6594_s9, %s6595_s10  }
  0x22   :  { %s6596_s22 = smov [#allocation7]   ;;  %s6566_s27 = scalar_lea.hbm %s8071_s3, 256 }
  0x23   :  { %s44_s23 = sshll.u32 %s6596_s22, 4  ;;  %p6567_p2 = scmp.ne.s32.totalorder %s8071_s3, %s6566_s27  ;;  %s45_s23 = int_to_ptr.vmem [resolvable:$true] %s44_s23 }
  0x24   :  { %p6570_p3 = scmp.lt.u32.totalorder %s6566_s27, %s8071_s3 }
  0x26   :  { %p6572_p4 = pnand %p6570_p3, %p6567_p2 }
  0x28   :  { %6575 = shalt.err (!%p6572_p4)
}
  0x29   :  { %s6576_s8 = scalar_lea.vmem %s45_s23, 256  ;;  %p6581_p6 = scmp.lt.s32.totalorder %s45_s23, %s45_s23 }
  0x2a   :  { %p6577_p5 = scmp.ne.s32.totalorder %s45_s23, %s6576_s8  ;;  %p6582_p7 = scmp.lt.s32.totalorder %s6576_s8, %s6576_s8 }
  0x2c   :  { %p6583_p8 = por %p6582_p7, %p6581_p6 }
  0x2e   :  { %p6584_p9 = pnand %p6583_p8, %p6577_p5 }
  0x30   :  { %6587 = shalt.err (!%p6584_p9)
}
  0x31   :  { %50 = dma.hbm_to_vmem [thread:$0]  %s8071_s3, 256, %s45_s23, [#allocation6], %s6594_s9, %s6594_s9, %s6595_s10  }
  0x32   :  { %6588 = dma.done.wait [#allocation4], 4096  }
  0x33   :  { %6589 = vsyncadd [#allocation4], 4294963200 }
  0x34   :  { %6590 = dma.done.wait [#allocation6], 1280  }
  0x35   :  { %6591 = vsyncadd [#allocation6], 4294966016  ;;  %vm92_vm0 = vcmask 130048   ;;  %v85_v0 = vld [vmem:[#allocation3] sm:$0xff]  ;;  %v86_v1 = vld [vmem:[#allocation3 + $0x8] sm:$0xff]  ;;  %v6597_v10 = vmov 0.0|0.0  }
  0x36   :  { %v81_v2 = vld [vmem:[#allocation5 + $0x20] sm:$0xff]  ;;  %v5710_v3 = vpack.c.bf16 %v86_v1, %v85_v0  ;;  %v64_v4 = vld [vmem:[#allocation3 + $0x10] sm:$0xff]  ;;  %v65_v5 = vld [vmem:[#allocation3 + $0x18] sm:$0xff]  ;;  %vm6598_vm1 = vmmov 0   ;;  %v6599_v18 = vmov 0.0   ;;  %vm228_vm2 = vcmask 261120  }
  0x37   :  { %5388 = vmatprep.mubr.msk.f32.mxu1 %vm92_vm0, %v81_v2  ;;  %v77_v6 = vld [vmem:[#allocation5] sm:$0xff]  ;;  %v82_v7 = vld [vmem:[#allocation5 + $0x28] sm:$0xff]  ;;  %v6693_v8 = vpack.c.bf16 %v65_v5, %v64_v4  ;;  %v83_v11 = vld [vmem:[#allocation5 + $0x30] sm:$0xff]  ;;  %s6600_s10 = smov 64   ;;  %s6601_s11 = smov 32   ;;  %vm559_vm3 = vcmask 1041409  }
  0x38   :  { %5883 = vmatprep.subr.bf16.mxu1 %v5710_v3  ;;  %5711 = vmatprep.subr.bf16.mxu0 %v5710_v3  ;;  %v78_v9 = vld [vmem:[#allocation5 + $0x8] sm:$0xff]  ;;  %v66_v12 = vld [vmem:[#allocation3 + $0x20] sm:$0xff]  ;;  %v79_v14 = vld [vmem:[#allocation5 + $0x10] sm:$0xff]  ;;  %vm562_vm4 = vcmask 1042434   ;;  %vm565_vm5 = vcmask 1043459   ;;  %vm568_vm6 = vcmask 1044484  }
  0x39   :  { %5884 = vmatpush3.bf16.msra.mxu1 %v5710_v3  ;;  %5713 = vmatpush3.bf16.msra.mxu0 %v5710_v3  ;;  %v67_v13 = vld [vmem:[#allocation3 + $0x28] sm:$0xff]  ;;  %v84_v15 = vld [vmem:[#allocation5 + $0x38] sm:$0xff]  ;;  %v222_v19 = vld [vmem:[%s8070_s2] sm:$0xff]  ;;  %vm571_vm7 = vcmask 1045509   ;;  %vm574_vm8 = vcmask 1046534   ;;  %vm577_vm9 = vcmask 1047559  }
  0x3a   :  { %5714 = vmatprep.subr.bf16.mxu1 %v6597_v10  ;;  %5382 = vmatprep.mubr.msk.f32.mxu0 %vm92_vm0, %v77_v6  ;;  %v6702_v16 = vpack.c.bf16 %v67_v13, %v66_v12  ;;  %v80_v17 = vld [vmem:[#allocation5 + $0x18] sm:$0xff]  ;;  %v5105_v26 = vld [vmem:[#allocation3 + $0x70] ss:$0 sm:$0xff]  ;;  %v223_v57 = vld [vmem:[#allocation7] sm:$0xff]  ;;  %vm4393_vm13 = vcmask 7168   ;;  %vm4777_vm14 = vcmask 1041408  }
  0x3b   :  { %5726 = vmatprep.subr.bf16.mxu0 %v6597_v10  ;;  %v384_v60 = vrot.slane %v223_v57, 2  ;;  %v385_v62 = vrot.slane %v223_v57, 3  ;;  %v386_v0 = vrot.slane %v223_v57, 4  ;;  %v383_v2 = vrot.slane %v223_v57, 1 }
  0x3c   :  { %5389 = vmatmul.mubr.msk.f32.vlgmr.msra.gmra.mrb[0].mxu1 %vm92_vm0, %v82_v7  ;;  %5383 = vmatmul.mubr.msk.f32.vlgmr.msra.gmra.mrb[0].mxu0 %vm92_vm0, %v78_v9  ;;  %v387_v3 = vrot.slane %v223_v57, 5  ;;  %v388_v4 = vrot.slane %v223_v57, 6  ;;  %v389_v5 = vrot.slane %v223_v57, 7  ;;  %vm6604_vm15 = vmmov 1  }
  0x3d   :  { %5716 = vmatpush3.bf16.msra.mxu1 %v6693_v8  ;;  %5391 = vmatprep.mubr.msk.f32.mxu1 %vm92_vm0, %v83_v11 }
  0x3e   :  { %5717 = vmatprep.subr.bf16.mxu1 %v6597_v10  ;;  %5385 = vmatprep.mubr.msk.f32.mxu0 %vm92_vm0, %v79_v14 }
  0x40   :  { %5392 = vmatmul.mubr.msk.f32.gmra.mrb[2].mxu1 %vm92_vm0, %v84_v15  ;;  %5386 = vmatmul.mubr.msk.f32.gmra.mrb[2].mxu0 %vm92_vm0, %v80_v17 }
  0x41   :  { %5719 = vmatpush3.bf16.msra.mxu1 %v6702_v16  ;;  %5402 = vmatprep.mubr.msk.f32.mxu1 %vm6598_vm1, %v6599_v18 }
  0x42   :  { %5720 = vmatprep.subr.bf16.mxu1 %v6597_v10  ;;  %5424 = vmatprep.mubr.msk.f32.mxu0 %vm6598_vm1, %v6599_v18 }
  0x44   :  { %5403 = vmatmul.mubr.msk.f32.vlgmr.msra.gmra.mrb[4].mxu1 %vm228_vm2, %v222_v19 }
  0x45   :  { %5722 = vmatpush3.bf16.msra.mxu1 %v6693_v8  ;;  %5413 = vmatprep.mubr.msk.f32.mxu1 %vm6598_vm1, %v6599_v18 }
  0x46   :  { %5723 = vmatprep.subr.bf16.mxu1 %v6597_v10 }
  0x49   :  { %5725 = vmatpush3.bf16.msra.mxu1 %v6702_v16 }
  0x4a   :  { %5738 = vmatprep.subr.bf16.mxu1 %v6597_v10 }
 0x10f   :  { %v5390_v20 = vpop.f32.mrb[0].mxu1  ;;  %v5384_v21 = vpop.f32.mrb[0].mxu0 }
 0x110   :  { %v203_v22 = vpop.f32.mrb[1].mxu1  ;;  %v183_v23 = vpop.f32.mrb[1].mxu0  ;;  %v6730_v37 = vadd.f32 %v5390_v20, %v5105_v26  ;;  %v6737_v42 = vadd.f32 %v5384_v21, %v5105_v26 }
 0x111   :  { %v6724_v29 = vadd.f32 %v5105_v26, %v183_v23  ;;  %v6749_v51 = vadd.f32 %v5105_v26, %v203_v22 }
 0x113   :  { %v5393_v24 = vpop.f32.mrb[2].mxu1  ;;  %v5387_v25 = vpop.f32.mrb[2].mxu0 }
 0x114   :  { %v213_v27 = vpop.f32.mrb[3].mxu1  ;;  %v193_v28 = vpop.f32.mrb[3].mxu0  ;;  %v6726_v30 = vadd.f32 %v5387_v25, %v5105_v26  ;;  %v6735_v41 = vadd.f32 %v5393_v24, %v5105_v26 }
 0x115   :  { %v6743_v45 = vadd.f32 %v5105_v26, %v193_v28  ;;  %v6753_v55 = vadd.f32 %v5105_v26, %v213_v27 }
 0x117   :  { %v298_v31 = vpop.f32.mrb[4].mxu1 }
 0x118   :  { %v305_v32 = vrot.slane %v298_v31, 3  ;;  %v5404_v33 = vpop.f32.mrb[5].mxu1  ;;  %v318_v34 = vadd.f32 %v298_v31, %v6724_v29  ;;  %v307_v35 = vrot.slane %v298_v31, 5  ;;  %v309_v38 = vrot.slane %v298_v31, 7 }
 0x119   :  { %v303_v40 = vrot.slane %v298_v31, 1  ;;  %v304_v44 = vrot.slane %v298_v31, 2  ;;  %v306_v48 = vrot.slane %v298_v31, 4  ;;  %v308_v52 = vrot.slane %v298_v31, 6 }
 0x11a   :  { %v321_v36 = vadd.f32 %v305_v32, %v6726_v30  ;;  %5926 = vtanh.f32 %v318_v34  ;;  %v6733_v39 = vadd.f32 %v307_v35, %v6730_v37  ;;  %v6740_v43 = vadd.f32 %v309_v38, %v6735_v41 }
 0x11b   :  { %v319_v46 = vadd.f32 %v303_v40, %v6737_v42  ;;  %v320_v49 = vadd.f32 %v304_v44, %v6743_v45  ;;  %v322_v53 = vadd.f32 %v306_v48, %v6749_v51  ;;  %v324_v56 = vadd.f32 %v308_v52, %v6753_v55 }
 0x11c   :  { %5928 = vtanh.f32 %v321_v36  ;;  %v5116_v6 = vmul.f32 -1.442695, %v318_v34  ;;  %v5119_v7 = vmul.f32 -1.442695, %v321_v36  ;;  %v5121_v19 = vmul.f32 -1.442695, %v6733_v39 }
 0x11d   :  { %5930 = vtanh.f32 %v6733_v39  ;;  %v5117_v9 = vmul.f32 -1.442695, %v319_v46  ;;  %v5118_v12 = vmul.f32 -1.442695, %v320_v49  ;;  %v5120_v15 = vmul.f32 -1.442695, %v322_v53 }
 0x11e   :  { %5932 = vtanh.f32 %v6740_v43  ;;  %v5122_v20 = vmul.f32 -1.442695, %v324_v56  ;;  %v5123_v22 = vmul.f32 -1.442695, %v6740_v43 }
 0x11f   :  { %5934 = vtanh.f32 %v319_v46 }
 0x120   :  { %5936 = vtanh.f32 %v320_v49 }
 0x121   :  { %5938 = vtanh.f32 %v322_v53 }
 0x122   :  { %5940 = vtanh.f32 %v324_v56 }
 0x123   :  { %5942 = vpow2.f32 %v5116_v6 }
 0x124   :  { %v5927_v47 = vpop.eup %5926  ;;  %5944 = vpow2.f32 %v5119_v7 }
 0x125   :  { %430 = vrot.lane.b32.xlu1 %v5927_v47, %s6600_s10  ;;  %5946 = vpow2.f32 %v5117_v9 }
 0x126   :  { %v5929_v50 = vpop.eup %5928  ;;  %5948 = vpow2.f32 %v5118_v12 }
 0x127   :  { %v5931_v54 = vpop.eup %5930 }
 0x128   :  { %v5933_v58 = vpop.eup %5932 }
 0x129   :  { %436 = vrot.lane.b32.xlu1 %v5929_v50, %s6600_s10  ;;  %v5935_v59 = vpop.eup %5934 }
 0x12a   :  { %432 = vrot.lane.b32.xlu0 %v5935_v59, %s6600_s10  ;;  %v5937_v61 = vpop.eup %5936 }
 0x12b   :  { %v5939_v63 = vpop.eup %5938 }
 0x12c   :  { %v5941_v1 = vpop.eup %5940 }
 0x12d   :  { %440 = vrot.lane.b32.xlu1 %v5931_v54, %s6600_s10  ;;  %v5943_v11 = vpop.eup %5942 }
 0x12e   :  { %434 = vrot.lane.b32.xlu0 %v5937_v61, %s6600_s10  ;;  %v350_v13 = vadd.f32 1.0, %v5943_v11  ;;  %v5945_v14 = vpop.eup %5944 }
 0x12f   :  { %v353_v17 = vadd.f32 1.0, %v5945_v14  ;;  %v5947_v21 = vpop.eup %5946 }
 0x130   :  { %5950 = vrcp.f32 %v350_v13  ;;  %v351_v23 = vadd.f32 1.0, %v5947_v21  ;;  %v5949_v24 = vpop.eup %5948 }
 0x131   :  { %444 = vrot.lane.b32.xlu1 %v5933_v58, %s6600_s10  ;;  %5952 = vpow2.f32 %v5120_v15  ;;  %v352_v28 = vadd.f32 1.0, %v5949_v24 }
 0x132   :  { %438 = vrot.lane.b32.xlu0 %v5939_v63, %s6600_s10  ;;  %5954 = vrcp.f32 %v353_v17 }
 0x133   :  { %5956 = vpow2.f32 %v5121_v19 }
 0x134   :  { %5958 = vpow2.f32 %v5122_v20 }
 0x135   :  { %394 = vrot.lane.b32.xlu1 %v384_v60, %s6601_s11  ;;  %5960 = vpow2.f32 %v5123_v22 }
 0x136   :  { %442 = vrot.lane.b32.xlu0 %v5941_v1, %s6600_s10  ;;  %5962 = vrcp.f32 %v351_v23 }
 0x137   :  { %5964 = vrcp.f32 %v352_v28 }
 0x139   :  { %396 = vrot.lane.b32.xlu1 %v385_v62, %s6601_s11 }
 0x13a   :  { %392 = vrot.lane.b32.xlu0 %v383_v2, %s6601_s11  ;;  %v6772_v25 = vpop.eup %5950 }
 0x13b   :  { %v5953_v31 = vpop.eup %5952 }
 0x13c   :  { %v6776_v32 = vpop.eup %5954  ;;  %v354_v36 = vadd.f32 1.0, %v5953_v31 }
 0x13d   :  { %398 = vrot.lane.b32.xlu1 %v386_v0, %s6601_s11  ;;  %v5957_v35 = vpop.eup %5956 }
 0x13e   :  { %390 = vrot.lane.b32.xlu0 %v223_v57, %s6601_s11  ;;  %v5959_v38 = vpop.eup %5958  ;;  %v355_v39 = vadd.f32 1.0, %v5957_v35  ;;  %5966 = vrcp.f32 %v354_v36 }
 0x13f   :  { %v356_v40 = vadd.f32 1.0, %v5959_v38  ;;  %v5961_v43 = vpop.eup %5960 }
 0x140   :  { %v6780_v44 = vpop.eup %5962  ;;  %5968 = vrcp.f32 %v355_v39  ;;  %v357_v48 = vadd.f32 1.0, %v5961_v43 }
 0x141   :  { %400 = vrot.lane.b32.xlu1 %v387_v3, %s6601_s11  ;;  %5970 = vrcp.f32 %v356_v40  ;;  %v6784_v49 = vpop.eup %5964 }
 0x142   :  { %402 = vrot.lane.b32.xlu0 %v388_v4, %s6601_s11  ;;  %5972 = vrcp.f32 %v357_v48 }
 0x146   :  { %404 = vrot.lane.b32.xlu0 %v389_v5, %s6601_s11 }
 0x148   :  { %v6788_v53 = vpop.eup %5966 }
 0x14a   :  { %v6791_v58 = vpop.eup %5968 }
 0x14b   :  { %v6794_v59 = vpop.eup %5970 }
 0x14c   :  { %v6800_v0 = vpop.eup %5972 }
 0x197   :  { %v431_v26 = vpop.permute.xlu1 %430 }
 0x198   :  { %v454_v27 = vmul.f32 %v6772_v25, %v431_v26 }
 0x19a   :  { %470 = vrot.lane.b32.xlu0 %v454_v27, %s6601_s11 }
 0x19b   :  { %v437_v33 = vpop.permute.xlu1 %436 }
 0x19c   :  { %v457_v34 = vmul.f32 %v6776_v32, %v437_v33  ;;  %v433_v46 = vpop.permute.xlu0 %432 }
 0x19d   :  { %v455_v47 = vmul.f32 %v6780_v44, %v433_v46 }
 0x19e   :  { %476 = vrot.lane.b32.xlu1 %v457_v34, %s6601_s11 }
 0x19f   :  { %472 = vrot.lane.b32.xlu0 %v455_v47, %s6601_s11  ;;  %v441_v54 = vpop.permute.xlu1 %440 }
 0x1a0   :  { %v435_v50 = vpop.permute.xlu0 %434  ;;  %v459_v61 = vmul.f32 %v6791_v58, %v441_v54 }
 0x1a1   :  { %v456_v52 = vmul.f32 %v6784_v49, %v435_v50 }
 0x1a3   :  { %474 = vrot.lane.b32.xlu0 %v456_v52, %s6601_s11  ;;  %v445_v63 = vpop.permute.xlu1 %444 }
 0x1a4   :  { %v439_v56 = vpop.permute.xlu0 %438  ;;  %v461_v1 = vmul.f32 %v6800_v0, %v445_v63 }
 0x1a5   :  { %v458_v57 = vmul.f32 %v6788_v53, %v439_v56  ;;  %v68_v56 = vld [vmem:[#allocation3 + $0x30] sm:$0xff] }
 0x1a7   :  { %478 = vrot.lane.b32.xlu1 %v458_v57, %s6601_s11  ;;  %v395_v5 = vpop.permute.xlu1 %394  ;;  %v69_v57 = vld [vmem:[#allocation3 + $0x38] sm:$0xff] }
 0x1a8   :  { %v443_v60 = vpop.permute.xlu0 %442  ;;  %v416_v21 = vmul.f32 %v6784_v49, %v395_v5 }
 0x1a9   :  { %v460_v62 = vmul.f32 %v6794_v59, %v443_v60  ;;  %v70_v60 = vld [vmem:[#allocation3 + $0x40] sm:$0xff] }
 0x1ab   :  { %480 = vrot.lane.b32.xlu1 %v459_v61, %s6601_s11  ;;  %482 = vrot.lane.b32.xlu0 %v460_v62, %s6601_s11  ;;  %v397_v7 = vpop.permute.xlu1 %396  ;;  %v6841_v61 = vpack.c.bf16 %v69_v57, %v68_v56  ;;  %v71_v62 = vld [vmem:[#allocation3 + $0x48] sm:$0xff] }
 0x1ac   :  { %v393_v2 = vpop.permute.xlu0 %392  ;;  %v417_v23 = vmul.f32 %v6776_v32, %v397_v7  ;;  %v75_v56 = vld [vmem:[#allocation3 + $0x68] sm:$0xff] }
 0x1ad   :  { %v415_v14 = vmul.f32 %v6780_v44, %v393_v2  ;;  %5728 = vmatpush3.bf16.msra.mxu0 %v6841_v61 }
 0x1ae   :  { %5729 = vmatprep.subr.bf16.mxu0 %v6597_v10 }
 0x1af   :  { %484 = vrot.lane.b32.xlu1 %v461_v1, %s6601_s11  ;;  %v399_v13 = vpop.permute.xlu1 %398  ;;  %v6844_v1 = vpack.c.bf16 %v71_v62, %v70_v60  ;;  %v5114_v60 = vld [vmem:[%s8070_s2 + $0x8] sm:$0xff] }
 0x1b0   :  { %v391_v3 = vpop.permute.xlu0 %390  ;;  %v418_v28 = vmul.f32 %v6788_v53, %v399_v13 }
 0x1b1   :  { %v414_v9 = vmul.f32 %v6772_v25, %v391_v3  ;;  %5731 = vmatpush3.bf16.msra.mxu0 %v6844_v1 }
 0x1b2   :  { %5732 = vmatprep.subr.bf16.mxu0 %v6597_v10 }
 0x1b3   :  { %v401_v15 = vpop.permute.xlu1 %400 }
 0x1b4   :  { %v403_v4 = vpop.permute.xlu0 %402  ;;  %v419_v35 = vmul.f32 %v6791_v58, %v401_v15 }
 0x1b5   :  { %v420_v34 = vmul.f32 %v6794_v59, %v403_v4 }
 0x1b8   :  { %v405_v6 = vpop.permute.xlu0 %404 }
 0x1b9   :  { %v421_v46 = vmul.f32 %v6800_v0, %v405_v6 }
 0x20c   :  { %v471_v11 = vpop.permute.xlu0 %470 }
 0x20d   :  { %v6805_v12 = vadd.f32 %v471_v11, %v414_v9 }
 0x20f   :  { %5974 = vtanh.f32 %v6805_v12 }
 0x210   :  { %v477_v22 = vpop.permute.xlu1 %476 }
 0x211   :  { %v473_v17 = vpop.permute.xlu0 %472  ;;  %v6817_v27 = vadd.f32 %v477_v22, %v417_v23 }
 0x212   :  { %v6809_v20 = vadd.f32 %v473_v17, %v415_v14 }
 0x214   :  { %5976 = vtanh.f32 %v6809_v20 }
 0x215   :  { %v475_v24 = vpop.permute.xlu0 %474 }
 0x216   :  { %v6815_v26 = vadd.f32 %v475_v24, %v416_v21 }
 0x218   :  { %5978 = vtanh.f32 %v6815_v26 }
 0x219   :  { %v5975_v19 = vpop.eup %5974  ;;  %v479_v31 = vpop.permute.xlu1 %478  ;;  %5980 = vtanh.f32 %v6817_v27 }
 0x21a   :  { %518 = vrot.lane.b32.xlu0 %v5975_v19, %s6600_s10  ;;  %v6821_v33 = vadd.f32 %v479_v31, %v418_v28 }
 0x21c   :  { %5982 = vtanh.f32 %v6821_v33 }
 0x21d   :  { %v481_v36 = vpop.permute.xlu1 %480  ;;  %v483_v38 = vpop.permute.xlu0 %482 }
 0x21e   :  { %v5977_v39 = vpop.eup %5976  ;;  %v6827_v40 = vadd.f32 %v481_v36, %v419_v35  ;;  %v6829_v43 = vadd.f32 %v483_v38, %v420_v34 }
 0x21f   :  { %520 = vrot.lane.b32.xlu0 %v5977_v39, %s6600_s10 }
 0x220   :  { %5984 = vtanh.f32 %v6827_v40 }
 0x221   :  { %5986 = vtanh.f32 %v6829_v43  ;;  %v485_v47 = vpop.permute.xlu1 %484 }
 0x222   :  { %v5979_v48 = vpop.eup %5978  ;;  %v6835_v50 = vadd.f32 %v485_v47, %v421_v46 }
 0x223   :  { %522 = vrot.lane.b32.xlu1 %v5979_v48, %s6600_s10  ;;  %v5981_v52 = vpop.eup %5980  ;;  %v73_v48 = vld [vmem:[#allocation3 + $0x58] sm:$0xff] }
 0x224   :  { %5988 = vtanh.f32 %v6835_v50 }
 0x226   :  { %v5983_v54 = vpop.eup %5982 }
 0x227   :  { %526 = vrot.lane.b32.xlu0 %v5983_v54, %s6600_s10  ;;  %524 = vrot.lane.b32.xlu1 %v5981_v52, %s6600_s10  ;;  %v74_v54 = vld [vmem:[#allocation3 + $0x60] sm:$0xff] }
 0x22a   :  { %v5985_v63 = vpop.eup %5984 }
 0x22b   :  { %v5987_v2 = vpop.eup %5986  ;;  %528 = vrot.lane.b32.xlu1 %v5985_v63, %s6600_s10 }
 0x22c   :  { %530 = vrot.lane.b32.xlu0 %v5987_v2, %s6600_s10 }
 0x22e   :  { %v5989_v3 = vpop.eup %5988 }
 0x22f   :  { %532 = vrot.lane.b32.xlu1 %v5989_v3, %s6600_s10 }
 0x28c   :  { %v519_v4 = vpop.permute.xlu0 %518 }
 0x28d   :  { %v542_v17 = vmul.f32 %v6772_v25, %v519_v4 }
 0x291   :  { %v521_v5 = vpop.permute.xlu0 %520 }
 0x292   :  { %v543_v6 = vmul.f32 %v6780_v44, %v521_v5 }
 0x294   :  { %v558_v11 = vrot.slane %v543_v6, 7 }
 0x295   :  { %v523_v7 = vpop.permute.xlu1 %522 }
 0x296   :  { %v544_v9 = vmul.f32 %v6784_v49, %v523_v7  ;;  %v560_v22 = vsel %vm559_vm3, %v558_v11, %v542_v17 }
 0x298   :  { %v561_v13 = vrot.slane %v544_v9, 6 }
 0x299   :  { %v527_v14 = vpop.permute.xlu0 %526  ;;  %v525_v15 = vpop.permute.xlu1 %524 }
 0x29a   :  { %v545_v19 = vmul.f32 %v6776_v32, %v525_v15  ;;  %v546_v21 = vmul.f32 %v6788_v53, %v527_v14  ;;  %v563_v44 = vsel %vm562_vm4, %v561_v13, %v560_v22 }
 0x29c   :  { %v564_v23 = vrot.slane %v545_v19, 5  ;;  %v567_v34 = vrot.slane %v546_v21, 4 }
 0x29d   :  { %v529_v24 = vpop.permute.xlu1 %528 }
 0x29e   :  { %v566_v49 = vsel %vm565_vm5, %v564_v23, %v563_v44  ;;  %v531_v28 = vpop.permute.xlu0 %530  ;;  %v547_v31 = vmul.f32 %v6791_v58, %v529_v24 }
 0x29f   :  { %v548_v25 = vmul.f32 %v6794_v59, %v531_v28  ;;  %v569_v53 = vsel %vm568_vm6, %v567_v34, %v566_v49  ;;  %v72_v59 = vld [vmem:[#allocation3 + $0x50] sm:$0xff] }
 0x2a0   :  { %v570_v32 = vrot.slane %v547_v31, 3  ;;  %v6868_v52 = vpack.c.bf16 %v73_v48, %v72_v59 }
 0x2a1   :  { %v533_v35 = vpop.permute.xlu1 %532  ;;  %v573_v39 = vrot.slane %v548_v25, 2 }
 0x2a2   :  { %v549_v36 = vmul.f32 %v6800_v0, %v533_v35  ;;  %v572_v38 = vsel %vm571_vm7, %v570_v32, %v569_v53  ;;  %v6873_v0 = vpack.c.bf16 %v75_v56, %v74_v54 }
 0x2a3   :  { %v575_v47 = vsel %vm574_vm8, %v573_v39, %v572_v38 }
 0x2a4   :  { %v576_v46 = vrot.slane %v549_v36, 1 }
 0x2a6   :  { %v578_v58 = vsel %vm577_vm9, %v576_v46, %v575_v47 }
 0x2a7   :  { %579 = vrot.lane.b32.xlu0 %v578_v58, %s6601_s11 }
 0x319   :  { %v580_v57 = vpop.permute.xlu0 %579 }
 0x31a   :  { %5414 = vmatmul.mubr.msk.f32.vlgmr.msra.gmra.mrb[6].mxu1 %vm228_vm2, %v580_v57  ;;  %5425 = vmatmul.mubr.msk.f32.vlgmr.msra.gmra.mrb[4].mxu0 %vm228_vm2, %v580_v57 }
 0x31b   :  { %5734 = vmatpush3.bf16.msra.mxu0 %v6868_v52  ;;  %5435 = vmatprep.mubr.msk.f32.mxu0 %vm6598_vm1, %v6599_v18 }
 0x31c   :  { %5735 = vmatprep.subr.bf16.mxu0 %v6597_v10  ;;  %5740 = vmatpush3.bf16.msra.mxu1 %v6693_v8 }
 0x31d   :  { %5741 = vmatprep.subr.bf16.mxu1 %v6597_v10  ;;  %5446 = vmatprep.mubr.msk.f32.mxu1 %vm6598_vm1, %v6599_v18 }
 0x31f   :  { %5737 = vmatpush3.bf16.msra.mxu0 %v6873_v0 }
 0x320   :  { %5743 = vmatpush3.bf16.msra.mxu1 %v6702_v16  ;;  %5756 = vmatprep.subr.bf16.mxu0 %v6597_v10 }
 0x321   :  { %5744 = vmatprep.subr.bf16.mxu1 %v6597_v10 }
 0x322   :  { %5436 = vmatmul.mubr.msk.f32.vlgmr.msra.gmra.mrb[4].mxu0 %vm228_vm2, %v5114_v60 }
 0x323   :  { %5758 = vmatpush3.bf16.msra.mxu0 %v6693_v8  ;;  %5479 = vmatprep.mubr.msk.f32.mxu0 %vm6598_vm1, %v6599_v18 }
 0x324   :  { %5759 = vmatprep.subr.bf16.mxu0 %v6597_v10 }
 0x327   :  { %5761 = vmatpush3.bf16.msra.mxu0 %v6702_v16 }
 0x328   :  { %5762 = vmatprep.subr.bf16.mxu0 %v6597_v10 }
 0x3ed   :  { %v649_v62 = vpop.f32.mrb[6].mxu1 }
 0x3ee   :  { %v5415_v63 = vpop.f32.mrb[7].mxu1  ;;  %v655_v2 = vrot.slane %v649_v62, 1  ;;  %v654_v5 = vrot.slane %v649_v62, 7  ;;  %v670_v6 = vadd.f32 %v649_v62, %v6737_v42  ;;  %v656_v7 = vrot.slane %v649_v62, 2 }
 0x3ef   :  { %v657_v11 = vrot.slane %v649_v62, 3  ;;  %v658_v14 = vrot.slane %v649_v62, 4  ;;  %v659_v17 = vrot.slane %v649_v62, 5  ;;  %v660_v21 = vrot.slane %v649_v62, 6 }
 0x3f0   :  { %v671_v9 = vadd.f32 %v655_v2, %v6743_v45  ;;  %v669_v13 = vadd.f32 %v654_v5, %v6724_v29  ;;  %5990 = vtanh.f32 %v670_v6  ;;  %v672_v15 = vadd.f32 %v656_v7, %v6726_v30 }
 0x3f1   :  { %v673_v19 = vadd.f32 %v657_v11, %v6749_v51  ;;  %v674_v22 = vadd.f32 %v658_v14, %v6730_v37  ;;  %v675_v23 = vadd.f32 %v659_v17, %v6753_v55  ;;  %v676_v44 = vadd.f32 %v660_v21, %v6735_v41  ;;  %v6918_v21 = vld [vmem:[#allocation3 + $0x71] ss:$0 sm:$0xff] }
 0x3f2   :  { %5992 = vtanh.f32 %v671_v9  ;;  %v5129_v53 = vmul.f32 -1.442695, %v670_v6  ;;  %v5130_v36 = vmul.f32 -1.442695, %v671_v9  ;;  %v5128_v38 = vmul.f32 -1.442695, %v669_v13 }
 0x3f3   :  { %5994 = vtanh.f32 %v669_v13  ;;  %v5131_v39 = vmul.f32 -1.442695, %v672_v15  ;;  %v5132_v46 = vmul.f32 -1.442695, %v673_v19  ;;  %v5133_v47 = vmul.f32 -1.442695, %v674_v22 }
 0x3f4   :  { %5996 = vtanh.f32 %v672_v15  ;;  %v5134_v58 = vmul.f32 -1.442695, %v675_v23  ;;  %v5135_v59 = vmul.f32 -1.442695, %v676_v44 }
 0x3f5   :  { %v6896_v3 = vpop.f32.mrb[4].mxu0  ;;  %5998 = vtanh.f32 %v673_v19 }
 0x3f6   :  { %v5437_v4 = vpop.f32.mrb[5].mxu0  ;;  %6000 = vtanh.f32 %v674_v22 }
 0x3f7   :  { %6002 = vtanh.f32 %v675_v23 }
 0x3f8   :  { %6004 = vtanh.f32 %v676_v44 }
 0x3f9   :  { %6006 = vpow2.f32 %v5129_v53 }
 0x3fa   :  { %v5991_v24 = vpop.eup %5990  ;;  %6008 = vpow2.f32 %v5130_v36 }
 0x3fb   :  { %924 = vrot.lane.b32.xlu1 %v5991_v24, %s6600_s10  ;;  %6010 = vpow2.f32 %v5128_v38 }
 0x3fc   :  { %v5993_v49 = vpop.eup %5992  ;;  %6012 = vpow2.f32 %v5131_v39 }
 0x3fd   :  { %926 = vrot.lane.b32.xlu0 %v5993_v49, %s6600_s10  ;;  %v5995_v28 = vpop.eup %5994  ;;  %6014 = vpow2.f32 %v5132_v46  ;;  %v5885_v49 = vadd.f32 %v6918_v21, %v6896_v3 }
 0x3fe   :  { %v5997_v31 = vpop.eup %5996  ;;  %6016 = vpow2.f32 %v5133_v47 }
 0x3ff   :  { %922 = vrot.lane.b32.xlu1 %v5995_v28, %s6600_s10  ;;  %v5999_v34 = vpop.eup %5998  ;;  %6018 = vpow2.f32 %v5134_v58 }
 0x400   :  { %v6001_v25 = vpop.eup %6000  ;;  %6020 = vpow2.f32 %v5135_v59 }
 0x401   :  { %928 = vrot.lane.b32.xlu0 %v5997_v31, %s6600_s10  ;;  %v6003_v32 = vpop.eup %6002 }
 0x402   :  { %v6005_v35 = vpop.eup %6004 }
 0x403   :  { %930 = vrot.lane.b32.xlu1 %v5999_v34, %s6600_s10  ;;  %v6007_v48 = vpop.eup %6006 }
 0x404   :  { %v6009_v54 = vpop.eup %6008  ;;  %v851_v56 = vadd.f32 1.0, %v6007_v48 }
 0x405   :  { %932 = vrot.lane.b32.xlu0 %v6001_v25, %s6600_s10  ;;  %v6011_v57 = vpop.eup %6010  ;;  %v852_v60 = vadd.f32 1.0, %v6009_v54 }
 0x406   :  { %v6013_v62 = vpop.eup %6012  ;;  %6022 = vrcp.f32 %v851_v56  ;;  %v850_v63 = vadd.f32 1.0, %v6011_v57  ;;  %v891_v57 = vrot.slane %v6809_v20, 7 }
 0x407   :  { %934 = vrot.lane.b32.xlu1 %v6003_v32, %s6600_s10  ;;  %v6015_v2 = vpop.eup %6014  ;;  %6024 = vrcp.f32 %v852_v60  ;;  %v853_v4 = vadd.f32 1.0, %v6013_v62  ;;  %v5136_v60 = vmul.f32 -1.442695, %v5885_v49  ;;  %v892_v62 = vrot.slane %v6815_v26, 7 }
 0x408   :  { %v6017_v5 = vpop.eup %6016  ;;  %6026 = vrcp.f32 %v850_v63  ;;  %v854_v6 = vadd.f32 1.0, %v6015_v2 }
 0x409   :  { %936 = vrot.lane.b32.xlu0 %v6005_v35, %s6600_s10  ;;  %v6019_v7 = vpop.eup %6018  ;;  %6028 = vrcp.f32 %v853_v4  ;;  %v855_v9 = vadd.f32 1.0, %v6017_v5  ;;  %v890_v5 = vrot.slane %v6805_v12, 7 }
 0x40a   :  { %v6021_v11 = vpop.eup %6020  ;;  %6030 = vrcp.f32 %v854_v6  ;;  %v856_v13 = vadd.f32 1.0, %v6019_v7 }
 0x40b   :  { %6032 = vrcp.f32 %v855_v9  ;;  %v857_v14 = vadd.f32 1.0, %v6021_v11  ;;  %v893_v9 = vrot.slane %v6817_v27, 7 }
 0x40c   :  { %6034 = vrcp.f32 %v856_v13 }
 0x40d   :  { %6036 = vrcp.f32 %v857_v14  ;;  %v894_v14 = vrot.slane %v6821_v33, 7 }
 0x40e   :  { %6038 = vtanh.f32 %v5885_v49 }
 0x40f   :  { %6040 = vpow2.f32 %v5136_v60 }
 0x410   :  { %v6914_v15 = vpop.eup %6022 }
 0x411   :  { %v6916_v19 = vpop.eup %6024  ;;  %v907_v63 = vmul.f32 %v6914_v15, %v891_v57 }
 0x412   :  { %v6923_v24 = vpop.eup %6026  ;;  %v908_v4 = vmul.f32 %v6916_v19, %v892_v62 }
 0x413   :  { %v6928_v31 = vpop.eup %6028  ;;  %v906_v20 = vmul.f32 %v6923_v24, %v890_v5 }
 0x414   :  { %v6933_v35 = vpop.eup %6030  ;;  %v909_v13 = vmul.f32 %v6928_v31, %v893_v9 }
 0x415   :  { %v6936_v36 = vpop.eup %6032  ;;  %v910_v27 = vmul.f32 %v6933_v35, %v894_v14 }
 0x416   :  { %v6941_v46 = vpop.eup %6034 }
 0x417   :  { %v6944_v58 = vpop.eup %6036 }
 0x418   :  { %v6039_v56 = vpop.eup %6038 }
 0x46d   :  { %v925_v17 = vpop.permute.xlu1 %924 }
 0x46e   :  { %v947_v22 = vmul.f32 %v6914_v15, %v925_v17 }
 0x46f   :  { %v927_v23 = vpop.permute.xlu0 %926 }
 0x470   :  { %v948_v44 = vmul.f32 %v6916_v19, %v927_v23  ;;  %964 = vrot.lane.b32.xlu1 %v947_v22, %s6601_s11  ;;  %v895_v22 = vrot.slane %v6827_v40, 7  ;;  %v6041_v40 = vpop.eup %6040 }
 0x471   :  { %v923_v28 = vpop.permute.xlu1 %922 }
 0x472   :  { %966 = vrot.lane.b32.xlu0 %v948_v44, %s6601_s11  ;;  %v946_v34 = vmul.f32 %v6923_v24, %v923_v28  ;;  %v911_v49 = vmul.f32 %v6936_v36, %v895_v22  ;;  %v896_v28 = vrot.slane %v6829_v43, 7 }
 0x473   :  { %v929_v25 = vpop.permute.xlu0 %928 }
 0x474   :  { %v949_v32 = vmul.f32 %v6928_v31, %v929_v25  ;;  %962 = vrot.lane.b32.xlu1 %v946_v34, %s6601_s11  ;;  %v897_v25 = vrot.slane %v6835_v50, 7 }
 0x475   :  { %v931_v53 = vpop.permute.xlu1 %930 }
 0x476   :  { %968 = vrot.lane.b32.xlu0 %v949_v32, %s6601_s11  ;;  %v950_v3 = vmul.f32 %v6933_v35, %v931_v53  ;;  %v912_v53 = vmul.f32 %v6941_v46, %v896_v28 }
 0x477   :  { %v933_v38 = vpop.permute.xlu0 %932 }
 0x478   :  { %v951_v39 = vmul.f32 %v6936_v36, %v933_v38  ;;  %970 = vrot.lane.b32.xlu1 %v950_v3, %s6601_s11  ;;  %v913_v38 = vmul.f32 %v6944_v58, %v897_v25 }
 0x479   :  { %v935_v47 = vpop.permute.xlu1 %934 }
 0x47a   :  { %972 = vrot.lane.b32.xlu0 %v951_v39, %s6601_s11  ;;  %v952_v59 = vmul.f32 %v6941_v46, %v935_v47 }
 0x47b   :  { %v937_v48 = vpop.permute.xlu0 %936 }
 0x47c   :  { %v953_v54 = vmul.f32 %v6944_v58, %v937_v48  ;;  %974 = vrot.lane.b32.xlu1 %v952_v59, %s6601_s11  ;;  %v1045_v48 = vadd.f32 1.0, %v6041_v40 }
 0x47e   :  { %976 = vrot.lane.b32.xlu0 %v953_v54, %s6601_s11 }
 0x480   :  { %1055 = vrot.lane.b32.xlu1 %v6039_v56, %s6600_s10 }
 0x4e2   :  { %v965_v2 = vpop.permute.xlu1 %964 }
 0x4e3   :  { %v6956_v6 = vadd.f32 %v965_v2, %v907_v63 }
 0x4e4   :  { %v967_v7 = vpop.permute.xlu0 %966 }
 0x4e5   :  { %v6959_v11 = vadd.f32 %v967_v7, %v908_v4  ;;  %6042 = vtanh.f32 %v6956_v6  ;;  %v227_v4 = vld [vmem:[#allocation7 + $0x8] sm:$0xff] }
 0x4e6   :  { %v963_v26 = vpop.permute.xlu1 %962 }
 0x4e7   :  { %6044 = vtanh.f32 %v6959_v11  ;;  %v6966_v12 = vadd.f32 %v963_v26, %v906_v20 }
 0x4e8   :  { %v969_v17 = vpop.permute.xlu0 %968 }
 0x4e9   :  { %v6969_v23 = vadd.f32 %v969_v17, %v909_v13  ;;  %6046 = vtanh.f32 %v6966_v12 }
 0x4ea   :  { %v971_v44 = vpop.permute.xlu1 %970 }
 0x4eb   :  { %6048 = vtanh.f32 %v6969_v23  ;;  %v6976_v34 = vadd.f32 %v971_v44, %v910_v27 }
 0x4ec   :  { %v973_v33 = vpop.permute.xlu0 %972 }
 0x4ed   :  { %v6979_v32 = vadd.f32 %v973_v33, %v911_v49  ;;  %6050 = vtanh.f32 %v6976_v34 }
 0x4ee   :  { %v975_v3 = vpop.permute.xlu1 %974 }
 0x4ef   :  { %6052 = vtanh.f32 %v6979_v32  ;;  %v6043_v39 = vpop.eup %6042  ;;  %v6985_v47 = vadd.f32 %v975_v3, %v912_v53 }
 0x4f0   :  { %v977_v43 = vpop.permute.xlu0 %976  ;;  %1012 = vrot.lane.b32.xlu0 %v6043_v39, %s6600_s10 }
 0x4f1   :  { %v6045_v59 = vpop.eup %6044  ;;  %v6987_v54 = vadd.f32 %v977_v43, %v913_v38  ;;  %6054 = vtanh.f32 %v6985_v47 }
 0x4f2   :  { %1014 = vrot.lane.b32.xlu1 %v6045_v59, %s6600_s10  ;;  %v1056_v2 = vpop.permute.xlu1 %1055 }
 0x4f3   :  { %6056 = vtanh.f32 %v6987_v54  ;;  %v6047_v50 = vpop.eup %6046 }
 0x4f4   :  { %6058 = vrcp.f32 %v1045_v48  ;;  %1010 = vrot.lane.b32.xlu0 %v6047_v50, %s6600_s10 }
 0x4f5   :  { %v6049_v56 = vpop.eup %6048 }
 0x4f6   :  { %1016 = vrot.lane.b32.xlu1 %v6049_v56, %s6600_s10 }
 0x4f7   :  { %v6051_v57 = vpop.eup %6050 }
 0x4f8   :  { %1018 = vrot.lane.b32.xlu0 %v6051_v57, %s6600_s10 }
 0x4f9   :  { %v6053_v60 = vpop.eup %6052 }
 0x4fa   :  { %1020 = vrot.lane.b32.xlu1 %v6053_v60, %s6600_s10 }
 0x4fb   :  { %v6055_v62 = vpop.eup %6054 }
 0x4fc   :  { %1022 = vrot.lane.b32.xlu0 %v6055_v62, %s6600_s10 }
 0x4fd   :  { %v6057_v63 = vpop.eup %6056 }
 0x4fe   :  { %1024 = vrot.lane.b32.xlu1 %v6057_v63, %s6600_s10  ;;  %v6059_v5 = vpop.eup %6058 }
 0x4ff   :  { %v1058_v7 = vmul.f32 %v6059_v5, %v1056_v2 }
 0x500   :  { %1050 = vrot.lane.b32.xlu0 %v227_v4, %s6601_s11 }
 0x502   :  { %1060 = vrot.lane.b32.xlu1 %v1058_v7, %s6601_s11 }
 0x562   :  { %v1013_v9 = vpop.permute.xlu0 %1012 }
 0x563   :  { %v1035_v27 = vmul.f32 %v6914_v15, %v1013_v9 }
 0x564   :  { %v1015_v20 = vpop.permute.xlu1 %1014 }
 0x565   :  { %v1036_v26 = vmul.f32 %v6916_v19, %v1015_v20 }
 0x566   :  { %v1011_v13 = vpop.permute.xlu0 %1010 }
 0x567   :  { %v1034_v14 = vmul.f32 %v6923_v24, %v1011_v13  ;;  %v1085_v49 = vrot.slane %v1036_v26, 7 }
 0x568   :  { %v1017_v17 = vpop.permute.xlu1 %1016 }
 0x569   :  { %v1037_v22 = vmul.f32 %v6928_v31, %v1017_v17  ;;  %v1083_v44 = vrot.slane %v1034_v14, 1 }
 0x56a   :  { %v1019_v33 = vpop.permute.xlu0 %1018 }
 0x56b   :  { %v1087_v28 = vrot.slane %v1037_v22, 6  ;;  %v1084_v25 = vsel %vm559_vm3, %v1035_v27, %v1083_v44  ;;  %v1038_v40 = vmul.f32 %v6933_v35, %v1019_v33 }
 0x56c   :  { %v1021_v53 = vpop.permute.xlu1 %1020  ;;  %v1086_v3 = vsel %vm562_vm4, %v1085_v49, %v1084_v25 }
 0x56d   :  { %v1039_v19 = vmul.f32 %v6936_v36, %v1021_v53  ;;  %v1088_v24 = vsel %vm565_vm5, %v1087_v28, %v1086_v3  ;;  %v1089_v38 = vrot.slane %v1038_v40, 5 }
 0x56e   :  { %v1023_v31 = vpop.permute.xlu0 %1022 }
 0x56f   :  { %v1091_v39 = vrot.slane %v1039_v19, 4  ;;  %v1090_v15 = vsel %vm568_vm6, %v1089_v38, %v1088_v24  ;;  %v1040_v43 = vmul.f32 %v6941_v46, %v1023_v31 }
 0x570   :  { %v1025_v59 = vpop.permute.xlu1 %1024 }
 0x571   :  { %v1041_v48 = vmul.f32 %v6944_v58, %v1025_v59  ;;  %v1092_v50 = vsel %vm571_vm7, %v1091_v39, %v1090_v15  ;;  %v1093_v35 = vrot.slane %v1040_v43, 3 }
 0x572   :  { %v1051_v57 = vpop.permute.xlu0 %1050 }
 0x573   :  { %v1095_v56 = vrot.slane %v1041_v48, 2  ;;  %v1053_v60 = vmul.f32 %v6059_v5, %v1051_v57  ;;  %v1094_v36 = vsel %vm574_vm8, %v1093_v35, %v1092_v50 }
 0x574   :  { %v1061_v62 = vpop.permute.xlu1 %1060 }
 0x575   :  { %v1096_v63 = vsel %vm577_vm9, %v1095_v56, %v1094_v36  ;;  %v7016_v2 = vadd.f32 %v1061_v62, %v1053_v60 }
 0x576   :  { %1097 = vrot.lane.b32.xlu0 %v1096_v63, %s6601_s11 }
 0x577   :  { %6060 = vtanh.f32 %v7016_v2 }
 0x581   :  { %v6061_v46 = vpop.eup %6060 }
 0x582   :  { %1066 = vrot.lane.b32.xlu1 %v6061_v46, %s6600_s10 }
 0x5e8   :  { %v1098_v58 = vpop.permute.xlu0 %1097 }
 0x5e9   :  { %5447 = vmatmul.mubr.msk.f32.vlgmr.msra.gmra.mrb[8].mxu1 %vm228_vm2, %v1098_v58 }
 0x5ea   :  { %5746 = vmatpush3.bf16.msra.mxu1 %v6841_v61  ;;  %5457 = vmatprep.mubr.msk.f32.mxu1 %vm6598_vm1, %v6599_v18 }
 0x5eb   :  { %5747 = vmatprep.subr.bf16.mxu1 %v6597_v10 }
 0x5ee   :  { %5749 = vmatpush3.bf16.msra.mxu1 %v6844_v1 }
 0x5ef   :  { %5750 = vmatprep.subr.bf16.mxu1 %v6597_v10 }
 0x5f1   :  { %5458 = vmatmul.mubr.msk.f32.vlgmr.msra.gmra.mrb[10].mxu1 %vm228_vm2, %v1098_v58 }
 0x5f2   :  { %5752 = vmatpush3.bf16.msra.mxu1 %v6868_v52  ;;  %5468 = vmatprep.mubr.msk.f32.mxu1 %vm6598_vm1, %v6599_v18 }
 0x5f3   :  { %5753 = vmatprep.subr.bf16.mxu1 %v6597_v10 }
 0x5f4   :  { %v1067_v4 = vpop.permute.xlu1 %1066 }
 0x5f5   :  { %v1069_v7 = vmul.f32 %v6059_v5, %v1067_v4 }
 0x5f6   :  { %5755 = vmatpush3.bf16.msra.mxu1 %v6873_v0 }
 0x5f7   :  { %5774 = vmatprep.subr.bf16.mxu1 %v6597_v10  ;;  %1071 = vrot.lane.b32.xlu0 %v1069_v7, %s6601_s11 }
 0x669   :  { %v1072_v9 = vpop.permute.xlu0 %1071 }
 0x66a   :  { %1074 = vst.msk [vmem:[#allocation2] sm:$0xff] %vm228_vm2, %v1072_v9  ;;  %5469 = vmatmul.mubr.msk.f32.vlgmr.msra.gmra.mrb[10].mxu1 %vm228_vm2, %v1072_v9 }
 0x66b   :  { %5776 = vmatpush3.bf16.msra.mxu1 %v6693_v8  ;;  %5512 = vmatprep.mubr.msk.f32.mxu1 %vm6598_vm1, %v6599_v18 }
 0x66c   :  { %5777 = vmatprep.subr.bf16.mxu1 %v6597_v10 }
 0x66f   :  { %5779 = vmatpush3.bf16.msra.mxu1 %v6702_v16 }
 0x670   :  { %5780 = vmatprep.subr.bf16.mxu1 %v6597_v10 }
 0x6bc   :  { %v1167_v5 = vpop.f32.mrb[8].mxu1 }
 0x6bd   :  { %v1172_v20 = vrot.slane %v1167_v5, 6  ;;  %v5448_v26 = vpop.f32.mrb[9].mxu1  ;;  %v1174_v14 = vrot.slane %v1167_v5, 1  ;;  %v1173_v17 = vrot.slane %v1167_v5, 7  ;;  %v1189_v22 = vadd.f32 %v1167_v5, %v6743_v45 }
 0x6be   :  { %v1175_v27 = vrot.slane %v1167_v5, 2  ;;  %v1176_v28 = vrot.slane %v1167_v5, 3  ;;  %v1177_v25 = vrot.slane %v1167_v5, 4  ;;  %v1178_v53 = vrot.slane %v1167_v5, 5 }
 0x6bf   :  { %v1187_v13 = vadd.f32 %v1172_v20, %v6724_v29  ;;  %v1190_v44 = vadd.f32 %v1174_v14, %v6726_v30  ;;  %v1188_v33 = vadd.f32 %v1173_v17, %v6737_v42  ;;  %v5142_v35 = vmul.f32 -1.442695, %v1189_v22 }
 0x6c0   :  { %v1191_v40 = vadd.f32 %v1175_v27, %v6749_v51  ;;  %v1192_v3 = vadd.f32 %v1176_v28, %v6730_v37  ;;  %v1193_v19 = vadd.f32 %v1177_v25, %v6753_v55  ;;  %v1194_v24 = vadd.f32 %v1178_v53, %v6735_v41 }
 0x6c1   :  { %6062 = vtanh.f32 %v1187_v13  ;;  %v5140_v50 = vmul.f32 -1.442695, %v1187_v13  ;;  %v5143_v56 = vmul.f32 -1.442695, %v1190_v44  ;;  %v5141_v60 = vmul.f32 -1.442695, %v1188_v33 }
 0x6c2   :  { %6064 = vtanh.f32 %v1189_v22  ;;  %v5144_v62 = vmul.f32 -1.442695, %v1191_v40  ;;  %v5145_v63 = vmul.f32 -1.442695, %v1192_v3  ;;  %v5146_v46 = vmul.f32 -1.442695, %v1193_v19 }
 0x6c3   :  { %6066 = vtanh.f32 %v1190_v44  ;;  %v5147_v58 = vmul.f32 -1.442695, %v1194_v24 }
 0x6c4   :  { %6068 = vtanh.f32 %v1188_v33 }
 0x6c5   :  { %6070 = vtanh.f32 %v1191_v40 }
 0x6c6   :  { %6072 = vtanh.f32 %v1192_v3 }
 0x6c7   :  { %6074 = vtanh.f32 %v1193_v19 }
 0x6c8   :  { %6076 = vtanh.f32 %v1194_v24 }
 0x6c9   :  { %6078 = vpow2.f32 %v5140_v50 }
 0x6ca   :  { %6080 = vpow2.f32 %v5142_v35 }
 0x6cb   :  { %v6063_v49 = vpop.eup %6062  ;;  %6082 = vpow2.f32 %v5143_v56 }
 0x6cc   :  { %1435 = vrot.lane.b32.xlu1 %v6063_v49, %s6600_s10  ;;  %v6065_v38 = vpop.eup %6064  ;;  %6084 = vpow2.f32 %v5141_v60 }
 0x6cd   :  { %v6067_v39 = vpop.eup %6066  ;;  %1439 = vrot.lane.b32.xlu0 %v6065_v38, %s6600_s10  ;;  %6086 = vpow2.f32 %v5144_v62 }
 0x6ce   :  { %v6069_v31 = vpop.eup %6068 }
 0x6cf   :  { %v6071_v15 = vpop.eup %6070 }
 0x6d0   :  { %1441 = vrot.lane.b32.xlu1 %v6067_v39, %s6600_s10  ;;  %v6073_v43 = vpop.eup %6072 }
 0x6d1   :  { %1437 = vrot.lane.b32.xlu0 %v6069_v31, %s6600_s10  ;;  %v6075_v59 = vpop.eup %6074 }
 0x6d2   :  { %v6077_v48 = vpop.eup %6076 }
 0x6d3   :  { %v6079_v57 = vpop.eup %6078 }
 0x6d4   :  { %1443 = vrot.lane.b32.xlu1 %v6071_v15, %s6600_s10  ;;  %v1363_v36 = vadd.f32 1.0, %v6079_v57  ;;  %v6081_v4 = vpop.eup %6080 }
 0x6d5   :  { %1445 = vrot.lane.b32.xlu0 %v6073_v43, %s6600_s10  ;;  %v6083_v7 = vpop.eup %6082  ;;  %v1365_v9 = vadd.f32 1.0, %v6081_v4 }
 0x6d6   :  { %6088 = vrcp.f32 %v1363_v36  ;;  %v6085_v5 = vpop.eup %6084  ;;  %v1366_v20 = vadd.f32 1.0, %v6083_v7 }
 0x6d7   :  { %6090 = vpow2.f32 %v5145_v63  ;;  %v6087_v26 = vpop.eup %6086  ;;  %v1364_v22 = vadd.f32 1.0, %v6085_v5 }
 0x6d8   :  { %1447 = vrot.lane.b32.xlu1 %v6075_v59, %s6600_s10  ;;  %6092 = vpow2.f32 %v5146_v46  ;;  %v1367_v28 = vadd.f32 1.0, %v6087_v26 }
 0x6d9   :  { %1449 = vrot.lane.b32.xlu0 %v6077_v48, %s6600_s10  ;;  %6094 = vpow2.f32 %v5147_v58 }
 0x6da   :  { %6096 = vrcp.f32 %v1365_v9 }
 0x6db   :  { %6098 = vrcp.f32 %v1366_v20 }
 0x6dc   :  { %6100 = vrcp.f32 %v1364_v22 }
 0x6dd   :  { %6102 = vrcp.f32 %v1367_v28  ;;  %v1406_v28 = vrot.slane %v6969_v23, 7 }
 0x6e0   :  { %v7060_v13 = vpop.eup %6088 }
 0x6e1   :  { %v6091_v27 = vpop.eup %6090 }
 0x6e2   :  { %v6093_v33 = vpop.eup %6092  ;;  %v1368_v25 = vadd.f32 1.0, %v6091_v27  ;;  %v1404_v27 = vrot.slane %v6956_v6, 7 }
 0x6e3   :  { %v6095_v40 = vpop.eup %6094  ;;  %v1369_v53 = vadd.f32 1.0, %v6093_v33 }
 0x6e4   :  { %6104 = vrcp.f32 %v1368_v25  ;;  %v1370_v3 = vadd.f32 1.0, %v6095_v40  ;;  %v7064_v19 = vpop.eup %6096 }
 0x6e5   :  { %6106 = vrcp.f32 %v1369_v53  ;;  %v7066_v38 = vpop.eup %6098  ;;  %v1403_v53 = vrot.slane %v6966_v12, 7 }
 0x6e6   :  { %6108 = vrcp.f32 %v1370_v3  ;;  %v7072_v59 = vpop.eup %6100 }
 0x6e7   :  { %v7075_v50 = vpop.eup %6102  ;;  %v1420_v25 = vmul.f32 %v7072_v59, %v1404_v27 }
 0x6ee   :  { %v7080_v60 = vpop.eup %6104 }
 0x6ef   :  { %v7083_v36 = vpop.eup %6106 }
 0x6f0   :  { %v7088_v4 = vpop.eup %6108 }
 0x73d   :  { %v1334_v14 = vpop.f32.mrb[10].mxu1 }
 0x73e   :  { %v1436_v17 = vpop.permute.xlu1 %1435  ;;  %v5470_v49 = vpop.f32.mrb[11].mxu1  ;;  %v5886_v31 = vadd.f32 %v6918_v21, %v1334_v14 }
 0x73f   :  { %v1459_v44 = vmul.f32 %v7060_v13, %v1436_v17  ;;  %v1440_v24 = vpop.permute.xlu0 %1439 }
 0x740   :  { %v1461_v39 = vmul.f32 %v7064_v19, %v1440_v24  ;;  %6110 = vtanh.f32 %v5886_v31  ;;  %v5148_v20 = vmul.f32 -1.442695, %v5886_v31  ;;  %v1419_v31 = vmul.f32 %v7060_v13, %v1403_v53 }
 0x741   :  { %1475 = vrot.lane.b32.xlu1 %v1459_v44, %s6601_s11  ;;  %v1405_v44 = vrot.slane %v6959_v11, 7  ;;  %v1407_v11 = vrot.slane %v6976_v34, 7 }
 0x742   :  { %v1442_v15 = vpop.permute.xlu1 %1441  ;;  %1479 = vrot.lane.b32.xlu0 %v1461_v39, %s6601_s11  ;;  %6112 = vpow2.f32 %v5148_v20  ;;  %v1422_v39 = vmul.f32 %v7066_v38, %v1406_v28 }
 0x743   :  { %v1462_v43 = vmul.f32 %v7066_v38, %v1442_v15  ;;  %v1438_v48 = vpop.permute.xlu0 %1437  ;;  %v1421_v33 = vmul.f32 %v7064_v19, %v1405_v44 }
 0x744   :  { %v1460_v35 = vmul.f32 %v7072_v59, %v1438_v48  ;;  %v1423_v48 = vmul.f32 %v7075_v50, %v1407_v11 }
 0x745   :  { %1481 = vrot.lane.b32.xlu1 %v1462_v43, %s6601_s11  ;;  %v1408_v43 = vrot.slane %v6979_v32, 7 }
 0x746   :  { %v1444_v56 = vpop.permute.xlu1 %1443  ;;  %1477 = vrot.lane.b32.xlu0 %v1460_v35, %s6601_s11 }
 0x747   :  { %v1463_v57 = vmul.f32 %v7075_v50, %v1444_v56  ;;  %v1446_v62 = vpop.permute.xlu0 %1445  ;;  %v1409_v56 = vrot.slane %v6985_v47, 7  ;;  %v1424_v34 = vmul.f32 %v7080_v60, %v1408_v43 }
 0x748   :  { %v1464_v63 = vmul.f32 %v7080_v60, %v1446_v62 }
 0x749   :  { %1483 = vrot.lane.b32.xlu1 %v1463_v57, %s6601_s11 }
 0x74a   :  { %v1448_v46 = vpop.permute.xlu1 %1447  ;;  %1485 = vrot.lane.b32.xlu0 %v1464_v63, %s6601_s11  ;;  %v6111_v5 = vpop.eup %6110  ;;  %v1410_v63 = vrot.slane %v6987_v54, 7 }
 0x74b   :  { %v1465_v58 = vmul.f32 %v7083_v36, %v1448_v46  ;;  %v1450_v7 = vpop.permute.xlu0 %1449  ;;  %v1425_v46 = vmul.f32 %v7083_v36, %v1409_v56 }
 0x74c   :  { %v1466_v9 = vmul.f32 %v7088_v4, %v1450_v7  ;;  %v6113_v14 = vpop.eup %6112 }
 0x74d   :  { %1487 = vrot.lane.b32.xlu1 %v1465_v58, %s6601_s11  ;;  %v1558_v17 = vadd.f32 1.0, %v6113_v14 }
 0x74e   :  { %1489 = vrot.lane.b32.xlu0 %v1466_v9, %s6601_s11  ;;  %v1426_v9 = vmul.f32 %v7088_v4, %v1410_v63 }
 0x74f   :  { %6114 = vrcp.f32 %v1558_v17 }
 0x751   :  { %1564 = vrot.lane.b32.xlu1 %v6111_v5, %s6600_s10 }
 0x759   :  { %v7120_v62 = vpop.eup %6114 }
 0x75a   :  { %v1562_v28 = vmul.f32 %v7120_v62, %v7016_v2 }
 0x7b3   :  { %v1476_v26 = vpop.permute.xlu1 %1475 }
 0x7b4   :  { %v1480_v22 = vpop.permute.xlu0 %1479  ;;  %v7112_v12 = vadd.f32 %v1476_v26, %v1419_v31 }
 0x7b5   :  { %v7100_v3 = vadd.f32 %v1480_v22, %v1421_v33 }
 0x7b7   :  { %v1482_v49 = vpop.permute.xlu1 %1481 }
 0x7b8   :  { %v1478_v40 = vpop.permute.xlu0 %1477  ;;  %v7108_v23 = vadd.f32 %v1482_v49, %v1422_v39 }
 0x7b9   :  { %v7102_v24 = vadd.f32 %v1478_v40, %v1420_v25 }
 0x7bb   :  { %v1484_v6 = vpop.permute.xlu1 %1483  ;;  %6116 = vtanh.f32 %v7102_v24 }
 0x7bc   :  { %v1486_v15 = vpop.permute.xlu0 %1485  ;;  %6118 = vtanh.f32 %v7100_v3  ;;  %v7118_v57 = vadd.f32 %v1484_v6, %v1423_v48 }
 0x7bd   :  { %6120 = vtanh.f32 %v7108_v23  ;;  %v7124_v32 = vadd.f32 %v1486_v15, %v1424_v34 }
 0x7be   :  { %6122 = vtanh.f32 %v7112_v12 }
 0x7bf   :  { %v1488_v35 = vpop.permute.xlu1 %1487  ;;  %6124 = vtanh.f32 %v7118_v57 }
 0x7c0   :  { %v1490_v7 = vpop.permute.xlu0 %1489  ;;  %v7130_v5 = vadd.f32 %v1488_v35, %v1425_v46  ;;  %6126 = vtanh.f32 %v7124_v32 }
 0x7c1   :  { %v7134_v54 = vadd.f32 %v1490_v7, %v1426_v9 }
 0x7c2   :  { %6128 = vtanh.f32 %v7130_v5 }
 0x7c3   :  { %v1565_v58 = vpop.permute.xlu1 %1564  ;;  %6130 = vtanh.f32 %v7134_v54 }
 0x7c4   :  { %v1567_v47 = vmul.f32 %v7120_v62, %v1565_v58 }
 0x7c5   :  { %v6117_v20 = vpop.eup %6116 }
 0x7c6   :  { %1569 = vrot.lane.b32.xlu0 %v1567_v47, %s6601_s11  ;;  %1525 = vrot.lane.b32.xlu1 %v6117_v20, %s6600_s10  ;;  %v6119_v26 = vpop.eup %6118 }
 0x7c7   :  { %v6121_v14 = vpop.eup %6120 }
 0x7c8   :  { %v6123_v17 = vpop.eup %6122 }
 0x7c9   :  { %v6125_v22 = vpop.eup %6124 }
 0x7ca   :  { %1527 = vrot.lane.b32.xlu0 %v6119_v26, %s6600_s10  ;;  %1529 = vrot.lane.b32.xlu1 %v6121_v14, %s6600_s10  ;;  %v6127_v27 = vpop.eup %6126 }
 0x7cc   :  { %v6129_v44 = vpop.eup %6128 }
 0x7cd   :  { %v6131_v49 = vpop.eup %6130 }
 0x7ce   :  { %1523 = vrot.lane.b32.xlu0 %v6123_v17, %s6600_s10  ;;  %1531 = vrot.lane.b32.xlu1 %v6125_v22, %s6600_s10 }
 0x7d2   :  { %1533 = vrot.lane.b32.xlu0 %v6127_v27, %s6600_s10  ;;  %1535 = vrot.lane.b32.xlu1 %v6129_v44, %s6600_s10 }
 0x7d6   :  { %1537 = vrot.lane.b32.xlu0 %v6131_v49, %s6600_s10 }
 0x838   :  { %v1570_v33 = vpop.permute.xlu0 %1569  ;;  %v1526_v40 = vpop.permute.xlu1 %1525 }
 0x839   :  { %v7148_v25 = vadd.f32 %v1570_v33, %v1562_v28  ;;  %v1548_v6 = vmul.f32 %v7072_v59, %v1526_v40 }
 0x83b   :  { %6132 = vtanh.f32 %v7148_v25  ;;  %v1594_v48 = vrot.slane %v1548_v6, 1 }
 0x83c   :  { %v1528_v53 = vpop.permute.xlu0 %1527  ;;  %v1530_v39 = vpop.permute.xlu1 %1529 }
 0x83d   :  { %v1550_v31 = vmul.f32 %v7066_v38, %v1530_v39  ;;  %v1549_v56 = vmul.f32 %v7064_v19, %v1528_v53 }
 0x83f   :  { %v1597_v46 = vrot.slane %v1550_v31, 7 }
 0x840   :  { %v1524_v11 = vpop.permute.xlu0 %1523  ;;  %v1532_v43 = vpop.permute.xlu1 %1531 }
 0x841   :  { %v1547_v15 = vmul.f32 %v7060_v13, %v1524_v11  ;;  %v1551_v35 = vmul.f32 %v7075_v50, %v1532_v43 }
 0x843   :  { %v1593_v2 = vrot.slane %v1547_v15, 2  ;;  %v1599_v59 = vrot.slane %v1551_v35, 6 }
 0x844   :  { %v1534_v34 = vpop.permute.xlu0 %1533  ;;  %v1536_v38 = vpop.permute.xlu1 %1535 }
 0x845   :  { %v6133_v63 = vpop.eup %6132  ;;  %v1595_v58 = vsel %vm559_vm3, %v1594_v48, %v1593_v2  ;;  %v1552_v7 = vmul.f32 %v7080_v60, %v1534_v34  ;;  %v1553_v13 = vmul.f32 %v7083_v36, %v1536_v38 }
 0x846   :  { %v1596_v47 = vsel %vm562_vm4, %v1549_v56, %v1595_v58  ;;  %1575 = vrot.lane.b32.xlu0 %v6133_v63, %s6600_s10 }
 0x847   :  { %v1601_v9 = vrot.slane %v1552_v7, 5  ;;  %v1598_v50 = vsel %vm565_vm5, %v1597_v46, %v1596_v47  ;;  %v1603_v17 = vrot.slane %v1553_v13, 4 }
 0x848   :  { %v1538_v20 = vpop.permute.xlu0 %1537  ;;  %v1600_v19 = vsel %vm568_vm6, %v1599_v59, %v1598_v50 }
 0x849   :  { %v1554_v26 = vmul.f32 %v7088_v4, %v1538_v20  ;;  %v1602_v14 = vsel %vm571_vm7, %v1601_v9, %v1600_v19 }
 0x84a   :  { %v1604_v22 = vsel %vm574_vm8, %v1603_v17, %v1602_v14 }
 0x84b   :  { %v1605_v60 = vrot.slane %v1554_v26, 3 }
 0x84d   :  { %v1606_v27 = vsel %vm577_vm9, %v1605_v60, %v1604_v22 }
 0x84e   :  { %1607 = vrot.lane.b32.xlu1 %v1606_v27, %s6601_s11 }
 0x8b8   :  { %v1576_v44 = vpop.permute.xlu0 %1575 }
 0x8b9   :  { %v1578_v36 = vmul.f32 %v7120_v62, %v1576_v44 }
 0x8bb   :  { %1580 = vrot.lane.b32.xlu1 %v1578_v36, %s6601_s11 }
 0x8c0   :  { %v1608_v49 = vpop.permute.xlu1 %1607 }
 0x8c1   :  { %5480 = vmatmul.mubr.msk.f32.vlgmr.msra.gmra.mrb[6].mxu0 %vm228_vm2, %v1608_v49 }
 0x8c2   :  { %5764 = vmatpush3.bf16.msra.mxu0 %v6841_v61  ;;  %5490 = vmatprep.mubr.msk.f32.mxu0 %vm6598_vm1, %v6599_v18 }
 0x8c3   :  { %5765 = vmatprep.subr.bf16.mxu0 %v6597_v10 }
 0x8c6   :  { %5767 = vmatpush3.bf16.msra.mxu0 %v6844_v1 }
 0x8c7   :  { %5768 = vmatprep.subr.bf16.mxu0 %v6597_v10 }
 0x8c9   :  { %5491 = vmatmul.mubr.msk.f32.vlgmr.msra.gmra.mrb[8].mxu0 %vm228_vm2, %v1608_v49 }
 0x8ca   :  { %5770 = vmatpush3.bf16.msra.mxu0 %v6868_v52  ;;  %5501 = vmatprep.mubr.msk.f32.mxu0 %vm6598_vm1, %v6599_v18 }
 0x8cb   :  { %5771 = vmatprep.subr.bf16.mxu0 %v6597_v10 }
 0x8ce   :  { %5773 = vmatpush3.bf16.msra.mxu0 %v6873_v0 }
 0x8cf   :  { %5792 = vmatprep.subr.bf16.mxu0 %v6597_v10 }
 0x92d   :  { %v1581_v4 = vpop.permute.xlu1 %1580 }
 0x92e   :  { %1584 = vst.msk [vmem:[#allocation2 + $0x8] sm:$0xff] %vm228_vm2, %v1581_v4  ;;  %5502 = vmatmul.mubr.msk.f32.vlgmr.msra.gmra.mrb[8].mxu0 %vm228_vm2, %v1581_v4 }
 0x92f   :  { %5794 = vmatpush3.bf16.msra.mxu0 %v6693_v8  ;;  %5545 = vmatprep.mubr.msk.f32.mxu0 %vm6598_vm1, %v6599_v18 }
 0x930   :  { %5795 = vmatprep.subr.bf16.mxu0 %v6597_v10 }
 0x933   :  { %5797 = vmatpush3.bf16.msra.mxu0 %v6702_v16 }
 0x934   :  { %5798 = vmatprep.subr.bf16.mxu0 %v6597_v10 }
 0x994   :  { %v1677_v62 = vpop.f32.mrb[6].mxu0 }
 0x995   :  { %v5481_v28 = vpop.f32.mrb[7].mxu0  ;;  %v1683_v33 = vrot.slane %v1677_v62, 6  ;;  %v1685_v40 = vrot.slane %v1677_v62, 1  ;;  %v1682_v39 = vrot.slane %v1677_v62, 5  ;;  %v1700_v6 = vadd.f32 %v1677_v62, %v6726_v30 }
 0x996   :  { %v1686_v11 = vrot.slane %v1677_v62, 2  ;;  %v1684_v15 = vrot.slane %v1677_v62, 7  ;;  %v1688_v48 = vrot.slane %v1677_v62, 4  ;;  %v1687_v2 = vrot.slane %v1677_v62, 3 }
 0x997   :  { %v1698_v53 = vadd.f32 %v1683_v33, %v6737_v42  ;;  %v1701_v31 = vadd.f32 %v1685_v40, %v6749_v51  ;;  %v1697_v43 = vadd.f32 %v1682_v39, %v6724_v29  ;;  %v5155_v14 = vmul.f32 -1.442695, %v1700_v6 }
 0x998   :  { %v1702_v35 = vadd.f32 %v1686_v11, %v6730_v37  ;;  %v1699_v56 = vadd.f32 %v1684_v15, %v6743_v45  ;;  %v1704_v34 = vadd.f32 %v1688_v48, %v6735_v41  ;;  %v1703_v46 = vadd.f32 %v1687_v2, %v6753_v55 }
 0x999   :  { %6134 = vtanh.f32 %v1698_v53  ;;  %v5153_v50 = vmul.f32 -1.442695, %v1698_v53  ;;  %v5152_v17 = vmul.f32 -1.442695, %v1697_v43  ;;  %v5156_v27 = vmul.f32 -1.442695, %v1701_v31 }
 0x99a   :  { %6136 = vtanh.f32 %v1700_v6  ;;  %v5154_v60 = vmul.f32 -1.442695, %v1699_v56  ;;  %v5158_v36 = vmul.f32 -1.442695, %v1703_v46  ;;  %v5157_v4 = vmul.f32 -1.442695, %v1702_v35 }
 0x99b   :  { %6138 = vtanh.f32 %v1701_v31  ;;  %v5159_v33 = vmul.f32 -1.442695, %v1704_v34 }
 0x99c   :  { %6140 = vtanh.f32 %v1697_v43 }
 0x99d   :  { %6142 = vtanh.f32 %v1702_v35 }
 0x99e   :  { %6144 = vtanh.f32 %v1699_v56 }
 0x99f   :  { %6146 = vtanh.f32 %v1704_v34 }
 0x9a0   :  { %6148 = vtanh.f32 %v1703_v46 }
 0x9a1   :  { %6150 = vpow2.f32 %v5153_v50 }
 0x9a3   :  { %v6135_v63 = vpop.eup %6134 }
 0x9a4   :  { %1947 = vrot.lane.b32.xlu1 %v6135_v63, %s6600_s10  ;;  %v6137_v58 = vpop.eup %6136 }
 0x9a5   :  { %1951 = vrot.lane.b32.xlu0 %v6137_v58, %s6600_s10  ;;  %v6139_v7 = vpop.eup %6138 }
 0x9a6   :  { %v6141_v59 = vpop.eup %6140 }
 0x9a7   :  { %v6143_v47 = vpop.eup %6142 }
 0x9a8   :  { %1953 = vrot.lane.b32.xlu1 %v6139_v7, %s6600_s10  ;;  %v6145_v38 = vpop.eup %6144 }
 0x9a9   :  { %1945 = vrot.lane.b32.xlu0 %v6141_v59, %s6600_s10  ;;  %v6147_v13 = vpop.eup %6146 }
 0x9aa   :  { %v6149_v9 = vpop.eup %6148 }
 0x9ab   :  { %v6151_v22 = vpop.eup %6150 }
 0x9ac   :  { %1955 = vrot.lane.b32.xlu1 %v6143_v47, %s6600_s10  ;;  %v1874_v49 = vadd.f32 1.0, %v6151_v22 }
 0x9ad   :  { %1949 = vrot.lane.b32.xlu0 %v6145_v38, %s6600_s10 }
 0x9b0   :  { %1959 = vrot.lane.b32.xlu1 %v6147_v13, %s6600_s10 }
 0x9b1   :  { %1957 = vrot.lane.b32.xlu0 %v6149_v9, %s6600_s10 }
 0xa01   :  { %v1844_v20 = vpop.f32.mrb[8].mxu0 }
 0xa02   :  { %v7209_v19 = vadd.f32 %v6918_v21, %v1844_v20  ;;  %v5503_v26 = vpop.f32.mrb[9].mxu0 }
 0xa04   :  { %6152 = vtanh.f32 %v7209_v19 }
 0xa05   :  { %6154 = vpow2.f32 %v5155_v14 }
 0xa06   :  { %6156 = vpow2.f32 %v5152_v17 }
 0xa07   :  { %6158 = vpow2.f32 %v5154_v60 }
 0xa08   :  { %6160 = vpow2.f32 %v5156_v27 }
 0xa09   :  { %6162 = vpow2.f32 %v5158_v36 }
 0xa0a   :  { %6164 = vrcp.f32 %v1874_v49 }
 0xa0b   :  { %6166 = vpow2.f32 %v5157_v4 }
 0xa0e   :  { %v6153_v44 = vpop.eup %6152 }
 0xa0f   :  { %2074 = vrot.lane.b32.xlu1 %v6153_v44, %s6600_s10  ;;  %v6155_v21 = vpop.eup %6154 }
 0xa10   :  { %v6157_v62 = vpop.eup %6156  ;;  %v1876_v28 = vadd.f32 1.0, %v6155_v21 }
 0xa11   :  { %v1873_v40 = vadd.f32 1.0, %v6157_v62  ;;  %v6159_v53 = vpop.eup %6158  ;;  %v5160_v62 = vmul.f32 -1.442695, %v7209_v19  ;;  %v1913_v19 = vrot.slane %v7112_v12, 7  ;;  %v1917_v12 = vrot.slane %v7118_v57, 7 }
 0xa12   :  { %6168 = vrcp.f32 %v1876_v28  ;;  %v6161_v39 = vpop.eup %6160  ;;  %v1875_v6 = vadd.f32 1.0, %v6159_v53 }
 0xa13   :  { %6170 = vpow2.f32 %v5159_v33  ;;  %v6163_v11 = vpop.eup %6162  ;;  %v1877_v31 = vadd.f32 1.0, %v6161_v39 }
 0xa14   :  { %6172 = vrcp.f32 %v1873_v40  ;;  %v7213_v15 = vpop.eup %6164  ;;  %v1879_v48 = vadd.f32 1.0, %v6163_v11 }
 0xa15   :  { %6174 = vrcp.f32 %v1875_v6  ;;  %v6167_v35 = vpop.eup %6166  ;;  %v1914_v6 = vrot.slane %v7102_v24, 7  ;;  %v1915_v24 = vrot.slane %v7100_v3, 7 }
 0xa16   :  { %v1948_v43 = vpop.permute.xlu1 %1947  ;;  %6176 = vrcp.f32 %v1877_v31  ;;  %v1878_v63 = vadd.f32 1.0, %v6167_v35 }
 0xa17   :  { %v1970_v2 = vmul.f32 %v7213_v15, %v1948_v43  ;;  %v1952_v56 = vpop.permute.xlu0 %1951  ;;  %6178 = vrcp.f32 %v1879_v48  ;;  %v1930_v11 = vmul.f32 %v7213_v15, %v1914_v6  ;;  %v1916_v43 = vrot.slane %v7108_v23, 7 }
 0xa18   :  { %6180 = vrcp.f32 %v1878_v63 }
 0xa19   :  { %1987 = vrot.lane.b32.xlu1 %v1970_v2, %s6601_s11 }
 0xa1a   :  { %v1954_v38 = vpop.permute.xlu1 %1953 }
 0xa1b   :  { %v1946_v59 = vpop.permute.xlu0 %1945 }
 0xa1c   :  { %v7217_v34 = vpop.eup %6168 }
 0xa1d   :  { %v6171_v46 = vpop.eup %6170  ;;  %v1972_v58 = vmul.f32 %v7217_v34, %v1952_v56  ;;  %v1932_v35 = vmul.f32 %v7217_v34, %v1916_v43 }
 0xa1e   :  { %v7220_v7 = vpop.eup %6172  ;;  %v1880_v13 = vadd.f32 1.0, %v6171_v46  ;;  %v1956_v17 = vpop.permute.xlu1 %1955 }
 0xa1f   :  { %v1969_v47 = vmul.f32 %v7220_v7, %v1946_v59  ;;  %1991 = vrot.lane.b32.xlu1 %v1972_v58, %s6601_s11  ;;  %v7225_v9 = vpop.eup %6174  ;;  %v1950_v50 = vpop.permute.xlu0 %1949  ;;  %v1929_v56 = vmul.f32 %v7220_v7, %v1913_v19 }
 0xa20   :  { %v1971_v20 = vmul.f32 %v7225_v9, %v1950_v50  ;;  %6182 = vrcp.f32 %v1880_v13  ;;  %v7228_v26 = vpop.eup %6176  ;;  %v1931_v23 = vmul.f32 %v7225_v9, %v1915_v24 }
 0xa21   :  { %1985 = vrot.lane.b32.xlu0 %v1969_v47, %s6601_s11  ;;  %v7231_v14 = vpop.eup %6178  ;;  %v1973_v22 = vmul.f32 %v7228_v26, %v1954_v38  ;;  %6184 = vpow2.f32 %v5160_v62  ;;  %v1919_v47 = vrot.slane %v7130_v5, 7  ;;  %v1933_v3 = vmul.f32 %v7228_v26, %v1917_v12 }
 0xa22   :  { %v7237_v44 = vpop.eup %6180  ;;  %v1960_v49 = vpop.permute.xlu1 %1959 }
 0xa23   :  { %v1958_v60 = vpop.permute.xlu0 %1957  ;;  %v1974_v36 = vmul.f32 %v7237_v44, %v1956_v17  ;;  %v1935_v50 = vmul.f32 %v7231_v14, %v1919_v47 }
 0xa24   :  { %v1975_v27 = vmul.f32 %v7231_v14, %v1958_v60  ;;  %v1918_v60 = vrot.slane %v7124_v32, 7 }
 0xa25   :  { %1989 = vrot.lane.b32.xlu0 %v1971_v20, %s6601_s11 }
 0xa26   :  { %1997 = vrot.lane.b32.xlu1 %v1975_v27, %s6601_s11  ;;  %v1934_v27 = vmul.f32 %v7237_v44, %v1918_v60 }
 0xa29   :  { %1993 = vrot.lane.b32.xlu0 %v1973_v22, %s6601_s11 }
 0xa2a   :  { %v7241_v21 = vpop.eup %6182 }
 0xa2b   :  { %v1976_v4 = vmul.f32 %v7241_v21, %v1960_v49  ;;  %v6185_v28 = vpop.eup %6184  ;;  %v1920_v49 = vrot.slane %v7134_v54, 7 }
 0xa2c   :  { %v2068_v33 = vadd.f32 1.0, %v6185_v28 }
 0xa2d   :  { %1995 = vrot.lane.b32.xlu0 %v1974_v36, %s6601_s11  ;;  %v1936_v62 = vmul.f32 %v7241_v21, %v1920_v49 }
 0xa2e   :  { %6186 = vrcp.f32 %v2068_v33 }
 0xa31   :  { %1999 = vrot.lane.b32.xlu0 %v1976_v4, %s6601_s11 }
 0xa38   :  { %v7246_v40 = vpop.eup %6186 }
 0xa81   :  { %v2075_v53 = vpop.permute.xlu1 %2074 }
 0xa82   :  { %v2077_v39 = vmul.f32 %v7246_v40, %v2075_v53 }
 0xa84   :  { %2079 = vrot.lane.b32.xlu1 %v2077_v39, %s6601_s11 }
 0xa8b   :  { %v1988_v31 = vpop.permute.xlu1 %1987 }
 0xa8c   :  { %v7253_v48 = vadd.f32 %v1988_v31, %v1930_v11  ;;  %v2072_v31 = vmul.f32 %v7246_v40, %v7148_v25 }
 0xa8e   :  { %6188 = vtanh.f32 %v7253_v48 }
 0xa91   :  { %v1992_v2 = vpop.permute.xlu1 %1991 }
 0xa92   :  { %v7259_v63 = vadd.f32 %v1992_v2, %v1932_v35 }
 0xa93   :  { %v1986_v46 = vpop.permute.xlu0 %1985 }
 0xa94   :  { %v7262_v58 = vadd.f32 %v1986_v46, %v1929_v56  ;;  %6190 = vtanh.f32 %v7259_v63 }
 0xa96   :  { %6192 = vtanh.f32 %v7262_v58 }
 0xa97   :  { %v1990_v59 = vpop.permute.xlu0 %1989 }
 0xa98   :  { %v7269_v38 = vadd.f32 %v1990_v59, %v1931_v23  ;;  %v6189_v13 = vpop.eup %6188  ;;  %v1998_v20 = vpop.permute.xlu1 %1997 }
 0xa99   :  { %2035 = vrot.lane.b32.xlu1 %v6189_v13, %s6600_s10  ;;  %v7276_v57 = vadd.f32 %v1998_v20, %v1935_v50 }
 0xa9a   :  { %6194 = vtanh.f32 %v7269_v38 }
 0xa9b   :  { %v1994_v17 = vpop.permute.xlu0 %1993 }
 0xa9c   :  { %v7278_v5 = vadd.f32 %v1994_v17, %v1933_v3 }
 0xa9e   :  { %v6191_v22 = vpop.eup %6190  ;;  %6196 = vtanh.f32 %v7278_v5 }
 0xa9f   :  { %v1996_v36 = vpop.permute.xlu0 %1995  ;;  %2039 = vrot.lane.b32.xlu0 %v6191_v22, %s6600_s10  ;;  %6198 = vtanh.f32 %v7276_v57 }
 0xaa0   :  { %v7285_v4 = vadd.f32 %v1996_v36, %v1934_v27  ;;  %v6193_v32 = vpop.eup %6192 }
 0xaa2   :  { %6200 = vtanh.f32 %v7285_v4 }
 0xaa3   :  { %v2000_v28 = vpop.permute.xlu0 %1999  ;;  %2033 = vrot.lane.b32.xlu0 %v6193_v32, %s6600_s10 }
 0xaa4   :  { %v7290_v33 = vadd.f32 %v2000_v28, %v1936_v62  ;;  %v6195_v53 = vpop.eup %6194 }
 0xaa6   :  { %6202 = vtanh.f32 %v7290_v33 }
 0xaa7   :  { %2037 = vrot.lane.b32.xlu0 %v6195_v53, %s6600_s10 }
 0xaa8   :  { %v6197_v54 = vpop.eup %6196 }
 0xaa9   :  { %v6199_v39 = vpop.eup %6198  ;;  %2041 = vrot.lane.b32.xlu1 %v6197_v54, %s6600_s10 }
 0xaab   :  { %2045 = vrot.lane.b32.xlu0 %v6199_v39, %s6600_s10 }
 0xaac   :  { %v6201_v6 = vpop.eup %6200 }
 0xaad   :  { %2043 = vrot.lane.b32.xlu1 %v6201_v6, %s6600_s10 }
 0xab0   :  { %v6203_v11 = vpop.eup %6202 }
 0xab1   :  { %2047 = vrot.lane.b32.xlu1 %v6203_v11, %s6600_s10 }
 0xaf6   :  { %v2080_v43 = vpop.permute.xlu1 %2079 }
 0xaf7   :  { %v7300_v19 = vadd.f32 %v2080_v43, %v2072_v31 }
 0xaf9   :  { %6204 = vtanh.f32 %v7300_v19 }
 0xb03   :  { %v6205_v35 = vpop.eup %6204 }
 0xb04   :  { %2085 = vrot.lane.b32.xlu0 %v6205_v35, %s6600_s10 }
 0xb0b   :  { %v2036_v56 = vpop.permute.xlu1 %2035 }
 0xb0c   :  { %v2058_v23 = vmul.f32 %v7213_v15, %v2036_v56 }
 0xb0e   :  { %v2104_v25 = vrot.slane %v2058_v23, 2 }
 0xb11   :  { %v2040_v2 = vpop.permute.xlu0 %2039 }
 0xb12   :  { %v2060_v3 = vmul.f32 %v7217_v34, %v2040_v2 }
 0xb15   :  { %v2034_v46 = vpop.permute.xlu0 %2033 }
 0xb16   :  { %v2057_v24 = vmul.f32 %v7220_v7, %v2034_v46 }
 0xb18   :  { %v2103_v59 = vrot.slane %v2057_v24, 3 }
 0xb19   :  { %v2038_v12 = vpop.permute.xlu0 %2037 }
 0xb1a   :  { %v2059_v47 = vmul.f32 %v7225_v9, %v2038_v12  ;;  %v2105_v20 = vsel %vm559_vm3, %v2104_v25, %v2103_v59 }
 0xb1b   :  { %v2042_v13 = vpop.permute.xlu1 %2041 }
 0xb1c   :  { %v2106_v50 = vrot.slane %v2059_v47, 1  ;;  %v2061_v17 = vmul.f32 %v7228_v26, %v2042_v13 }
 0xb1d   :  { %v2046_v60 = vpop.permute.xlu0 %2045 }
 0xb1e   :  { %v2107_v22 = vsel %vm562_vm4, %v2106_v50, %v2105_v20  ;;  %v2063_v7 = vmul.f32 %v7231_v14, %v2046_v60  ;;  %v2109_v27 = vrot.slane %v2061_v17, 7 }
 0xb1f   :  { %v2108_v15 = vsel %vm565_vm5, %v2060_v3, %v2107_v22  ;;  %v2044_v36 = vpop.permute.xlu1 %2043 }
 0xb20   :  { %v2062_v9 = vmul.f32 %v7237_v44, %v2044_v36  ;;  %v2110_v49 = vsel %vm568_vm6, %v2109_v27, %v2108_v15  ;;  %v2113_v32 = vrot.slane %v2063_v7, 5 }
 0xb22   :  { %v2111_v62 = vrot.slane %v2062_v9, 6 }
 0xb23   :  { %v2048_v34 = vpop.permute.xlu1 %2047 }
 0xb24   :  { %v2112_v28 = vsel %vm571_vm7, %v2111_v62, %v2110_v49  ;;  %v2064_v26 = vmul.f32 %v7241_v21, %v2048_v34  ;;  %v7360_v49 = vld [vmem:[#allocation3 + $0x71] ss:$0 sm:$0xff] }
 0xb25   :  { %v2114_v53 = vsel %vm574_vm8, %v2113_v32, %v2112_v28 }
 0xb26   :  { %v2115_v54 = vrot.slane %v2064_v26, 4 }
 0xb28   :  { %v2116_v14 = vsel %vm577_vm9, %v2115_v54, %v2114_v53 }
 0xb29   :  { %2117 = vrot.lane.b32.xlu1 %v2116_v14, %s6601_s11 }
 0xb76   :  { %v2086_v39 = vpop.permute.xlu0 %2085 }
 0xb77   :  { %v2088_v6 = vmul.f32 %v7246_v40, %v2086_v39 }
 0xb79   :  { %2090 = vrot.lane.b32.xlu0 %v2088_v6, %s6601_s11 }
 0xb9b   :  { %v2118_v44 = vpop.permute.xlu1 %2117 }
 0xb9c   :  { %5513 = vmatmul.mubr.msk.f32.vlgmr.msra.gmra.mrb[12].mxu1 %vm228_vm2, %v2118_v44 }
 0xb9d   :  { %5782 = vmatpush3.bf16.msra.mxu1 %v6841_v61  ;;  %5523 = vmatprep.mubr.msk.f32.mxu1 %vm6598_vm1, %v6599_v18 }
 0xb9e   :  { %5783 = vmatprep.subr.bf16.mxu1 %v6597_v10 }
 0xba1   :  { %5785 = vmatpush3.bf16.msra.mxu1 %v6844_v1 }
 0xba2   :  { %5786 = vmatprep.subr.bf16.mxu1 %v6597_v10 }
 0xba4   :  { %5524 = vmatmul.mubr.msk.f32.vlgmr.msra.gmra.mrb[14].mxu1 %vm228_vm2, %v2118_v44 }
 0xba5   :  { %5788 = vmatpush3.bf16.msra.mxu1 %v6868_v52  ;;  %5534 = vmatprep.mubr.msk.f32.mxu1 %vm6598_vm1, %v6599_v18 }
 0xba6   :  { %5789 = vmatprep.subr.bf16.mxu1 %v6597_v10 }
 0xba9   :  { %5791 = vmatpush3.bf16.msra.mxu1 %v6873_v0 }
 0xbaa   :  { %5810 = vmatprep.subr.bf16.mxu1 %v6597_v10 }
 0xbeb   :  { %v2091_v21 = vpop.permute.xlu0 %2090 }
 0xbec   :  { %2094 = vst.msk [vmem:[#allocation2 + $0x10] sm:$0xff] %vm228_vm2, %v2091_v21  ;;  %5535 = vmatmul.mubr.msk.f32.vlgmr.msra.gmra.mrb[14].mxu1 %vm228_vm2, %v2091_v21 }
 0xbed   :  { %5812 = vmatpush3.bf16.msra.mxu1 %v6693_v8  ;;  %5578 = vmatprep.mubr.msk.f32.mxu1 %vm6598_vm1, %v6599_v18 }
 0xbee   :  { %5813 = vmatprep.subr.bf16.mxu1 %v6597_v10 }
 0xbf1   :  { %5815 = vmatpush3.bf16.msra.mxu1 %v6702_v16 }
 0xbf2   :  { %5816 = vmatprep.subr.bf16.mxu1 %v6597_v10 }
 0xc6f   :  { %v2187_v40 = vpop.f32.mrb[12].mxu1 }
 0xc70   :  { %v2192_v11 = vrot.slane %v2187_v40, 4  ;;  %v5514_v31 = vpop.f32.mrb[13].mxu1  ;;  %v2194_v35 = vrot.slane %v2187_v40, 6  ;;  %v2196_v2 = vrot.slane %v2187_v40, 1  ;;  %v2193_v46 = vrot.slane %v2187_v40, 5 }
 0xc71   :  { %v2211_v24 = vadd.f32 %v2187_v40, %v6749_v51  ;;  %v2197_v59 = vrot.slane %v2187_v40, 2  ;;  %v2195_v47 = vrot.slane %v2187_v40, 7  ;;  %v2198_v50 = vrot.slane %v2187_v40, 3 }
 0xc72   :  { %v2207_v43 = vadd.f32 %v2192_v11, %v6724_v29  ;;  %v2209_v56 = vadd.f32 %v2194_v35, %v6743_v45  ;;  %v2212_v12 = vadd.f32 %v2196_v2, %v6730_v37  ;;  %v2208_v25 = vadd.f32 %v2193_v46, %v6737_v42 }
 0xc73   :  { %v2213_v13 = vadd.f32 %v2197_v59, %v6753_v55  ;;  %v2210_v3 = vadd.f32 %v2195_v47, %v6726_v30  ;;  %v2214_v17 = vadd.f32 %v2198_v50, %v6735_v41  ;;  %v5168_v53 = vmul.f32 -1.442695, %v2211_v24 }
 0xc74   :  { %6206 = vtanh.f32 %v2207_v43  ;;  %v5164_v28 = vmul.f32 -1.442695, %v2207_v43  ;;  %v5166_v26 = vmul.f32 -1.442695, %v2209_v56  ;;  %v5169_v14 = vmul.f32 -1.442695, %v2212_v12 }
 0xc75   :  { %6208 = vtanh.f32 %v2209_v56  ;;  %v5165_v39 = vmul.f32 -1.442695, %v2208_v25  ;;  %v5170_v44 = vmul.f32 -1.442695, %v2213_v13  ;;  %v5167_v21 = vmul.f32 -1.442695, %v2210_v3 }
 0xc76   :  { %6210 = vtanh.f32 %v2211_v24  ;;  %v5171_v11 = vmul.f32 -1.442695, %v2214_v17 }
 0xc77   :  { %6212 = vtanh.f32 %v2212_v12 }
 0xc78   :  { %6214 = vtanh.f32 %v2208_v25 }
 0xc79   :  { %6216 = vtanh.f32 %v2213_v13 }
 0xc7a   :  { %6218 = vtanh.f32 %v2210_v3 }
 0xc7b   :  { %6220 = vtanh.f32 %v2214_v17 }
 0xc7e   :  { %v6207_v23 = vpop.eup %6206 }
 0xc7f   :  { %2455 = vrot.lane.b32.xlu1 %v6207_v23, %s6600_s10  ;;  %v6209_v20 = vpop.eup %6208 }
 0xc80   :  { %v6211_v60 = vpop.eup %6210 }
 0xc81   :  { %2463 = vrot.lane.b32.xlu0 %v6211_v60, %s6600_s10  ;;  %v6213_v22 = vpop.eup %6212 }
 0xc82   :  { %v6215_v7 = vpop.eup %6214 }
 0xc83   :  { %2459 = vrot.lane.b32.xlu1 %v6209_v20, %s6600_s10  ;;  %v6217_v15 = vpop.eup %6216 }
 0xc84   :  { %v6219_v27 = vpop.eup %6218 }
 0xc85   :  { %2457 = vrot.lane.b32.xlu0 %v6215_v7, %s6600_s10  ;;  %v6221_v36 = vpop.eup %6220 }
 0xc87   :  { %2465 = vrot.lane.b32.xlu1 %v6213_v22, %s6600_s10 }
 0xc89   :  { %2461 = vrot.lane.b32.xlu0 %v6219_v27, %s6600_s10 }
 0xc8b   :  { %2467 = vrot.lane.b32.xlu1 %v6217_v15, %s6600_s10 }
 0xc8d   :  { %2469 = vrot.lane.b32.xlu0 %v6221_v36, %s6600_s10 }
 0xcbf   :  { %v2354_v9 = vpop.f32.mrb[14].mxu1 }
 0xcc0   :  { %v7363_v32 = vadd.f32 %v7360_v49, %v2354_v9  ;;  %v5536_v62 = vpop.f32.mrb[15].mxu1 }
 0xcc2   :  { %6222 = vtanh.f32 %v7363_v32 }
 0xcc3   :  { %6224 = vpow2.f32 %v5164_v28 }
 0xcc4   :  { %6226 = vpow2.f32 %v5166_v26 }
 0xcc5   :  { %6228 = vpow2.f32 %v5168_v53 }
 0xcc6   :  { %6230 = vpow2.f32 %v5169_v14 }
 0xcc7   :  { %6232 = vpow2.f32 %v5165_v39 }
 0xccc   :  { %v6223_v34 = vpop.eup %6222 }
 0xccd   :  { %2584 = vrot.lane.b32.xlu1 %v6223_v34, %s6600_s10  ;;  %v6225_v54 = vpop.eup %6224 }
 0xcce   :  { %v2383_v6 = vadd.f32 1.0, %v6225_v54  ;;  %v6227_v40 = vpop.eup %6226 }
 0xccf   :  { %v6229_v31 = vpop.eup %6228  ;;  %v2385_v43 = vadd.f32 1.0, %v6227_v40 }
 0xcd0   :  { %6234 = vrcp.f32 %v2383_v6  ;;  %v6231_v35 = vpop.eup %6230  ;;  %v2387_v2 = vadd.f32 1.0, %v6229_v31  ;;  %v5172_v31 = vmul.f32 -1.442695, %v7363_v32  ;;  %v2425_v32 = vrot.slane %v7269_v38, 7 }
 0xcd1   :  { %6236 = vpow2.f32 %v5170_v44  ;;  %v6233_v56 = vpop.eup %6232  ;;  %v2388_v23 = vadd.f32 1.0, %v6231_v35 }
 0xcd2   :  { %6238 = vpow2.f32 %v5167_v21  ;;  %v2384_v47 = vadd.f32 1.0, %v6233_v56 }
 0xcd3   :  { %6240 = vpow2.f32 %v5171_v11 }
 0xcd4   :  { %6242 = vrcp.f32 %v2385_v43 }
 0xcd5   :  { %6244 = vrcp.f32 %v2387_v2 }
 0xcd6   :  { %6246 = vrcp.f32 %v2388_v23  ;;  %v2423_v23 = vrot.slane %v7262_v58, 7 }
 0xcd7   :  { %6248 = vrcp.f32 %v2384_v47 }
 0xcda   :  { %v7367_v46 = vpop.eup %6234 }
 0xcdb   :  { %v6237_v59 = vpop.eup %6236 }
 0xcdc   :  { %v6239_v25 = vpop.eup %6238  ;;  %v2389_v13 = vadd.f32 1.0, %v6237_v59  ;;  %v2439_v59 = vmul.f32 %v7367_v46, %v2423_v23 }
 0xcdd   :  { %v2386_v50 = vadd.f32 1.0, %v6239_v25  ;;  %v6241_v3 = vpop.eup %6240  ;;  %v2427_v25 = vrot.slane %v7278_v5, 7 }
 0xcde   :  { %6250 = vrcp.f32 %v2389_v13  ;;  %v7371_v20 = vpop.eup %6242  ;;  %v2390_v60 = vadd.f32 1.0, %v6241_v3  ;;  %v2428_v3 = vrot.slane %v7285_v4, 7 }
 0xcdf   :  { %6252 = vrcp.f32 %v2386_v50  ;;  %v7374_v7 = vpop.eup %6244  ;;  %v2441_v13 = vmul.f32 %v7371_v20, %v2425_v32 }
 0xce0   :  { %v7378_v36 = vpop.eup %6246  ;;  %6254 = vrcp.f32 %v2390_v60 }
 0xce1   :  { %v7382_v34 = vpop.eup %6248  ;;  %6256 = vpow2.f32 %v5172_v31  ;;  %v2444_v38 = vmul.f32 %v7378_v36, %v2428_v3 }
 0xce8   :  { %v7386_v53 = vpop.eup %6250 }
 0xce9   :  { %v7390_v39 = vpop.eup %6252 }
 0xcea   :  { %v7395_v21 = vpop.eup %6254 }
 0xceb   :  { %v6257_v43 = vpop.eup %6256 }
 0xcec   :  { %v2578_v35 = vadd.f32 1.0, %v6257_v43 }
 0xcee   :  { %6258 = vrcp.f32 %v2578_v35 }
 0xcf1   :  { %v2456_v24 = vpop.permute.xlu1 %2455 }
 0xcf2   :  { %v2479_v12 = vmul.f32 %v7367_v46, %v2456_v24 }
 0xcf3   :  { %v2464_v15 = vpop.permute.xlu0 %2463 }
 0xcf4   :  { %2495 = vrot.lane.b32.xlu0 %v2479_v12, %s6601_s11  ;;  %v2483_v27 = vmul.f32 %v7374_v7, %v2464_v15  ;;  %v2424_v15 = vrot.slane %v7253_v48, 7  ;;  %v2426_v48 = vrot.slane %v7259_v63, 7 }
 0xcf5   :  { %v2460_v17 = vpop.permute.xlu1 %2459 }
 0xcf6   :  { %v2481_v22 = vmul.f32 %v7371_v20, %v2460_v17  ;;  %2503 = vrot.lane.b32.xlu1 %v2483_v27, %s6601_s11  ;;  %v2443_v17 = vmul.f32 %v7374_v7, %v2427_v25  ;;  %v2440_v4 = vmul.f32 %v7382_v34, %v2424_v15 }
 0xcf7   :  { %v2458_v28 = vpop.permute.xlu0 %2457 }
 0xcf8   :  { %2499 = vrot.lane.b32.xlu0 %v2481_v22, %s6601_s11  ;;  %v2480_v26 = vmul.f32 %v7382_v34, %v2458_v28  ;;  %v7400_v2 = vpop.eup %6258 }
 0xcf9   :  { %v2466_v9 = vpop.permute.xlu1 %2465  ;;  %v2582_v32 = vmul.f32 %v7400_v2, %v7300_v19 }
 0xcfa   :  { %v2484_v62 = vmul.f32 %v7378_v36, %v2466_v9  ;;  %2497 = vrot.lane.b32.xlu1 %v2480_v26, %s6601_s11  ;;  %v2429_v9 = vrot.slane %v7276_v57, 7  ;;  %v2442_v57 = vmul.f32 %v7390_v39, %v2426_v48 }
 0xcfb   :  { %v2462_v6 = vpop.permute.xlu0 %2461 }
 0xcfc   :  { %2505 = vrot.lane.b32.xlu0 %v2484_v62, %s6601_s11  ;;  %v2482_v44 = vmul.f32 %v7390_v39, %v2462_v6 }
 0xcfd   :  { %v2468_v54 = vpop.permute.xlu1 %2467 }
 0xcfe   :  { %v2485_v14 = vmul.f32 %v7386_v53, %v2468_v54  ;;  %2501 = vrot.lane.b32.xlu1 %v2482_v44, %s6601_s11  ;;  %v2445_v54 = vmul.f32 %v7386_v53, %v2429_v9 }
 0xcff   :  { %v2470_v40 = vpop.permute.xlu0 %2469 }
 0xd00   :  { %2507 = vrot.lane.b32.xlu0 %v2485_v14, %s6601_s11  ;;  %v2486_v11 = vmul.f32 %v7395_v21, %v2470_v40  ;;  %v2430_v40 = vrot.slane %v7290_v33, 7 }
 0xd02   :  { %2509 = vrot.lane.b32.xlu1 %v2486_v11, %s6601_s11  ;;  %v2446_v31 = vmul.f32 %v7395_v21, %v2430_v40 }
 0xd3f   :  { %v2585_v56 = vpop.permute.xlu1 %2584 }
 0xd40   :  { %v2587_v24 = vmul.f32 %v7400_v2, %v2585_v56 }
 0xd42   :  { %2589 = vrot.lane.b32.xlu0 %v2587_v24, %s6601_s11 }
 0xd66   :  { %v2496_v12 = vpop.permute.xlu0 %2495 }
 0xd67   :  { %v7406_v47 = vadd.f32 %v2496_v12, %v2439_v59 }
 0xd68   :  { %v2504_v58 = vpop.permute.xlu1 %2503 }
 0xd69   :  { %6260 = vtanh.f32 %v7406_v47  ;;  %v7417_v27 = vadd.f32 %v2504_v58, %v2443_v17 }
 0xd6a   :  { %v2500_v50 = vpop.permute.xlu0 %2499 }
 0xd6b   :  { %v7414_v60 = vadd.f32 %v2500_v50, %v2441_v13 }
 0xd6c   :  { %v2498_v28 = vpop.permute.xlu1 %2497 }
 0xd6d   :  { %6262 = vtanh.f32 %v7414_v60  ;;  %v7428_v26 = vadd.f32 %v2498_v28, %v2440_v4 }
 0xd6e   :  { %v2506_v5 = vpop.permute.xlu0 %2505  ;;  %6264 = vtanh.f32 %v7417_v27 }
 0xd6f   :  { %v7425_v62 = vadd.f32 %v2506_v5, %v2444_v38 }
 0xd70   :  { %v2502_v44 = vpop.permute.xlu1 %2501 }
 0xd71   :  { %6266 = vtanh.f32 %v7425_v62  ;;  %v7437_v11 = vadd.f32 %v2502_v44, %v2442_v57 }
 0xd72   :  { %v2508_v14 = vpop.permute.xlu0 %2507  ;;  %6268 = vtanh.f32 %v7428_v26 }
 0xd73   :  { %v6261_v22 = vpop.eup %6260  ;;  %v7434_v6 = vadd.f32 %v2508_v14, %v2445_v54 }
 0xd74   :  { %2543 = vrot.lane.b32.xlu1 %v6261_v22, %s6600_s10  ;;  %v2510_v43 = vpop.permute.xlu1 %2509 }
 0xd75   :  { %6270 = vtanh.f32 %v7434_v6  ;;  %v7443_v56 = vadd.f32 %v2510_v43, %v2446_v31 }
 0xd76   :  { %6272 = vtanh.f32 %v7437_v11 }
 0xd77   :  { %v6263_v63 = vpop.eup %6262  ;;  %6274 = vtanh.f32 %v7443_v56 }
 0xd78   :  { %2547 = vrot.lane.b32.xlu1 %v6263_v63, %s6600_s10  ;;  %v6265_v35 = vpop.eup %6264 }
 0xd79   :  { %2551 = vrot.lane.b32.xlu0 %v6265_v35, %s6600_s10 }
 0xd7b   :  { %v6267_v24 = vpop.eup %6266 }
 0xd7c   :  { %2553 = vrot.lane.b32.xlu1 %v6267_v24, %s6600_s10  ;;  %v6269_v33 = vpop.eup %6268 }
 0xd7d   :  { %2545 = vrot.lane.b32.xlu0 %v6269_v33, %s6600_s10 }
 0xd7f   :  { %v6271_v23 = vpop.eup %6270 }
 0xd80   :  { %2555 = vrot.lane.b32.xlu1 %v6271_v23, %s6600_s10  ;;  %v6273_v59 = vpop.eup %6272 }
 0xd81   :  { %2549 = vrot.lane.b32.xlu0 %v6273_v59, %s6600_s10  ;;  %v6275_v12 = vpop.eup %6274 }
 0xd85   :  { %2557 = vrot.lane.b32.xlu0 %v6275_v12, %s6600_s10 }
 0xdb4   :  { %v2590_v25 = vpop.permute.xlu0 %2589 }
 0xdb5   :  { %v7454_v13 = vadd.f32 %v2590_v25, %v2582_v32 }
 0xdb7   :  { %6276 = vtanh.f32 %v7454_v13 }
 0xdc1   :  { %v6277_v50 = vpop.eup %6276 }
 0xdc2   :  { %2595 = vrot.lane.b32.xlu1 %v6277_v50, %s6600_s10 }
 0xde6   :  { %v2544_v3 = vpop.permute.xlu1 %2543 }
 0xde7   :  { %v2567_v38 = vmul.f32 %v7367_v46, %v2544_v3 }
 0xde9   :  { %v2613_v28 = vrot.slane %v2567_v38, 4 }
 0xdea   :  { %v2548_v17 = vpop.permute.xlu1 %2547 }
 0xdeb   :  { %v2552_v58 = vpop.permute.xlu0 %2551  ;;  %v2569_v22 = vmul.f32 %v7371_v20, %v2548_v17 }
 0xdec   :  { %v2571_v31 = vmul.f32 %v7374_v7, %v2552_v58 }
 0xded   :  { %v2616_v19 = vrot.slane %v2569_v22, 2 }
 0xdee   :  { %v2554_v15 = vpop.permute.xlu1 %2553 }
 0xdef   :  { %v2546_v5 = vpop.permute.xlu0 %2545  ;;  %v2572_v54 = vmul.f32 %v7378_v36, %v2554_v15 }
 0xdf0   :  { %v2568_v9 = vmul.f32 %v7382_v34, %v2546_v5 }
 0xdf1   :  { %v2621_v46 = vrot.slane %v2572_v54, 7 }
 0xdf2   :  { %v2556_v4 = vpop.permute.xlu1 %2555  ;;  %v2614_v48 = vrot.slane %v2568_v9, 3 }
 0xdf3   :  { %v2550_v14 = vpop.permute.xlu0 %2549  ;;  %v2573_v57 = vmul.f32 %v7386_v53, %v2556_v4 }
 0xdf4   :  { %v2615_v44 = vsel %vm559_vm3, %v2614_v48, %v2613_v28  ;;  %v2570_v40 = vmul.f32 %v7390_v39, %v2550_v14 }
 0xdf5   :  { %v2617_v20 = vsel %vm562_vm4, %v2616_v19, %v2615_v44  ;;  %v2623_v43 = vrot.slane %v2573_v57, 6 }
 0xdf6   :  { %v2618_v63 = vrot.slane %v2570_v40, 1 }
 0xdf7   :  { %v2558_v34 = vpop.permute.xlu0 %2557 }
 0xdf8   :  { %v2619_v35 = vsel %vm565_vm5, %v2618_v63, %v2617_v20  ;;  %v2574_v24 = vmul.f32 %v7395_v21, %v2558_v34 }
 0xdf9   :  { %v2620_v36 = vsel %vm568_vm6, %v2571_v31, %v2619_v35 }
 0xdfa   :  { %v2622_v53 = vsel %vm571_vm7, %v2621_v46, %v2620_v36  ;;  %v2625_v33 = vrot.slane %v2574_v24, 5 }
 0xdfb   :  { %v2624_v23 = vsel %vm574_vm8, %v2623_v43, %v2622_v53 }
 0xdfc   :  { %v2626_v39 = vsel %vm577_vm9, %v2625_v33, %v2624_v23 }
 0xdfd   :  { %2627 = vrot.lane.b32.xlu0 %v2626_v39, %s6601_s11 }
 0xe34   :  { %v2596_v59 = vpop.permute.xlu1 %2595 }
 0xe35   :  { %v2598_v7 = vmul.f32 %v7400_v2, %v2596_v59 }
 0xe37   :  { %2600 = vrot.lane.b32.xlu1 %v2598_v7, %s6601_s11 }
 0xe6f   :  { %v2628_v12 = vpop.permute.xlu0 %2627 }
 0xe70   :  { %5546 = vmatmul.mubr.msk.f32.vlgmr.msra.gmra.mrb[10].mxu0 %vm228_vm2, %v2628_v12 }
 0xe71   :  { %5800 = vmatpush3.bf16.msra.mxu0 %v6841_v61  ;;  %5556 = vmatprep.mubr.msk.f32.mxu0 %vm6598_vm1, %v6599_v18 }
 0xe72   :  { %5801 = vmatprep.subr.bf16.mxu0 %v6597_v10 }
 0xe75   :  { %5803 = vmatpush3.bf16.msra.mxu0 %v6844_v1 }
 0xe76   :  { %5804 = vmatprep.subr.bf16.mxu0 %v6597_v10 }
 0xe78   :  { %5557 = vmatmul.mubr.msk.f32.vlgmr.msra.gmra.mrb[12].mxu0 %vm228_vm2, %v2628_v12 }
 0xe79   :  { %5806 = vmatpush3.bf16.msra.mxu0 %v6868_v52  ;;  %5567 = vmatprep.mubr.msk.f32.mxu0 %vm6598_vm1, %v6599_v18 }
 0xe7a   :  { %5807 = vmatprep.subr.bf16.mxu0 %v6597_v10 }
 0xe7d   :  { %5809 = vmatpush3.bf16.msra.mxu0 %v6873_v0 }
 0xe7e   :  { %5828 = vmatprep.subr.bf16.mxu0 %v6597_v10 }
 0xea9   :  { %v2601_v21 = vpop.permute.xlu1 %2600 }
 0xeaa   :  { %2604 = vst.msk [vmem:[#allocation2 + $0x18] sm:$0xff] %vm228_vm2, %v2601_v21  ;;  %5568 = vmatmul.mubr.msk.f32.vlgmr.msra.gmra.mrb[12].mxu0 %vm228_vm2, %v2601_v21 }
 0xeab   :  { %5830 = vmatpush3.bf16.msra.mxu0 %v6693_v8  ;;  %5611 = vmatprep.mubr.msk.f32.mxu0 %vm6598_vm1, %v6599_v18 }
 0xeac   :  { %5831 = vmatprep.subr.bf16.mxu0 %v6597_v10 }
 0xeaf   :  { %5833 = vmatpush3.bf16.msra.mxu0 %v6702_v16 }
 0xeb0   :  { %5834 = vmatprep.subr.bf16.mxu0 %v6597_v10 }
 0xf43   :  { %v2697_v2 = vpop.f32.mrb[10].mxu0 }
 0xf44   :  { %v2702_v32 = vrot.slane %v2697_v2, 3  ;;  %v5547_v25 = vpop.f32.mrb[11].mxu0  ;;  %v2703_v3 = vrot.slane %v2697_v2, 4  ;;  %v2704_v17 = vrot.slane %v2697_v2, 5  ;;  %v2705_v58 = vrot.slane %v2697_v2, 6 }
 0xf45   :  { %v2706_v22 = vrot.slane %v2697_v2, 7  ;;  %v2707_v38 = vrot.slane %v2697_v2, 1  ;;  %v2708_v19 = vrot.slane %v2697_v2, 2  ;;  %v2722_v28 = vadd.f32 %v2697_v2, %v6730_v37 }
 0xf46   :  { %v2717_v50 = vadd.f32 %v2702_v32, %v6724_v29  ;;  %v2718_v8 = vadd.f32 %v2703_v3, %v6737_v42  ;;  %v2719_v15 = vadd.f32 %v2704_v17, %v6743_v45  ;;  %v2720_v5 = vadd.f32 %v2705_v58, %v6726_v30 }
 0xf47   :  { %v2721_v9 = vadd.f32 %v2706_v22, %v6749_v51  ;;  %v2723_v4 = vadd.f32 %v2707_v38, %v6753_v55  ;;  %v2724_v48 = vadd.f32 %v2708_v19, %v6735_v41  ;;  %v5181_v7 = vmul.f32 -1.442695, %v2722_v28 }
 0xf48   :  { %6278 = vtanh.f32 %v2717_v50  ;;  %v5176_v35 = vmul.f32 -1.442695, %v2717_v50  ;;  %v5177_v24 = vmul.f32 -1.442695, %v2718_v8  ;;  %v5178_v36 = vmul.f32 -1.442695, %v2719_v15 }
 0xf49   :  { %6280 = vtanh.f32 %v2718_v8  ;;  %v5179_v53 = vmul.f32 -1.442695, %v2720_v5  ;;  %v5180_v23 = vmul.f32 -1.442695, %v2721_v9  ;;  %v5182_v39 = vmul.f32 -1.442695, %v2723_v4 }
 0xf4a   :  { %6282 = vtanh.f32 %v2719_v15  ;;  %v5183_v12 = vmul.f32 -1.442695, %v2724_v48 }
 0xf4b   :  { %6284 = vtanh.f32 %v2720_v5 }
 0xf4c   :  { %6286 = vtanh.f32 %v2721_v9 }
 0xf4d   :  { %6288 = vtanh.f32 %v2723_v4 }
 0xf4e   :  { %6290 = vtanh.f32 %v2722_v28 }
 0xf4f   :  { %6292 = vtanh.f32 %v2724_v48 }
 0xf52   :  { %v6279_v16 = vpop.eup %6278 }
 0xf53   :  { %2965 = vrot.lane.b32.xlu0 %v6279_v16, %s6600_s10  ;;  %v6281_v54 = vpop.eup %6280 }
 0xf54   :  { %v6283_v14 = vpop.eup %6282  ;;  %2967 = vrot.lane.b32.xlu1 %v6281_v54, %s6600_s10 }
 0xf55   :  { %v6285_v57 = vpop.eup %6284 }
 0xf56   :  { %v6287_v44 = vpop.eup %6286 }
 0xf57   :  { %2969 = vrot.lane.b32.xlu0 %v6283_v14, %s6600_s10  ;;  %v6289_v40 = vpop.eup %6288 }
 0xf58   :  { %2971 = vrot.lane.b32.xlu1 %v6285_v57, %s6600_s10  ;;  %v6291_v20 = vpop.eup %6290 }
 0xf59   :  { %v6293_v63 = vpop.eup %6292 }
 0xf5b   :  { %2973 = vrot.lane.b32.xlu0 %v6287_v44, %s6600_s10 }
 0xf5c   :  { %2977 = vrot.lane.b32.xlu1 %v6289_v40, %s6600_s10 }
 0xf5f   :  { %2975 = vrot.lane.b32.xlu0 %v6291_v20, %s6600_s10 }
 0xf60   :  { %2979 = vrot.lane.b32.xlu1 %v6293_v63, %s6600_s10 }
 0xf7d   :  { %v2864_v46 = vpop.f32.mrb[12].mxu0 }
 0xf7e   :  { %v5889_v31 = vadd.f32 %v7360_v49, %v2864_v46  ;;  %v5569_v34 = vpop.f32.mrb[13].mxu0 }
 0xf80   :  { %6294 = vtanh.f32 %v5889_v31  ;;  %v5184_v14 = vmul.f32 -1.442695, %v5889_v31 }
 0xf81   :  { %6296 = vpow2.f32 %v5176_v35 }
 0xf82   :  { %6298 = vpow2.f32 %v5177_v24 }
 0xf83   :  { %6300 = vpow2.f32 %v5178_v36 }
 0xf84   :  { %6302 = vpow2.f32 %v5179_v53 }
 0xf85   :  { %6304 = vpow2.f32 %v5180_v23 }
 0xf86   :  { %6306 = vpow2.f32 %v5182_v39 }
 0xf8a   :  { %v6295_v43 = vpop.eup %6294 }
 0xf8b   :  { %3094 = vrot.lane.b32.xlu0 %v6295_v43, %s6600_s10  ;;  %v6297_v33 = vpop.eup %6296 }
 0xf8c   :  { %v2893_v59 = vadd.f32 1.0, %v6297_v33  ;;  %v6299_v21 = vpop.eup %6298 }
 0xf8d   :  { %v6301_v2 = vpop.eup %6300  ;;  %v2894_v32 = vadd.f32 1.0, %v6299_v21 }
 0xf8e   :  { %6308 = vrcp.f32 %v2893_v59  ;;  %v6303_v25 = vpop.eup %6302  ;;  %v2895_v50 = vadd.f32 1.0, %v6301_v2 }
 0xf8f   :  { %6310 = vpow2.f32 %v5181_v7  ;;  %v6305_v3 = vpop.eup %6304  ;;  %v2896_v58 = vadd.f32 1.0, %v6303_v25 }
 0xf90   :  { %6312 = vpow2.f32 %v5183_v12  ;;  %v6307_v17 = vpop.eup %6306  ;;  %v2897_v15 = vadd.f32 1.0, %v6305_v3 }
 0xf91   :  { %6314 = vrcp.f32 %v2894_v32  ;;  %v2899_v16 = vadd.f32 1.0, %v6307_v17 }
 0xf92   :  { %6316 = vrcp.f32 %v2895_v50  ;;  %v2933_v50 = vrot.slane %v7406_v47, 7 }
 0xf93   :  { %6318 = vrcp.f32 %v2896_v58 }
 0xf94   :  { %6320 = vrcp.f32 %v2897_v15  ;;  %v2935_v15 = vrot.slane %v7414_v60, 7 }
 0xf95   :  { %6322 = vrcp.f32 %v2899_v16 }
 0xf98   :  { %v7516_v8 = vpop.eup %6308 }
 0xf99   :  { %v6311_v38 = vpop.eup %6310  ;;  %v2949_v3 = vmul.f32 %v7516_v8, %v2933_v50 }
 0xf9a   :  { %v6313_v9 = vpop.eup %6312  ;;  %v2898_v19 = vadd.f32 1.0, %v6311_v38 }
 0xf9b   :  { %v2900_v4 = vadd.f32 1.0, %v6313_v9  ;;  %v7520_v28 = vpop.eup %6314  ;;  %v2936_v9 = vrot.slane %v7437_v11, 7 }
 0xf9c   :  { %6324 = vrcp.f32 %v2898_v19  ;;  %v7522_v54 = vpop.eup %6316 }
 0xf9d   :  { %6326 = vrcp.f32 %v2900_v4  ;;  %v7527_v20 = vpop.eup %6318  ;;  %v2951_v16 = vmul.f32 %v7522_v54, %v2935_v15  ;;  %v2937_v4 = vrot.slane %v7417_v27, 7  ;;  %v2938_v27 = vrot.slane %v7425_v62, 7 }
 0xf9e   :  { %v7530_v46 = vpop.eup %6320  ;;  %6328 = vpow2.f32 %v5184_v14 }
 0xf9f   :  { %v7535_v35 = vpop.eup %6322 }
 0xfa6   :  { %v7538_v36 = vpop.eup %6324 }
 0xfa7   :  { %v7543_v39 = vpop.eup %6326 }
 0xfa8   :  { %v6329_v12 = vpop.eup %6328 }
 0xfa9   :  { %v3088_v21 = vadd.f32 1.0, %v6329_v12 }
 0xfab   :  { %6330 = vrcp.f32 %v3088_v21 }
 0xfb5   :  { %v7548_v2 = vpop.eup %6330 }
 0xfc5   :  { %v2966_v22 = vpop.permute.xlu0 %2965 }
 0xfc6   :  { %v2989_v5 = vmul.f32 %v7516_v8, %v2966_v22  ;;  %v2968_v48 = vpop.permute.xlu1 %2967  ;;  %v2934_v22 = vrot.slane %v7428_v26, 7  ;;  %v2952_v26 = vmul.f32 %v7527_v20, %v2936_v9 }
 0xfc7   :  { %v2990_v57 = vmul.f32 %v7520_v28, %v2968_v48 }
 0xfc8   :  { %3005 = vrot.lane.b32.xlu1 %v2989_v5, %s6601_s11  ;;  %v2950_v38 = vmul.f32 %v7520_v28, %v2934_v22 }
 0xfc9   :  { %v2970_v44 = vpop.permute.xlu0 %2969  ;;  %3007 = vrot.lane.b32.xlu0 %v2990_v57, %s6601_s11  ;;  %v2953_v57 = vmul.f32 %v7530_v46, %v2937_v4 }
 0xfca   :  { %v2991_v40 = vmul.f32 %v7522_v54, %v2970_v44  ;;  %v2972_v63 = vpop.permute.xlu1 %2971  ;;  %v2939_v44 = vrot.slane %v7434_v6, 7  ;;  %v2940_v6 = vrot.slane %v7443_v56, 7 }
 0xfcb   :  { %v2992_v34 = vmul.f32 %v7527_v20, %v2972_v63 }
 0xfcc   :  { %3009 = vrot.lane.b32.xlu1 %v2991_v40, %s6601_s11  ;;  %v2956_v62 = vmul.f32 %v7543_v39, %v2940_v6 }
 0xfcd   :  { %v2974_v43 = vpop.permute.xlu0 %2973  ;;  %3011 = vrot.lane.b32.xlu0 %v2992_v34, %s6601_s11  ;;  %v2955_v34 = vmul.f32 %v7535_v35, %v2939_v44 }
 0xfce   :  { %v2993_v31 = vmul.f32 %v7530_v46, %v2974_v43  ;;  %v2978_v24 = vpop.permute.xlu1 %2977 }
 0xfcf   :  { %v2995_v53 = vmul.f32 %v7535_v35, %v2978_v24 }
 0xfd0   :  { %3013 = vrot.lane.b32.xlu1 %v2993_v31, %s6601_s11  ;;  %v2954_v31 = vmul.f32 %v7538_v36, %v2938_v27 }
 0xfd1   :  { %v2976_v33 = vpop.permute.xlu0 %2975  ;;  %3017 = vrot.lane.b32.xlu0 %v2995_v53, %s6601_s11 }
 0xfd2   :  { %v2994_v23 = vmul.f32 %v7538_v36, %v2976_v33  ;;  %v2980_v59 = vpop.permute.xlu1 %2979 }
 0xfd3   :  { %v2996_v7 = vmul.f32 %v7543_v39, %v2980_v59 }
 0xfd4   :  { %3015 = vrot.lane.b32.xlu1 %v2994_v23, %s6601_s11 }
 0xfd5   :  { %3019 = vrot.lane.b32.xlu0 %v2996_v7, %s6601_s11 }
 0xffd   :  { %v3095_v32 = vpop.permute.xlu0 %3094 }
 0xffe   :  { %v3097_v25 = vmul.f32 %v7548_v2, %v3095_v32 }
0x1000   :  { %3099 = vrot.lane.b32.xlu1 %v3097_v25, %s6601_s11 }
0x103a   :  { %v3006_v17 = vpop.permute.xlu1 %3005 }
0x103b   :  { %v7554_v58 = vadd.f32 %v3006_v17, %v2949_v3  ;;  %v3008_v5 = vpop.permute.xlu0 %3007  ;;  %v3092_v3 = vmul.f32 %v7548_v2, %v7454_v13 }
0x103c   :  { %v7562_v19 = vadd.f32 %v3008_v5, %v2950_v38 }
0x103d   :  { %6332 = vtanh.f32 %v7554_v58 }
0x103e   :  { %v3010_v47 = vpop.permute.xlu1 %3009  ;;  %6334 = vtanh.f32 %v7562_v19 }
0x103f   :  { %v7565_v48 = vadd.f32 %v3010_v47, %v2951_v16  ;;  %v3012_v60 = vpop.permute.xlu0 %3011 }
0x1040   :  { %v7572_v11 = vadd.f32 %v3012_v60, %v2952_v26 }
0x1041   :  { %6336 = vtanh.f32 %v7565_v48 }
0x1042   :  { %v3014_v40 = vpop.permute.xlu1 %3013  ;;  %6338 = vtanh.f32 %v7572_v11 }
0x1043   :  { %v7576_v63 = vadd.f32 %v3014_v40, %v2953_v57  ;;  %v3018_v43 = vpop.permute.xlu0 %3017 }
0x1044   :  { %v7583_v24 = vadd.f32 %v3018_v43, %v2955_v34 }
0x1045   :  { %6340 = vtanh.f32 %v7576_v63 }
0x1046   :  { %v3016_v53 = vpop.permute.xlu1 %3015  ;;  %6342 = vtanh.f32 %v7583_v24 }
0x1047   :  { %v6333_v14 = vpop.eup %6332  ;;  %v7585_v33 = vadd.f32 %v3016_v53, %v2954_v31  ;;  %v3020_v23 = vpop.permute.xlu0 %3019 }
0x1048   :  { %3053 = vrot.lane.b32.xlu0 %v6333_v14, %s6600_s10  ;;  %v6335_v59 = vpop.eup %6334  ;;  %v7590_v7 = vadd.f32 %v3020_v23, %v2956_v62 }
0x1049   :  { %6344 = vtanh.f32 %v7585_v33  ;;  %3055 = vrot.lane.b32.xlu1 %v6335_v59, %s6600_s10 }
0x104a   :  { %6346 = vtanh.f32 %v7590_v7 }
0x104b   :  { %v6337_v12 = vpop.eup %6336 }
0x104c   :  { %3057 = vrot.lane.b32.xlu0 %v6337_v12, %s6600_s10  ;;  %v6339_v56 = vpop.eup %6338 }
0x104d   :  { %3059 = vrot.lane.b32.xlu1 %v6339_v56, %s6600_s10 }
0x104f   :  { %v6341_v21 = vpop.eup %6340 }
0x1050   :  { %3061 = vrot.lane.b32.xlu0 %v6341_v21, %s6600_s10  ;;  %v6343_v32 = vpop.eup %6342 }
0x1051   :  { %3065 = vrot.lane.b32.xlu1 %v6343_v32, %s6600_s10 }
0x1053   :  { %v6345_v25 = vpop.eup %6344 }
0x1054   :  { %3063 = vrot.lane.b32.xlu0 %v6345_v25, %s6600_s10  ;;  %v6347_v50 = vpop.eup %6346 }
0x1055   :  { %3067 = vrot.lane.b32.xlu1 %v6347_v50, %s6600_s10 }
0x1072   :  { %v3100_v17 = vpop.permute.xlu1 %3099 }
0x1073   :  { %v7602_v22 = vadd.f32 %v3100_v17, %v3092_v3 }
0x1075   :  { %6348 = vtanh.f32 %v7602_v22 }
0x107f   :  { %v6349_v15 = vpop.eup %6348 }
0x1080   :  { %3105 = vrot.lane.b32.xlu0 %v6349_v15, %s6600_s10 }
0x10ba   :  { %v3054_v38 = vpop.permute.xlu0 %3053 }
0x10bb   :  { %v3077_v5 = vmul.f32 %v7516_v8, %v3054_v38  ;;  %v3056_v16 = vpop.permute.xlu1 %3055 }
0x10bc   :  { %v3078_v47 = vmul.f32 %v7520_v28, %v3056_v16 }
0x10bd   :  { %v3123_v9 = vrot.slane %v3077_v5, 5 }
0x10be   :  { %v3058_v4 = vpop.permute.xlu0 %3057  ;;  %v3124_v14 = vrot.slane %v3078_v47, 4 }
0x10bf   :  { %v3079_v26 = vmul.f32 %v7522_v54, %v3058_v4  ;;  %v3060_v60 = vpop.permute.xlu1 %3059 }
0x10c0   :  { %v3125_v57 = vsel %vm559_vm3, %v3124_v14, %v3123_v9  ;;  %v3080_v44 = vmul.f32 %v7527_v20, %v3060_v60 }
0x10c1   :  { %v3126_v13 = vrot.slane %v3079_v26, 3 }
0x10c2   :  { %v3062_v40 = vpop.permute.xlu0 %3061  ;;  %v3128_v8 = vrot.slane %v3080_v44, 2 }
0x10c3   :  { %v3127_v27 = vsel %vm562_vm4, %v3126_v13, %v3125_v57  ;;  %v3081_v34 = vmul.f32 %v7530_v46, %v3062_v40  ;;  %v3066_v31 = vpop.permute.xlu1 %3065 }
0x10c4   :  { %v3129_v28 = vsel %vm565_vm5, %v3128_v8, %v3127_v27  ;;  %v3083_v6 = vmul.f32 %v7535_v35, %v3066_v31 }
0x10c5   :  { %v3130_v43 = vrot.slane %v3081_v34, 1 }
0x10c6   :  { %v3064_v54 = vpop.permute.xlu0 %3063  ;;  %v3133_v23 = vrot.slane %v3083_v6, 7 }
0x10c7   :  { %v3131_v53 = vsel %vm568_vm6, %v3130_v43, %v3129_v28  ;;  %v3082_v62 = vmul.f32 %v7538_v36, %v3064_v54  ;;  %v3068_v59 = vpop.permute.xlu1 %3067 }
0x10c8   :  { %v3084_v12 = vmul.f32 %v7543_v39, %v3068_v59 }
0x10c9   :  { %v3132_v20 = vsel %vm571_vm7, %v3082_v62, %v3131_v53 }
0x10ca   :  { %v3134_v46 = vsel %vm574_vm8, %v3133_v23, %v3132_v20  ;;  %v3135_v56 = vrot.slane %v3084_v12, 6 }
0x10cc   :  { %v3136_v21 = vsel %vm577_vm9, %v3135_v56, %v3134_v46 }
0x10cd   :  { %3137 = vrot.lane.b32.xlu1 %v3136_v21, %s6601_s11 }
0x10f2   :  { %v3106_v32 = vpop.permute.xlu0 %3105 }
0x10f3   :  { %v3108_v35 = vmul.f32 %v7548_v2, %v3106_v32 }
0x10f5   :  { %3110 = vrot.lane.b32.xlu0 %v3108_v35, %s6601_s11 }
0x113f   :  { %v3138_v25 = vpop.permute.xlu1 %3137 }
0x1140   :  { %5579 = vmatmul.mubr.msk.f32.vlgmr.msra.gmra.mrb[16].mxu1 %vm228_vm2, %v3138_v25 }
0x1141   :  { %5818 = vmatpush3.bf16.msra.mxu1 %v6841_v61  ;;  %5589 = vmatprep.mubr.msk.f32.mxu1 %vm6598_vm1, %v6599_v18 }
0x1142   :  { %5819 = vmatprep.subr.bf16.mxu1 %v6597_v10 }
0x1145   :  { %5821 = vmatpush3.bf16.msra.mxu1 %v6844_v1 }
0x1146   :  { %5822 = vmatprep.subr.bf16.mxu1 %v6597_v10 }
0x1148   :  { %5590 = vmatmul.mubr.msk.f32.vlgmr.msra.gmra.mrb[18].mxu1 %vm228_vm2, %v3138_v25 }
0x1149   :  { %5824 = vmatpush3.bf16.msra.mxu1 %v6868_v52  ;;  %5600 = vmatprep.mubr.msk.f32.mxu1 %vm6598_vm1, %v6599_v18 }
0x114a   :  { %5825 = vmatprep.subr.bf16.mxu1 %v6597_v10 }
0x114d   :  { %5827 = vmatpush3.bf16.msra.mxu1 %v6873_v0 }
0x114e   :  { %5846 = vmatprep.subr.bf16.mxu1 %v6597_v10 }
0x1167   :  { %v3111_v36 = vpop.permute.xlu0 %3110 }
0x1168   :  { %3114 = vst.msk [vmem:[#allocation2 + $0x20] sm:$0xff] %vm228_vm2, %v3111_v36  ;;  %5601 = vmatmul.mubr.msk.f32.vlgmr.msra.gmra.mrb[18].mxu1 %vm228_vm2, %v3111_v36 }
0x1169   :  { %5848 = vmatpush3.bf16.msra.mxu1 %v6841_v61  ;;  %5644 = vmatprep.mubr.msk.f32.mxu1 %vm6598_vm1, %v6599_v18 }
0x116a   :  { %5849 = vmatprep.subr.bf16.mxu1 %v6597_v10 }
0x116d   :  { %5851 = vmatpush3.bf16.msra.mxu1 %v6844_v1 }
0x116e   :  { %5852 = vmatprep.subr.bf16.mxu1 %v6597_v10 }
0x1213   :  { %v3207_v39 = vpop.f32.mrb[16].mxu1 }
0x1214   :  { %v3212_v2 = vrot.slane %v3207_v39, 2  ;;  %v5580_v50 = vpop.f32.mrb[17].mxu1  ;;  %v3213_v17 = vrot.slane %v3207_v39, 3  ;;  %v3214_v15 = vrot.slane %v3207_v39, 4  ;;  %v3215_v38 = vrot.slane %v3207_v39, 5 }
0x1215   :  { %v3216_v16 = vrot.slane %v3207_v39, 6  ;;  %v3217_v47 = vrot.slane %v3207_v39, 7  ;;  %v3218_v14 = vrot.slane %v3207_v39, 1  ;;  %v3233_v34 = vadd.f32 %v3207_v39, %v6753_v55 }
0x1216   :  { %v3227_v3 = vadd.f32 %v3212_v2, %v6724_v29  ;;  %v3228_v5 = vadd.f32 %v3213_v17, %v6737_v42  ;;  %v3229_v9 = vadd.f32 %v3214_v15, %v6743_v45  ;;  %v3230_v4 = vadd.f32 %v3215_v38, %v6726_v30 }
0x1217   :  { %v3231_v13 = vadd.f32 %v3216_v16, %v6749_v51  ;;  %v3232_v57 = vadd.f32 %v3217_v47, %v6730_v37  ;;  %v3234_v40 = vadd.f32 %v3218_v14, %v6735_v41  ;;  %v5194_v35 = vmul.f32 -1.442695, %v3233_v34 }
0x1218   :  { %6350 = vtanh.f32 %v3227_v3  ;;  %v5188_v62 = vmul.f32 -1.442695, %v3227_v3  ;;  %v5189_v23 = vmul.f32 -1.442695, %v3228_v5  ;;  %v5190_v20 = vmul.f32 -1.442695, %v3229_v9 }
0x1219   :  { %6352 = vtanh.f32 %v3228_v5  ;;  %v5191_v59 = vmul.f32 -1.442695, %v3230_v4  ;;  %v5192_v46 = vmul.f32 -1.442695, %v3231_v13  ;;  %v5193_v56 = vmul.f32 -1.442695, %v3232_v57 }
0x121a   :  { %6354 = vtanh.f32 %v3229_v9  ;;  %v5195_v32 = vmul.f32 -1.442695, %v3234_v40 }
0x121b   :  { %6356 = vtanh.f32 %v3230_v4 }
0x121c   :  { %6358 = vtanh.f32 %v3231_v13 }
0x121d   :  { %6360 = vtanh.f32 %v3232_v57 }
0x121e   :  { %6362 = vtanh.f32 %v3234_v40 }
0x1222   :  { %v6351_v26 = vpop.eup %6350 }
0x1223   :  { %3475 = vrot.lane.b32.xlu1 %v6351_v26, %s6600_s10  ;;  %v6353_v8 = vpop.eup %6352 }
0x1224   :  { %v6355_v43 = vpop.eup %6354  ;;  %3477 = vrot.lane.b32.xlu0 %v6353_v8, %s6600_s10 }
0x1225   :  { %v6357_v31 = vpop.eup %6356 }
0x1226   :  { %v6359_v28 = vpop.eup %6358 }
0x1227   :  { %3479 = vrot.lane.b32.xlu1 %v6355_v43, %s6600_s10  ;;  %v6361_v6 = vpop.eup %6360 }
0x1228   :  { %3481 = vrot.lane.b32.xlu0 %v6357_v31, %s6600_s10 }
0x122b   :  { %3483 = vrot.lane.b32.xlu1 %v6359_v28, %s6600_s10 }
0x122c   :  { %3485 = vrot.lane.b32.xlu0 %v6361_v6, %s6600_s10 }
0x123b   :  { %v3374_v60 = vpop.f32.mrb[18].mxu1 }
0x123c   :  { %v5602_v44 = vpop.f32.mrb[19].mxu1  ;;  %v5890_v27 = vadd.f32 %v7360_v49, %v3374_v60  ;;  %v6363_v49 = vpop.eup %6362 }
0x123d   :  { %3489 = vrot.lane.b32.xlu1 %v6363_v49, %s6600_s10 }
0x123e   :  { %6364 = vtanh.f32 %v5890_v27  ;;  %v5196_v25 = vmul.f32 -1.442695, %v5890_v27 }
0x123f   :  { %6366 = vtanh.f32 %v3233_v34 }
0x1240   :  { %6368 = vpow2.f32 %v5188_v62 }
0x1241   :  { %6370 = vpow2.f32 %v5189_v23 }
0x1242   :  { %6372 = vpow2.f32 %v5190_v20 }
0x1243   :  { %6374 = vpow2.f32 %v5191_v59 }
0x1244   :  { %6376 = vpow2.f32 %v5192_v46 }
0x1245   :  { %6378 = vpow2.f32 %v5193_v56 }
0x1248   :  { %v6365_v54 = vpop.eup %6364 }
0x1249   :  { %v6367_v53 = vpop.eup %6366  ;;  %3604 = vrot.lane.b32.xlu1 %v6365_v54, %s6600_s10 }
0x124a   :  { %3487 = vrot.lane.b32.xlu0 %v6367_v53, %s6600_s10  ;;  %v6369_v12 = vpop.eup %6368 }
0x124b   :  { %v3403_v21 = vadd.f32 1.0, %v6369_v12  ;;  %v6371_v36 = vpop.eup %6370 }
0x124c   :  { %v6373_v39 = vpop.eup %6372  ;;  %v3404_v2 = vadd.f32 1.0, %v6371_v36 }
0x124d   :  { %6380 = vrcp.f32 %v3403_v21  ;;  %v6375_v50 = vpop.eup %6374  ;;  %v3405_v3 = vadd.f32 1.0, %v6373_v39 }
0x124e   :  { %6382 = vpow2.f32 %v5195_v32  ;;  %v6377_v17 = vpop.eup %6376  ;;  %v3406_v38 = vadd.f32 1.0, %v6375_v50 }
0x124f   :  { %6384 = vpow2.f32 %v5194_v35  ;;  %v6379_v15 = vpop.eup %6378  ;;  %v3407_v9 = vadd.f32 1.0, %v6377_v17 }
0x1250   :  { %6386 = vpow2.f32 %v5196_v25  ;;  %v3408_v26 = vadd.f32 1.0, %v6379_v15  ;;  %v3444_v15 = vrot.slane %v7562_v19, 7 }
0x1251   :  { %6388 = vrcp.f32 %v3404_v2  ;;  %v3443_v2 = vrot.slane %v7554_v58, 7 }
0x1252   :  { %6390 = vrcp.f32 %v3405_v3 }
0x1253   :  { %6392 = vrcp.f32 %v3406_v38  ;;  %v3445_v38 = vrot.slane %v7565_v48, 7 }
0x1254   :  { %6394 = vrcp.f32 %v3407_v9 }
0x1255   :  { %6396 = vrcp.f32 %v3408_v26 }
0x1257   :  { %v7664_v5 = vpop.eup %6380 }
0x1258   :  { %v6383_v47 = vpop.eup %6382  ;;  %v3459_v50 = vmul.f32 %v7664_v5, %v3443_v2 }
0x1259   :  { %v6385_v14 = vpop.eup %6384  ;;  %v3410_v13 = vadd.f32 1.0, %v6383_v47 }
0x125a   :  { %v6387_v60 = vpop.eup %6386  ;;  %v3409_v57 = vadd.f32 1.0, %v6385_v14  ;;  %v3447_v14 = vrot.slane %v7576_v63, 7  ;;  %v3450_v63 = vrot.slane %v7590_v7, 7 }
0x125b   :  { %v3598_v44 = vadd.f32 1.0, %v6387_v60  ;;  %6398 = vrcp.f32 %v3410_v13  ;;  %v7668_v40 = vpop.eup %6388 }
0x125c   :  { %v7670_v34 = vpop.eup %6390  ;;  %6400 = vrcp.f32 %v3409_v57 }
0x125d   :  { %6402 = vrcp.f32 %v3598_v44  ;;  %v7675_v28 = vpop.eup %6392  ;;  %v3461_v47 = vmul.f32 %v7670_v34, %v3445_v38  ;;  %v3448_v44 = vrot.slane %v7585_v33, 7  ;;  %v3449_v33 = vrot.slane %v7583_v24, 7 }
0x125e   :  { %v7678_v49 = vpop.eup %6394 }
0x125f   :  { %v7683_v23 = vpop.eup %6396  ;;  %v3463_v57 = vmul.f32 %v7678_v49, %v3447_v14 }
0x1265   :  { %v7686_v59 = vpop.eup %6398 }
0x1266   :  { %v7691_v21 = vpop.eup %6400 }
0x1267   :  { %v7694_v35 = vpop.eup %6402  ;;  %v3465_v7 = vmul.f32 %v7691_v21, %v3449_v33 }
0x1295   :  { %v3476_v16 = vpop.permute.xlu1 %3475 }
0x1296   :  { %v3499_v4 = vmul.f32 %v7664_v5, %v3476_v16  ;;  %v3478_v27 = vpop.permute.xlu0 %3477  ;;  %v3460_v16 = vmul.f32 %v7668_v40, %v3444_v15 }
0x1297   :  { %v3500_v8 = vmul.f32 %v7668_v40, %v3478_v27 }
0x1298   :  { %3515 = vrot.lane.b32.xlu0 %v3499_v4, %s6601_s11  ;;  %v3446_v4 = vrot.slane %v7572_v11, 7 }
0x1299   :  { %v3480_v43 = vpop.permute.xlu1 %3479  ;;  %3517 = vrot.lane.b32.xlu1 %v3500_v8, %s6601_s11 }
0x129a   :  { %v3501_v31 = vmul.f32 %v7670_v34, %v3480_v43  ;;  %v3482_v6 = vpop.permute.xlu0 %3481  ;;  %v3462_v19 = vmul.f32 %v7675_v28, %v3446_v4  ;;  %v3464_v43 = vmul.f32 %v7683_v23, %v3448_v44 }
0x129b   :  { %v3502_v54 = vmul.f32 %v7675_v28, %v3482_v6  ;;  %v3466_v6 = vmul.f32 %v7686_v59, %v3450_v63 }
0x129c   :  { %3519 = vrot.lane.b32.xlu0 %v3501_v31, %s6601_s11 }
0x129d   :  { %v3484_v53 = vpop.permute.xlu1 %3483  ;;  %3521 = vrot.lane.b32.xlu1 %v3502_v54, %s6601_s11 }
0x129e   :  { %v3503_v62 = vmul.f32 %v7678_v49, %v3484_v53  ;;  %v3486_v20 = vpop.permute.xlu0 %3485 }
0x129f   :  { %v3504_v12 = vmul.f32 %v7683_v23, %v3486_v20 }
0x12a0   :  { %3523 = vrot.lane.b32.xlu0 %v3503_v62, %s6601_s11 }
0x12a1   :  { %3525 = vrot.lane.b32.xlu1 %v3504_v12, %s6601_s11  ;;  %v3602_v12 = vmul.f32 %v7694_v35, %v7602_v22 }
0x12af   :  { %v3490_v46 = vpop.permute.xlu1 %3489 }
0x12b0   :  { %v3506_v56 = vmul.f32 %v7686_v59, %v3490_v46 }
0x12b2   :  { %3529 = vrot.lane.b32.xlu0 %v3506_v56, %s6601_s11 }
0x12bb   :  { %v3605_v36 = vpop.permute.xlu1 %3604 }
0x12bc   :  { %v3488_v32 = vpop.permute.xlu0 %3487  ;;  %v3607_v39 = vmul.f32 %v7694_v35, %v3605_v36 }
0x12bd   :  { %v3505_v25 = vmul.f32 %v7691_v21, %v3488_v32 }
0x12be   :  { %3609 = vrot.lane.b32.xlu0 %v3607_v39, %s6601_s11 }
0x12bf   :  { %3527 = vrot.lane.b32.xlu1 %v3505_v25, %s6601_s11 }
0x130a   :  { %v3516_v3 = vpop.permute.xlu0 %3515 }
0x130b   :  { %v7702_v17 = vadd.f32 %v3516_v3, %v3459_v50  ;;  %v3518_v9 = vpop.permute.xlu1 %3517 }
0x130c   :  { %v7710_v26 = vadd.f32 %v3518_v9, %v3460_v16 }
0x130d   :  { %6404 = vtanh.f32 %v7702_v17 }
0x130e   :  { %v3520_v58 = vpop.permute.xlu0 %3519  ;;  %6406 = vtanh.f32 %v7710_v26 }
0x130f   :  { %v7713_v13 = vadd.f32 %v3520_v58, %v3461_v47  ;;  %v3522_v48 = vpop.permute.xlu1 %3521 }
0x1310   :  { %v7720_v11 = vadd.f32 %v3522_v48, %v3462_v19 }
0x1311   :  { %6408 = vtanh.f32 %v7713_v13 }
0x1312   :  { %v3524_v27 = vpop.permute.xlu0 %3523  ;;  %6410 = vtanh.f32 %v7720_v11 }
0x1313   :  { %v7724_v8 = vadd.f32 %v3524_v27, %v3463_v57  ;;  %v3526_v31 = vpop.permute.xlu1 %3525 }
0x1314   :  { %v7731_v54 = vadd.f32 %v3526_v31, %v3464_v43 }
0x1315   :  { %6412 = vtanh.f32 %v7724_v8 }
0x1316   :  { %6414 = vtanh.f32 %v7731_v54 }
0x1317   :  { %v6405_v60 = vpop.eup %6404 }
0x1318   :  { %3563 = vrot.lane.b32.xlu1 %v6405_v60, %s6600_s10  ;;  %v6407_v46 = vpop.eup %6406 }
0x1319   :  { %3565 = vrot.lane.b32.xlu0 %v6407_v46, %s6600_s10 }
0x131b   :  { %v6409_v24 = vpop.eup %6408 }
0x131c   :  { %3567 = vrot.lane.b32.xlu1 %v6409_v24, %s6600_s10  ;;  %v6411_v36 = vpop.eup %6410 }
0x131d   :  { %3569 = vrot.lane.b32.xlu0 %v6411_v36, %s6600_s10 }
0x131f   :  { %v6413_v39 = vpop.eup %6412 }
0x1320   :  { %3571 = vrot.lane.b32.xlu1 %v6413_v39, %s6600_s10  ;;  %v6415_v22 = vpop.eup %6414 }
0x1321   :  { %3573 = vrot.lane.b32.xlu0 %v6415_v22, %s6600_s10 }
0x1324   :  { %v3530_v53 = vpop.permute.xlu0 %3529 }
0x1325   :  { %v7733_v62 = vadd.f32 %v3530_v53, %v3466_v6 }
0x1327   :  { %6416 = vtanh.f32 %v7733_v62 }
0x1330   :  { %v3610_v32 = vpop.permute.xlu0 %3609 }
0x1331   :  { %v3528_v20 = vpop.permute.xlu1 %3527  ;;  %v7743_v25 = vadd.f32 %v3610_v32, %v3602_v12  ;;  %v6417_v2 = vpop.eup %6416 }
0x1332   :  { %v7740_v56 = vadd.f32 %v3528_v20, %v3465_v7  ;;  %3577 = vrot.lane.b32.xlu1 %v6417_v2, %s6600_s10 }
0x1334   :  { %6418 = vtanh.f32 %v7740_v56 }
0x1335   :  { %6420 = vtanh.f32 %v7743_v25 }
0x133e   :  { %v6419_v50 = vpop.eup %6418 }
0x133f   :  { %v6421_v3 = vpop.eup %6420  ;;  %3575 = vrot.lane.b32.xlu0 %v6419_v50, %s6600_s10 }
0x1340   :  { %3615 = vrot.lane.b32.xlu1 %v6421_v3, %s6600_s10 }
0x138a   :  { %v3564_v15 = vpop.permute.xlu1 %3563 }
0x138b   :  { %v3587_v38 = vmul.f32 %v7664_v5, %v3564_v15  ;;  %v3566_v16 = vpop.permute.xlu0 %3565 }
0x138c   :  { %v3588_v47 = vmul.f32 %v7668_v40, %v3566_v16 }
0x138d   :  { %v3633_v9 = vrot.slane %v3587_v38, 6 }
0x138e   :  { %v3568_v4 = vpop.permute.xlu1 %3567  ;;  %v3634_v14 = vrot.slane %v3588_v47, 5 }
0x138f   :  { %v3589_v58 = vmul.f32 %v7670_v34, %v3568_v4  ;;  %v3570_v60 = vpop.permute.xlu0 %3569 }
0x1390   :  { %v3635_v48 = vsel %vm559_vm3, %v3634_v14, %v3633_v9  ;;  %v3590_v57 = vmul.f32 %v7675_v28, %v3570_v60 }
0x1391   :  { %v3636_v19 = vrot.slane %v3589_v58, 4 }
0x1392   :  { %v3572_v44 = vpop.permute.xlu1 %3571  ;;  %v3638_v5 = vrot.slane %v3590_v57, 3 }
0x1393   :  { %v3637_v27 = vsel %vm562_vm4, %v3636_v19, %v3635_v48  ;;  %v3591_v63 = vmul.f32 %v7678_v49, %v3572_v44  ;;  %v3574_v31 = vpop.permute.xlu0 %3573 }
0x1394   :  { %v3639_v40 = vsel %vm565_vm5, %v3638_v5, %v3637_v27  ;;  %v3592_v6 = vmul.f32 %v7683_v23, %v3574_v31 }
0x1395   :  { %v3640_v43 = vrot.slane %v3591_v63, 2 }
0x1396   :  { %v3642_v7 = vrot.slane %v3592_v6, 1 }
0x1397   :  { %v3641_v33 = vsel %vm568_vm6, %v3640_v43, %v3639_v40 }
0x1398   :  { %v3643_v12 = vsel %vm571_vm7, %v3642_v7, %v3641_v33 }
0x13a4   :  { %v3578_v34 = vpop.permute.xlu1 %3577 }
0x13a5   :  { %v3594_v53 = vmul.f32 %v7686_v59, %v3578_v34 }
0x13a7   :  { %v3645_v20 = vrot.slane %v3594_v53, 7 }
0x13b1   :  { %v3576_v28 = vpop.permute.xlu0 %3575 }
0x13b2   :  { %v3593_v46 = vmul.f32 %v7691_v21, %v3576_v28  ;;  %v3616_v49 = vpop.permute.xlu1 %3615 }
0x13b3   :  { %v3618_v32 = vmul.f32 %v7694_v35, %v3616_v49 }
0x13b4   :  { %v3644_v24 = vsel %vm574_vm8, %v3593_v46, %v3643_v12 }
0x13b5   :  { %v3646_v36 = vsel %vm577_vm9, %v3645_v20, %v3644_v24  ;;  %3620 = vrot.lane.b32.xlu1 %v3618_v32, %s6601_s11 }
0x13b6   :  { %3647 = vrot.lane.b32.xlu0 %v3646_v36, %s6601_s11 }
0x1427   :  { %v3621_v23 = vpop.permute.xlu1 %3620 }
0x1428   :  { %v3648_v59 = vpop.permute.xlu0 %3647  ;;  %3624 = vst.msk [vmem:[#allocation2 + $0x28] sm:$0xff] %vm228_vm2, %v3621_v23 }
0x1429   :  { %5612 = vmatmul.mubr.msk.f32.vlgmr.msra.gmra.mrb[14].mxu0 %vm228_vm2, %v3648_v59 }
0x142a   :  { %5836 = vmatpush3.bf16.msra.mxu0 %v6841_v61  ;;  %5622 = vmatprep.mubr.msk.f32.mxu0 %vm6598_vm1, %v6599_v18 }
0x142b   :  { %5837 = vmatprep.subr.bf16.mxu0 %v6597_v10 }
0x142e   :  { %5839 = vmatpush3.bf16.msra.mxu0 %v6844_v1 }
0x142f   :  { %5840 = vmatprep.subr.bf16.mxu0 %v6597_v10 }
0x1431   :  { %5623 = vmatmul.mubr.msk.f32.vlgmr.msra.gmra.mrb[16].mxu0 %vm228_vm2, %v3648_v59 }
0x1432   :  { %5842 = vmatpush3.bf16.msra.mxu0 %v6868_v52  ;;  %5633 = vmatprep.mubr.msk.f32.mxu0 %vm6598_vm1, %v6599_v18 }
0x1433   :  { %5843 = vmatprep.subr.bf16.mxu0 %v6597_v10 }
0x1436   :  { %5845 = vmatpush3.bf16.msra.mxu0 %v6873_v0 }
0x1437   :  { %5858 = vmatprep.subr.bf16.mxu0 %v6597_v10 }
0x1439   :  { %5634 = vmatmul.mubr.msk.f32.vlgmr.msra.gmra.mrb[16].mxu0 %vm228_vm2, %v3621_v23 }
0x143a   :  { %5662 = vmatprep.mubr.msk.f32.mxu0 %vm6598_vm1, %v6599_v18 }
0x14fc   :  { %v3717_v61 = vpop.f32.mrb[14].mxu0 }
0x14fd   :  { %v3722_v1 = vrot.slane %v3717_v61, 1  ;;  %v5613_v21 = vpop.f32.mrb[15].mxu0  ;;  %v3723_v39 = vrot.slane %v3717_v61, 2  ;;  %v3724_v22 = vrot.slane %v3717_v61, 3  ;;  %v3725_v2 = vrot.slane %v3717_v61, 4 }
0x14fe   :  { %v3726_v3 = vrot.slane %v3717_v61, 5  ;;  %v3727_v38 = vrot.slane %v3717_v61, 6  ;;  %v3728_v47 = vrot.slane %v3717_v61, 7  ;;  %v3744_v19 = vadd.f32 %v3717_v61, %v6735_v41 }
0x14ff   :  { %v3737_v35 = vadd.f32 %v3722_v1, %v6724_v29  ;;  %v3738_v50 = vadd.f32 %v3723_v39, %v6737_v42  ;;  %v3739_v15 = vadd.f32 %v3724_v22, %v6743_v45  ;;  %v3740_v16 = vadd.f32 %v3725_v2, %v6726_v30  ;;  %v7798_v45 = vld [vmem:[#allocation3 + $0x71] ss:$0 sm:$0xff] }
0x1500   :  { %v3741_v4 = vadd.f32 %v3726_v3, %v6749_v51  ;;  %v3742_v14 = vadd.f32 %v3727_v38, %v6730_v37  ;;  %v3743_v42 = vadd.f32 %v3728_v47, %v6753_v55  ;;  %v5207_v53 = vmul.f32 -1.442695, %v3744_v19 }
0x1501   :  { %6422 = vtanh.f32 %v3737_v35  ;;  %v5200_v27 = vmul.f32 -1.442695, %v3737_v35  ;;  %v5201_v63 = vmul.f32 -1.442695, %v3738_v50  ;;  %v5202_v5 = vmul.f32 -1.442695, %v3739_v15 }
0x1502   :  { %6424 = vtanh.f32 %v3738_v50  ;;  %v5203_v43 = vmul.f32 -1.442695, %v3740_v16  ;;  %v5204_v40 = vmul.f32 -1.442695, %v3741_v4  ;;  %v5205_v6 = vmul.f32 -1.442695, %v3742_v14 }
0x1503   :  { %6426 = vtanh.f32 %v3739_v15  ;;  %v5206_v33 = vmul.f32 -1.442695, %v3743_v42 }
0x1504   :  { %6428 = vtanh.f32 %v3740_v16 }
0x1505   :  { %6430 = vtanh.f32 %v3741_v4 }
0x1506   :  { %6432 = vtanh.f32 %v3742_v14 }
0x1507   :  { %6434 = vtanh.f32 %v3743_v42 }
0x150b   :  { %v6423_v9 = vpop.eup %6422 }
0x150c   :  { %3985 = vrot.lane.b32.xlu0 %v6423_v9, %s6600_s10  ;;  %v3884_v29 = vpop.f32.mrb[16].mxu0  ;;  %v6425_v51 = vpop.eup %6424 }
0x150d   :  { %v5635_v58 = vpop.f32.mrb[17].mxu0  ;;  %v5891_v30 = vadd.f32 %v7798_v45, %v3884_v29  ;;  %v6427_v60 = vpop.eup %6426  ;;  %3987 = vrot.lane.b32.xlu1 %v6425_v51, %s6600_s10 }
0x150e   :  { %v6429_v37 = vpop.eup %6428 }
0x150f   :  { %6436 = vtanh.f32 %v5891_v30  ;;  %v6431_v48 = vpop.eup %6430  ;;  %v5208_v7 = vmul.f32 -1.442695, %v5891_v30 }
0x1510   :  { %6438 = vtanh.f32 %v3744_v19  ;;  %3989 = vrot.lane.b32.xlu0 %v6427_v60, %s6600_s10  ;;  %v6433_v55 = vpop.eup %6432 }
0x1511   :  { %3991 = vrot.lane.b32.xlu1 %v6429_v37, %s6600_s10  ;;  %v6435_v57 = vpop.eup %6434  ;;  %6440 = vpow2.f32 %v5200_v27 }
0x1512   :  { %6442 = vpow2.f32 %v5201_v63 }
0x1513   :  { %6444 = vpow2.f32 %v5202_v5 }
0x1514   :  { %3993 = vrot.lane.b32.xlu0 %v6431_v48, %s6600_s10  ;;  %6446 = vpow2.f32 %v5203_v43 }
0x1515   :  { %3995 = vrot.lane.b32.xlu1 %v6433_v55, %s6600_s10  ;;  %6448 = vpow2.f32 %v5204_v40 }
0x1516   :  { %6450 = vpow2.f32 %v5205_v6 }
0x1518   :  { %3997 = vrot.lane.b32.xlu0 %v6435_v57, %s6600_s10 }
0x1519   :  { %v6437_v41 = vpop.eup %6436 }
0x151a   :  { %v6439_v44 = vpop.eup %6438 }
0x151b   :  { %3999 = vrot.lane.b32.xlu1 %v6439_v44, %s6600_s10  ;;  %v6441_v31 = vpop.eup %6440 }
0x151c   :  { %4114 = vrot.lane.b32.xlu0 %v6437_v41, %s6600_s10  ;;  %v3913_v34 = vadd.f32 1.0, %v6441_v31  ;;  %v6443_v20 = vpop.eup %6442  ;;  %v3953_v31 = vrot.slane %v7702_v17, 7 }
0x151d   :  { %v6445_v28 = vpop.eup %6444  ;;  %v3914_v12 = vadd.f32 1.0, %v6443_v20 }
0x151e   :  { %6452 = vrcp.f32 %v3913_v34  ;;  %v6447_v46 = vpop.eup %6446  ;;  %v3915_v49 = vadd.f32 1.0, %v6445_v28 }
0x151f   :  { %6454 = vpow2.f32 %v5206_v33  ;;  %v6449_v32 = vpop.eup %6448  ;;  %v3916_v36 = vadd.f32 1.0, %v6447_v46  ;;  %v3954_v33 = vrot.slane %v7710_v26, 7 }
0x1520   :  { %6456 = vpow2.f32 %v5207_v53  ;;  %v6451_v24 = vpop.eup %6450  ;;  %v3917_v61 = vadd.f32 1.0, %v6449_v32  ;;  %v3955_v53 = vrot.slane %v7713_v13, 7 }
0x1521   :  { %6458 = vpow2.f32 %v5208_v7  ;;  %v3918_v35 = vadd.f32 1.0, %v6451_v24 }
0x1522   :  { %6460 = vrcp.f32 %v3914_v12  ;;  %v3956_v12 = vrot.slane %v7720_v11, 7  ;;  %v3959_v11 = vrot.slane %v7740_v56, 7 }
0x1523   :  { %6462 = vrcp.f32 %v3915_v49  ;;  %v3957_v49 = vrot.slane %v7724_v8, 7 }
0x1524   :  { %6464 = vrcp.f32 %v3916_v36 }
0x1525   :  { %6466 = vrcp.f32 %v3917_v61 }
0x1526   :  { %6468 = vrcp.f32 %v3918_v35 }
0x1528   :  { %v7810_v23 = vpop.eup %6452 }
0x1529   :  { %v6455_v1 = vpop.eup %6454  ;;  %v3969_v40 = vmul.f32 %v7810_v23, %v3953_v31 }
0x152a   :  { %v6457_v39 = vpop.eup %6456  ;;  %v3919_v22 = vadd.f32 1.0, %v6455_v1  ;;  %v3958_v1 = vrot.slane %v7731_v54, 7  ;;  %v3960_v54 = vrot.slane %v7733_v62, 7 }
0x152b   :  { %v6459_v2 = vpop.eup %6458  ;;  %v3920_v50 = vadd.f32 1.0, %v6457_v39 }
0x152c   :  { %v4108_v3 = vadd.f32 1.0, %v6459_v2  ;;  %6470 = vrcp.f32 %v3919_v22  ;;  %v7814_v15 = vpop.eup %6460 }
0x152d   :  { %v7816_v16 = vpop.eup %6462  ;;  %6472 = vrcp.f32 %v3920_v50  ;;  %v3970_v7 = vmul.f32 %v7814_v15, %v3954_v33 }
0x152e   :  { %6474 = vrcp.f32 %v4108_v3  ;;  %v7821_v29 = vpop.eup %6464  ;;  %v3971_v28 = vmul.f32 %v7816_v16, %v3955_v53 }
0x152f   :  { %v7824_v14 = vpop.eup %6466  ;;  %v3972_v24 = vmul.f32 %v7821_v29, %v3956_v12 }
0x1530   :  { %v7829_v51 = vpop.eup %6468  ;;  %v3973_v61 = vmul.f32 %v7824_v14, %v3957_v49 }
0x1531   :  { %v3974_v2 = vmul.f32 %v7829_v51, %v3958_v1 }
0x1536   :  { %v7832_v37 = vpop.eup %6470 }
0x1537   :  { %v7837_v41 = vpop.eup %6472 }
0x1538   :  { %v7840_v27 = vpop.eup %6474 }
0x157e   :  { %v3986_v59 = vpop.permute.xlu0 %3985 }
0x157f   :  { %v4009_v21 = vmul.f32 %v7810_v23, %v3986_v59  ;;  %v3988_v38 = vpop.permute.xlu1 %3987 }
0x1580   :  { %v4010_v9 = vmul.f32 %v7814_v15, %v3988_v38  ;;  %v3975_v38 = vmul.f32 %v7832_v37, %v3959_v11 }
0x1581   :  { %4025 = vrot.lane.b32.xlu1 %v4009_v21, %s6601_s11 }
0x1582   :  { %v3990_v47 = vpop.permute.xlu0 %3989  ;;  %4027 = vrot.lane.b32.xlu0 %v4010_v9, %s6601_s11 }
0x1583   :  { %v4011_v4 = vmul.f32 %v7816_v16, %v3990_v47  ;;  %v3992_v58 = vpop.permute.xlu1 %3991 }
0x1584   :  { %v4012_v42 = vmul.f32 %v7821_v29, %v3992_v58 }
0x1585   :  { %4029 = vrot.lane.b32.xlu1 %v4011_v4, %s6601_s11 }
0x1586   :  { %v3994_v30 = vpop.permute.xlu0 %3993  ;;  %4031 = vrot.lane.b32.xlu0 %v4012_v42, %s6601_s11 }
0x1587   :  { %v4013_v19 = vmul.f32 %v7824_v14, %v3994_v30  ;;  %v3996_v60 = vpop.permute.xlu1 %3995  ;;  %v3976_v30 = vmul.f32 %v7837_v41, %v3960_v54 }
0x1588   :  { %v4014_v48 = vmul.f32 %v7829_v51, %v3996_v60 }
0x1589   :  { %4033 = vrot.lane.b32.xlu1 %v4013_v19, %s6601_s11 }
0x158a   :  { %v3998_v55 = vpop.permute.xlu0 %3997  ;;  %4035 = vrot.lane.b32.xlu0 %v4014_v48, %s6601_s11  ;;  %v4112_v48 = vmul.f32 %v7840_v27, %v7743_v25 }
0x158b   :  { %v4015_v57 = vmul.f32 %v7832_v37, %v3998_v55 }
0x158d   :  { %v4000_v44 = vpop.permute.xlu1 %3999  ;;  %4037 = vrot.lane.b32.xlu1 %v4015_v57, %s6601_s11 }
0x158e   :  { %v4016_v63 = vmul.f32 %v7837_v41, %v4000_v44  ;;  %v4115_v5 = vpop.permute.xlu0 %4114 }
0x158f   :  { %v4117_v43 = vmul.f32 %v7840_v27, %v4115_v5 }
0x1590   :  { %4039 = vrot.lane.b32.xlu0 %v4016_v63, %s6601_s11 }
0x1591   :  { %4119 = vrot.lane.b32.xlu1 %v4117_v43, %s6601_s11 }
0x15f3   :  { %v4026_v6 = vpop.permute.xlu1 %4025 }
0x15f4   :  { %v7848_v34 = vadd.f32 %v4026_v6, %v3969_v40  ;;  %v4028_v20 = vpop.permute.xlu0 %4027 }
0x15f5   :  { %v4050_v46 = vadd.f32 %v4028_v20, %v3970_v7 }
0x15f6   :  { %6476 = vtanh.f32 %v7848_v34 }
0x15f7   :  { %v4030_v17 = vpop.permute.xlu1 %4029  ;;  %6478 = vtanh.f32 %v4050_v46  ;;  %v5049_v59 = vrot.slane %v4050_v46, 7 }
0x15f8   :  { %v4051_v32 = vadd.f32 %v4030_v17, %v3971_v28  ;;  %v4032_v26 = vpop.permute.xlu0 %4031 }
0x15f9   :  { %v4052_v21 = vadd.f32 %v4032_v26, %v3972_v24 }
0x15fa   :  { %6480 = vtanh.f32 %v4051_v32  ;;  %v5050_v13 = vrot.slane %v4051_v32, 6 }
0x15fb   :  { %v4034_v35 = vpop.permute.xlu1 %4033  ;;  %6482 = vtanh.f32 %v4052_v21  ;;  %v5052_v22 = vrot.slane %v4052_v21, 5 }
0x15fc   :  { %v5051_v8 = vsel %vm559_vm3, %v5050_v13, %v5049_v59  ;;  %v4053_v39 = vadd.f32 %v4034_v35, %v3973_v61  ;;  %v4036_v50 = vpop.permute.xlu0 %4035 }
0x15fd   :  { %v4054_v9 = vadd.f32 %v4036_v50, %v3974_v2  ;;  %v5053_v47 = vsel %vm562_vm4, %v5052_v22, %v5051_v8 }
0x15fe   :  { %6484 = vtanh.f32 %v4053_v39  ;;  %v5054_v3 = vrot.slane %v4053_v39, 4 }
0x15ff   :  { %v4038_v4 = vpop.permute.xlu1 %4037  ;;  %6486 = vtanh.f32 %v4054_v9  ;;  %v5056_v42 = vrot.slane %v4054_v9, 3 }
0x1600   :  { %v6477_v36 = vpop.eup %6476  ;;  %v5055_v56 = vsel %vm565_vm5, %v5054_v3, %v5053_v47  ;;  %v4055_v58 = vadd.f32 %v4038_v4, %v3975_v38 }
0x1601   :  { %4073 = vrot.lane.b32.xlu0 %v6477_v36, %s6600_s10  ;;  %v6479_v55 = vpop.eup %6478  ;;  %v5057_v44 = vsel %vm568_vm6, %v5056_v42, %v5055_v56 }
0x1602   :  { %v4040_v19 = vpop.permute.xlu0 %4039  ;;  %6488 = vtanh.f32 %v4055_v58  ;;  %v5058_v60 = vrot.slane %v4055_v58, 2  ;;  %4075 = vrot.lane.b32.xlu1 %v6479_v55, %s6600_s10 }
0x1603   :  { %v4056_v57 = vadd.f32 %v4040_v19, %v3976_v30  ;;  %v4120_v62 = vpop.permute.xlu1 %4119 }
0x1604   :  { %v6481_v63 = vpop.eup %6480  ;;  %v7873_v5 = vadd.f32 %v4120_v62, %v4112_v48  ;;  %v5059_v43 = vsel %vm571_vm7, %v5058_v60, %v5057_v44 }
0x1605   :  { %6490 = vtanh.f32 %v4056_v57  ;;  %v5060_v31 = vrot.slane %v4056_v57, 1  ;;  %4077 = vrot.lane.b32.xlu0 %v6481_v63, %s6600_s10  ;;  %v6483_v40 = vpop.eup %6482 }
0x1606   :  { %6492 = vtanh.f32 %v7873_v5  ;;  %4079 = vrot.lane.b32.xlu1 %v6483_v40, %s6600_s10 }
0x1607   :  { %v7879_v25 = vsel %vm574_vm8, %v5060_v31, %v5059_v43 }
0x1608   :  { %v6485_v6 = vpop.eup %6484 }
0x1609   :  { %4081 = vrot.lane.b32.xlu0 %v6485_v6, %s6600_s10  ;;  %v6487_v33 = vpop.eup %6486 }
0x160a   :  { %4083 = vrot.lane.b32.xlu1 %v6487_v33, %s6600_s10 }
0x160c   :  { %v6489_v53 = vpop.eup %6488 }
0x160d   :  { %4085 = vrot.lane.b32.xlu0 %v6489_v53, %s6600_s10 }
0x160f   :  { %v6491_v7 = vpop.eup %6490 }
0x1610   :  { %v6493_v20 = vpop.eup %6492  ;;  %4087 = vrot.lane.b32.xlu1 %v6491_v7, %s6600_s10 }
0x1611   :  { %4125 = vrot.lane.b32.xlu0 %v6493_v20, %s6600_s10 }
0x1673   :  { %v4074_v28 = vpop.permute.xlu0 %4073 }
0x1674   :  { %v7888_v12 = vmul.f32 %v7810_v23, %v4074_v28  ;;  %v4076_v46 = vpop.permute.xlu1 %4075  ;;  %v7933_v28 = vld [vmem:[#allocation2] sm:$0xff] }
0x1675   :  { %v4098_v49 = vmul.f32 %v7814_v15, %v4076_v46  ;;  %v7935_v46 = vld [vmem:[#allocation3 + $0x75] ss:$0 sm:$0xff] }
0x1676   :  { %v4143_v17 = vrot.slane %v7888_v12, 7 }
0x1677   :  { %v4078_v32 = vpop.permute.xlu0 %4077  ;;  %v4144_v36 = vrot.slane %v4098_v49, 6  ;;  %v5018_v59 = vrot.slane %v4098_v49, 7  ;;  %v7939_v49 = vld [vmem:[#allocation2 + $0x10] sm:$0xff] }
0x1678   :  { %v4099_v24 = vmul.f32 %v7816_v16, %v4078_v32  ;;  %v4080_v61 = vpop.permute.xlu1 %4079 }
0x1679   :  { %v4145_v1 = vsel %vm559_vm3, %v4144_v36, %v4143_v17  ;;  %v4100_v21 = vmul.f32 %v7821_v29, %v4080_v61  ;;  %v4349_v17 = vmul.f32 %v7935_v46, %v7933_v28  ;;  %v7944_v36 = vld [vmem:[#allocation2 + $0x18] sm:$0xff] }
0x167a   :  { %v4146_v26 = vrot.slane %v4099_v24, 5  ;;  %v5019_v13 = vrot.slane %v4099_v24, 6  ;;  %v4351_v24 = vmul.f32 %v7935_v46, %v7939_v49 }
0x167b   :  { %v4082_v35 = vpop.permute.xlu0 %4081  ;;  %v4148_v15 = vrot.slane %v4100_v21, 4  ;;  %v5021_v39 = vrot.slane %v4100_v21, 5  ;;  %v4357_v32 = vsel %vm228_vm2, %v4349_v17, 0.0 }
0x167c   :  { %v4147_v23 = vsel %vm562_vm4, %v4146_v26, %v4145_v1  ;;  %v5020_v11 = vsel %vm559_vm3, %v5019_v13, %v5018_v59  ;;  %v4101_v8 = vmul.f32 %v7824_v14, %v4082_v35  ;;  %v4084_v2 = vpop.permute.xlu1 %4083  ;;  %v4363_v59 = vsel %vm228_vm2, %v4351_v24, 0.0  ;;  %v7949_v13 = vld [vmem:[#allocation2 + $0x28] sm:$0xff] }
0x167d   :  { %v4149_v50 = vsel %vm565_vm5, %v4148_v15, %v4147_v23  ;;  %v5022_v3 = vsel %vm562_vm4, %v5021_v39, %v5020_v11  ;;  %v4102_v38 = vmul.f32 %v7829_v51, %v4084_v2  ;;  %v4352_v26 = vmul.f32 %v7935_v46, %v7944_v36 }
0x167e   :  { %v4150_v22 = vrot.slane %v4101_v8, 3  ;;  %v5023_v16 = vrot.slane %v4101_v8, 4  ;;  %v4354_v1 = vmul.f32 %v7935_v46, %v7949_v13  ;;  %v6603_v35 = vmov 1  }
0x167f   :  { %v4086_v54 = vpop.permute.xlu0 %4085  ;;  %v4152_v4 = vrot.slane %v4102_v38, 2  ;;  %v5025_v14 = vrot.slane %v4102_v38, 3  ;;  %v4366_v61 = vsel %vm228_vm2, %v4352_v26, 0.0  ;;  %5923 = vset.pattern.permute.xlu1 %v6603_v35  ;;  %vm4773_vm3 = vcmask 80896  }
0x1680   :  { %v4151_v29 = vsel %vm568_vm6, %v4150_v22, %v4149_v50  ;;  %v5024_v9 = vsel %vm565_vm5, %v5023_v16, %v5022_v3  ;;  %v4103_v47 = vmul.f32 %v7832_v37, %v4086_v54  ;;  %v4372_v21 = vsel %vm228_vm2, %v4354_v1, 0.0  ;;  %v4534_v22 = vld [vmem:[#allocation3 + $0xf0] sm:$0xff]  ;;  %v4535_v16 = vld [vmem:[#allocation3 + $0xf8] sm:$0xff] }
0x1681   :  { %v4153_v30 = vsel %vm571_vm7, %v4152_v4, %v4151_v29  ;;  %v5026_v19 = vsel %vm568_vm6, %v5025_v14, %v5024_v9  ;;  %v5859_v2 = vpack.c.bf16 %v4535_v16, %v4534_v22  ;;  %v4619_v29 = vld [vmem:[#allocation3 + $0x98] sm:$0xff]  ;;  %v4620_v9 = vld [vmem:[#allocation3 + $0xa0] sm:$0xff]  ;;  %v4621_v14 = vld [vmem:[#allocation3 + $0xa8] sm:$0xff]  ;;  %vm4856_vm4 = vcmask 1046528  }
0x1682   :  { %v4154_v56 = vrot.slane %v4103_v47, 1  ;;  %v5027_v58 = vrot.slane %v4103_v47, 2  ;;  %v4088_v42 = vpop.permute.xlu1 %4087  ;;  %v5862_v4 = vpack.c.bf16 %v4620_v9, %v4619_v29  ;;  %vm4852_vm5 = vcmask 56320  }
0x1683   :  { %v4104_v60 = vmul.f32 %v7837_v41, %v4088_v42  ;;  %v4126_v48 = vpop.permute.xlu0 %4125  ;;  %5860 = vmatpush3.bf16.msra.mxu0 %v5859_v2  ;;  %vm5078_vm6 = vcmask 523264  }
0x1684   :  { %v4155_v51 = vsel %vm574_vm8, %v4154_v56, %v4153_v30  ;;  %v4128_v55 = vmul.f32 %v7840_v27, %v4126_v48  ;;  %v5028_v57 = vsel %vm571_vm7, %v5027_v58, %v5026_v19  ;;  %5861 = vmatprep.subr.bf16.mxu0 %v6597_v10  ;;  %v4622_v56 = vld [vmem:[#allocation3 + $0xb0] sm:$0xff]  ;;  %v7972_v30 = vld [vmem:[#allocation2 + $0x8] sm:$0xff]  ;;  %vm5081_vm7 = vcmask 785408  }
0x1685   :  { %v5029_v62 = vrot.slane %v4104_v60, 1  ;;  %v4156_v37 = vsel %vm577_vm9, %v4104_v60, %v4155_v51  ;;  %v5865_v42 = vpack.c.bf16 %v4622_v56, %v4621_v14  ;;  %v4350_v19 = vmul.f32 %v7935_v46, %v7972_v30  ;;  %v7976_v60 = vld [vmem:[#allocation2 + $0x20] sm:$0xff] }
0x1686   :  { %4157 = vrot.lane.b32.xlu1 %v4156_v37, %s6601_s11  ;;  %4130 = vrot.lane.b32.xlu0 %v4128_v55, %s6601_s11  ;;  %v4353_v51 = vmul.f32 %v7935_v46, %v7976_v60 }
0x1687   :  { %v7914_v44 = vsel %vm574_vm8, %v5029_v62, %v5028_v57  ;;  %v4360_v48 = vsel %vm228_vm2, %v4350_v19, 0.0  ;;  %vm5089_vm8 = vcmask 1040384  }
0x1688   :  { %v4369_v57 = vsel %vm228_vm2, %v4353_v51, 0.0 }
0x16f8   :  { %v4158_v63 = vpop.permute.xlu1 %4157  ;;  %v4131_v43 = vpop.permute.xlu0 %4130 }
0x16f9   :  { %5645 = vmatmul.mubr.msk.f32.vlgmr.msra.gmra.mrb[20].mxu1 %vm228_vm2, %v4158_v63  ;;  %4134 = vst.msk [vmem:[#allocation2 + $0x30] sm:$0xff] %vm228_vm2, %v4131_v43 }
0x16fa   :  { %5854 = vmatpush3.bf16.msra.mxu1 %v6868_v52  ;;  %5655 = vmatprep.mubr.msk.f32.mxu1 %vm6598_vm1, %v6599_v18  ;;  %v6602_v52 = vmov 0  }
0x16fb   :  { %5855 = vmatprep.subr.bf16.mxu1 %v6597_v10  ;;  %5922 = vset.pattern.permute.xlu0 %v6602_v52 }
0x16fe   :  { %5857 = vmatpush3.bf16.msra.mxu1 %v6873_v0 }
0x16ff   :  { %5867 = vmatprep.subr.bf16.mxu1 %v6597_v10 }
0x1700   :  { %v7981_v55 = vld [vmem:[#allocation2 + $0x30] sm:$0xff] }
0x1701   :  { %5656 = vmatmul.mubr.msk.f32.vlgmr.msra.gmra.mrb[20].mxu1 %vm228_vm2, %v4131_v43  ;;  %v4355_v62 = vmul.f32 %v7935_v46, %v7981_v55 }
0x1702   :  { %5684 = vmatprep.mubr.msk.f32.mxu1 %vm6598_vm1, %v6599_v18 }
0x1703   :  { %v4375_v37 = vsel %vm228_vm2, %v4355_v62, 0.0 }
0x17d4   :  { %v4300_v41 = vpop.f32.mrb[20].mxu1 }
0x17d5   :  { %v5892_v27 = vadd.f32 %v7798_v45, %v4300_v41  ;;  %v5657_v31 = vpop.f32.mrb[21].mxu1  ;;  %v4520_v45 = vld [vmem:[%s8073_s5] sm:$0xff] }
0x17d6   :  { %v4521_v39 = vadd.s32 6, %v4520_v45 }
0x17d7   :  { %6494 = vtanh.f32 %v5892_v27  ;;  %v5211_v6 = vmul.f32 -1.442695, %v5892_v27 }
0x17d9   :  { %6496 = vpow2.f32 %v5211_v6 }
0x17e1   :  { %v6495_v40 = vpop.eup %6494 }
0x17e2   :  { %4314 = vrot.lane.b32.xlu1 %v6495_v40, %s6600_s10 }
0x17e3   :  { %v6497_v0 = vpop.eup %6496 }
0x17e4   :  { %v4308_v33 = vadd.f32 1.0, %v6497_v0 }
0x17e6   :  { %6498 = vrcp.f32 %v4308_v33 }
0x17f0   :  { %v6499_v53 = vpop.eup %6498 }
0x17f1   :  { %v4312_v23 = vmul.f32 %v6499_v53, %v7873_v5  ;;  %v4522_v5 = vlaneseq }
0x17f3   :  { %v4523_v38 = vand.u32 127, %v4522_v5 }
0x1854   :  { %v4315_v7 = vpop.permute.xlu1 %4314 }
0x1855   :  { %v4317_v20 = vmul.f32 %v6499_v53, %v4315_v7  ;;  %v5213_v7 = vld [vmem:[#allocation3 + $0x76] ss:$0 sm:$0xff] }
0x1857   :  { %4319 = vrot.lane.b32.xlu0 %v4317_v20, %s6601_s11 }
0x185b   :  { %4525 = vperm.xlu0 %5922, %v4520_v45  }
0x187a   :  { %4358 = vadd.xlane.f32.xlu0 %v4357_v32 }
0x187e   :  { %4364 = vadd.xlane.f32.xlu0 %v4363_v59 }
0x1882   :  { %4367 = vadd.xlane.f32.xlu0 %v4366_v61 }
0x1886   :  { %4373 = vadd.xlane.f32.xlu0 %v4372_v21 }
0x18c9   :  { %v4320_v11 = vpop.permute.xlu0 %4319 }
0x18ca   :  { %v7957_v8 = vadd.f32 %v4320_v11, %v4312_v23 }
0x18cc   :  { %6500 = vtanh.f32 %v7957_v8 }
0x18d6   :  { %v6501_v15 = vpop.eup %6500 }
0x18d7   :  { %4325 = vrot.lane.b32.xlu1 %v6501_v15, %s6600_s10 }
0x18da   :  { %v4526_v54 = vpop.permute.xlu0 %4525 }
0x18db   :  { %4529 = vperm.xlu1 %5923, %v4521_v39   ;;  %vm4527_vm10 = vcmp.eq.s32.totalorder %v4523_v38, %v4526_v54 }
0x18df   :  { %5924 = vset.pattern.permute.xlu1 %v6602_v52 }
0x1907   :  { %v4359_v40 = vpop.xlane.xlu0 %4358 }
0x1908   :  { %v4385_v32 = vadd.f32 %v5213_v7, %v4359_v40 }
0x190a   :  { %v4394_v23 = vsel %vm4393_vm13, %v4385_v32, -inf }
0x190b   :  { %v4365_v0 = vpop.xlane.xlu0 %4364 }
0x1949   :  { %v4326_v50 = vpop.permute.xlu1 %4325 }
0x194a   :  { %v7962_v3 = vmul.f32 %v6499_v53, %v4326_v50  ;;  %v4368_v53 = vpop.xlane.xlu0 %4367 }
0x194b   :  { %v4388_v26 = vadd.f32 %v5213_v7, %v4368_v53 }
0x194c   :  { %4330 = vrot.lane.b32.xlu1 %v7962_v3, %s6601_s11 }
0x194d   :  { %v4397_v2 = vsel %vm4393_vm13, %v4388_v26, -inf }
0x194e   :  { %v4374_v17 = vpop.xlane.xlu0 %4373 }
0x194f   :  { %v4390_v61 = vadd.f32 %v5213_v7, %v4374_v17 }
0x1951   :  { %v4400_v50 = vsel %vm4393_vm13, %v4390_v61, -inf }
0x195a   :  { %v4530_v47 = vpop.permute.xlu1 %4529 }
0x195b   :  { %vm4531_vm11 = vcmp.eq.s32.totalorder %v4523_v38, %v4530_v47 }
0x195c   :  { %vm4532_vm12 = vmor %vm4527_vm10, %vm4531_vm11 }
0x195d   :  { %v4533_v58 = vsel %vm4532_vm12, 1.0, %v6599_v18 }
0x195e   :  { %5663 = vmatmul.mubr.msk.f32.vlgmr.msra.gmra.mrb[18].mxu0 %vm92_vm0, %v4533_v58  ;;  %vm5875_vm0 = vmpackc.low %vm4777_vm14, %vm6604_vm15 }
0x195f   :  { %5863 = vmatpush3.bf16.msra.mxu0 %v5862_v4  ;;  %5673 = vmatprep.mubr.msk.f32.mxu0 %vm6598_vm1, %v6599_v18 }
0x1960   :  { %5864 = vmatprep.subr.bf16.mxu0 %v6597_v10 }
0x1963   :  { %5866 = vmatpush3.bf16.msra.mxu0 %v5865_v42 }
0x1964   :  { %5873 = vmatprep.subr.bf16.mxu0 %v6597_v10 }
0x1970   :  { %4361 = vadd.xlane.f32.xlu1 %v4360_v48 }
0x1974   :  { %4370 = vadd.xlane.f32.xlu1 %v4369_v57 }
0x1978   :  { %4376 = vadd.xlane.f32.xlu1 %v4375_v37 }
0x19be   :  { %v4331_v63 = vpop.permute.xlu1 %4330 }
0x19bf   :  { %4334 = vst.msk [vmem:[#allocation2 + $0x38] sm:$0xff] %vm228_vm2, %v4331_v63  ;;  %5674 = vmatmul.mubr.msk.f32.vlgmr.msra.gmra.mrb[20].mxu0 %vm228_vm2, %v4331_v63 }
0x19c0   :  { %5691 = vmatprep.mubr.msk.f32.mxu0 %vm6598_vm1, %v6599_v18 }
0x19c6   :  { %v7991_v43 = vld [vmem:[#allocation2 + $0x38] sm:$0xff] }
0x19c7   :  { %v4356_v41 = vmul.f32 %v7935_v46, %v7991_v43  ;;  %v4387_v46 = vadd.f32 %v5213_v7, %v4365_v0 }
0x19c9   :  { %v4378_v27 = vsel %vm228_vm2, %v4356_v41, 0.0  ;;  %v4396_v16 = vsel %vm4393_vm13, %v4387_v46, -inf }
0x19ca   :  { %4379 = vadd.xlane.f32.xlu0 %v4378_v27 }
0x19fd   :  { %v4362_v6 = vpop.xlane.xlu1 %4361 }
0x19fe   :  { %v4386_v24 = vadd.f32 %v5213_v7, %v4362_v6 }
0x1a00   :  { %v4395_v11 = vsel %vm4393_vm13, %v4386_v24, -inf }
0x1a01   :  { %v4371_v33 = vpop.xlane.xlu1 %4370  ;;  %v4401_v38 = vmax.f32 %v4395_v11, %v4400_v50 }
0x1a02   :  { %v4389_v45 = vadd.f32 %v5213_v7, %v4371_v33 }
0x1a04   :  { %v4398_v1 = vsel %vm4393_vm13, %v4389_v45, -inf }
0x1a05   :  { %v4377_v20 = vpop.xlane.xlu1 %4376  ;;  %v4399_v22 = vmax.f32 %v4394_v23, %v4398_v1 }
0x1a06   :  { %v4391_v59 = vadd.f32 %v5213_v7, %v4377_v20 }
0x1a07   :  { %v4406_v9 = vmax.f32 %v4399_v22, %v4401_v38 }
0x1a08   :  { %v4402_v15 = vsel %vm4393_vm13, %v4391_v59, -inf }
0x1a09   :  { %v4403_v54 = vmax.f32 %v4396_v16, %v4402_v15 }
0x1a31   :  { %v7996_v31 = vpop.f32.mrb[18].mxu0 }
0x1a32   :  { %v5664_v52 = vpop.f32.mrb[19].mxu0 }
0x1a57   :  { %v4380_v21 = vpop.xlane.xlu0 %4379 }
0x1a58   :  { %v4392_v39 = vadd.f32 %v5213_v7, %v4380_v21 }
0x1a5a   :  { %v4404_v5 = vsel %vm4393_vm13, %v4392_v39, -inf }
0x1a5b   :  { %v4405_v29 = vmax.f32 %v4397_v2, %v4404_v5 }
0x1a5d   :  { %v4407_v47 = vmax.f32 %v4403_v54, %v4405_v29 }
0x1a5f   :  { %v4408_v4 = vmax.f32 %v4406_v9, %v4407_v47 }
0x1a61   :  { %v4409_v14 = vsub.f32 %v4385_v32, %v4408_v4  ;;  %v4410_v56 = vsub.f32 %v4386_v24, %v4408_v4  ;;  %v4411_v58 = vsub.f32 %v4387_v46, %v4408_v4  ;;  %v4412_v42 = vsub.f32 %v4388_v26, %v4408_v4 }
0x1a62   :  { %v4413_v19 = vsub.f32 %v4389_v45, %v4408_v4  ;;  %v4414_v62 = vsub.f32 %v4390_v61, %v4408_v4  ;;  %v4415_v63 = vsub.f32 %v4391_v59, %v4408_v4  ;;  %v4416_v27 = vsub.f32 %v4392_v39, %v4408_v4 }
0x1a63   :  { %v4417_v48 = vmul.f32 1.442695, %v4409_v14  ;;  %v4419_v51 = vmul.f32 1.442695, %v4410_v56  ;;  %v4421_v57 = vmul.f32 1.442695, %v4411_v58 }
0x1a64   :  { %v4423_v37 = vmul.f32 1.442695, %v4412_v42  ;;  %v4425_v41 = vmul.f32 1.442695, %v4413_v19  ;;  %v4427_v52 = vmul.f32 1.442695, %v4414_v62 }
0x1a65   :  { %6502 = vpow2.f32 %v4417_v48  ;;  %v4429_v40 = vmul.f32 1.442695, %v4415_v63  ;;  %v4431_v6 = vmul.f32 1.442695, %v4416_v27  ;;  %v5037_v42 = vrot.slane %v7962_v3, 1  ;;  %v4615_v48 = vld [vmem:[#allocation3 + $0x78] sm:$0xff] }
0x1a66   :  { %6504 = vpow2.f32 %v4419_v51  ;;  %v4616_v51 = vld [vmem:[#allocation3 + $0x80] sm:$0xff]  ;;  %v4617_v62 = vld [vmem:[#allocation3 + $0x88] sm:$0xff] }
0x1a67   :  { %6506 = vpow2.f32 %v4421_v57  ;;  %v5868_v57 = vpack.c.bf16 %v4616_v51, %v4615_v48  ;;  %v4624_v3 = vld [vmem:[#allocation3 + $0xc0] sm:$0x3]  ;;  %v4937_v48 = vld [vmem:[#allocation3 + $0xd8] sm:$0xff] }
0x1a68   :  { %6508 = vpow2.f32 %v4423_v37  ;;  %v4618_v37 = vld [vmem:[#allocation3 + $0x90] sm:$0xff] }
0x1a69   :  { %6510 = vpow2.f32 %v4425_v41  ;;  %5869 = vmatpush3.bf16.msra.mxu1 %v5868_v57  ;;  %v4772_v41 = vld [vmem:[%s8072_s4] sm:$0xff] }
0x1a6a   :  { %6512 = vpow2.f32 %v4427_v52  ;;  %5870 = vmatprep.subr.bf16.mxu1 %v6597_v10 }
0x1a6b   :  { %6514 = vpow2.f32 %v4429_v40 }
0x1a6c   :  { %6516 = vpow2.f32 %v4431_v6 }
0x1a6f   :  { %v6503_v0 = vpop.eup %6502 }
0x1a70   :  { %v6505_v33 = vpop.eup %6504  ;;  %v4433_v53 = vsel %vm4393_vm13, %v6503_v0, 0.0 }
0x1a71   :  { %v6507_v7 = vpop.eup %6506  ;;  %v4434_v20 = vsel %vm4393_vm13, %v6505_v33, 0.0 }
0x1a72   :  { %v6509_v45 = vpop.eup %6508  ;;  %v4435_v17 = vadd.f32 %v4434_v20, %v4433_v53  ;;  %v4436_v32 = vsel %vm4393_vm13, %v6507_v7, 0.0 }
0x1a73   :  { %v6511_v24 = vpop.eup %6510  ;;  %v4438_v46 = vsel %vm4393_vm13, %v6509_v45, 0.0 }
0x1a74   :  { %v4437_v59 = vadd.f32 %v4436_v32, %v4435_v17  ;;  %v6513_v26 = vpop.eup %6512  ;;  %v4440_v1 = vsel %vm4393_vm13, %v6511_v24, 0.0 }
0x1a75   :  { %v6515_v21 = vpop.eup %6514  ;;  %v4442_v11 = vsel %vm4393_vm13, %v6513_v26, 0.0 }
0x1a76   :  { %v4439_v61 = vadd.f32 %v4438_v46, %v4437_v59  ;;  %v6517_v15 = vpop.eup %6516  ;;  %v4444_v22 = vsel %vm4393_vm13, %v6515_v21, 0.0 }
0x1a77   :  { %v4446_v2 = vsel %vm4393_vm13, %v6517_v15, 0.0 }
0x1a78   :  { %v4441_v23 = vadd.f32 %v4440_v1, %v4439_v61 }
0x1a7a   :  { %v4443_v39 = vadd.f32 %v4442_v11, %v4441_v23 }
0x1a7c   :  { %v4445_v16 = vadd.f32 %v4444_v22, %v4443_v39 }
0x1a7e   :  { %v4447_v50 = vadd.f32 %v4446_v2, %v4445_v16 }
0x1a80   :  { %6518 = vrcp.f32 %v4447_v50 }
0x1a8a   :  { %v6519_v5 = vpop.eup %6518 }
0x1a8b   :  { %v4450_v38 = vmul.f32 %v6519_v5, %v6505_v33  ;;  %v4449_v54 = vmul.f32 %v6519_v5, %v6503_v0  ;;  %v4453_v29 = vmul.f32 %v6519_v5, %v6511_v24  ;;  %v4451_v9 = vmul.f32 %v6519_v5, %v6507_v7 }
0x1a8c   :  { %v4455_v14 = vmul.f32 %v6519_v5, %v6515_v21  ;;  %v4452_v56 = vmul.f32 %v6519_v5, %v6509_v45  ;;  %v4454_v58 = vmul.f32 %v6519_v5, %v6513_v26  ;;  %v4456_v19 = vmul.f32 %v6519_v5, %v6517_v15  ;;  %v4625_v5 = vld [vmem:[#allocation3 + $0xc8] sm:$0x7f] }
0x1a8d   :  { %4464 = vperm.xlu0 %5922, %v4450_v38   ;;  %4459 = vperm.xlu1 %5924, %v4449_v54  }
0x1a91   :  { %4479 = vperm.xlu0 %5922, %v4453_v29   ;;  %4469 = vperm.xlu1 %5924, %v4451_v9  }
0x1a92   :  { %v8014_v47 = vpop.f32.mrb[20].mxu0 }
0x1a93   :  { %v5675_v4 = vpop.f32.mrb[21].mxu0 }
0x1a95   :  { %4489 = vperm.xlu0 %5922, %v4455_v14   ;;  %4474 = vperm.xlu1 %5924, %v4452_v56  }
0x1a99   :  { %5031 = vrot.lane.b32.xlu0 %v7888_v12, %s6601_s11  ;;  %4484 = vperm.xlu1 %5924, %v4454_v58   ;;  %v5871_v12 = vpack.c.bf16 %v4618_v37, %v4617_v62  ;;  %v4938_v37 = vld [vmem:[#allocation3 + $0xe0] sm:$0xff] }
0x1a9a   :  { %5925 = vset.pattern.permute.xlu0 %v6603_v35  ;;  %v4623_v35 = vld [vmem:[#allocation3 + $0xb8] sm:$0xff] }
0x1a9b   :  { %v5874_v63 = vpack.c.bf16 %v4624_v3, %v4623_v35  ;;  %5872 = vmatpush3.bf16.msra.mxu1 %v5871_v12  ;;  %v4939_v12 = vld [vmem:[#allocation3 + $0xe8] sm:$0xff] }
0x1a9c   :  { %5694 = vmatprep.subr.mxu1 %v6599_v18  ;;  %v5881_v35 = vpack.c.bf16 %v4939_v12, %v4938_v37 }
0x1a9d   :  { %5038 = vrot.lane.b32.xlu0 %v5037_v42, %s6600_s10  ;;  %4494 = vperm.xlu1 %5924, %v4456_v19   ;;  %v4936_v19 = vld [vmem:[#allocation3 + $0xd0] sm:$0xff] }
0x1a9e   :  { %5876 = vmatpush3.bf16.msk.msra.mxu0 %vm5875_vm0, %v5874_v63  ;;  %v5878_v51 = vpack.c.bf16 %v4937_v48, %v4936_v19 }
0x1a9f   :  { %5877 = vmatprep.subr.bf16.mxu0 %v6597_v10 }
0x1aa1   :  { %5064 = vrot.lane.b32.xlu0 %v7879_v25, %s6601_s11  ;;  %5033 = vrot.lane.b32.xlu1 %v7914_v44, %s6601_s11  ;;  %v5069_v25 = vrot.slane %v7957_v8, 1 }
0x1aa2   :  { %5692 = vmatmul.mubr.msk.f32.vlgmr.msra.gmra.mrb[22].mxu0 %vm4773_vm3, %v4772_v41 }
0x1aa3   :  { %5707 = vmatprep.mubr.msk.f32.mxu0 %vm6598_vm1, %v6599_v18  ;;  %5879 = vmatpush3.bf16.msra.mxu0 %v5878_v51 }
0x1aa4   :  { %5880 = vmatprep.subr.bf16.mxu0 %v6597_v10 }
0x1aa5   :  { %5062 = vrot.lane.b32.xlu1 %v7848_v34, %s6601_s11 }
0x1aa7   :  { %5882 = vmatpush3.bf16.msra.mxu0 %v5881_v35 }
0x1aa9   :  { %5070 = vrot.lane.b32.xlu1 %v5069_v25, %s6600_s10 }
0x1b0c   :  { %v4465_v44 = vpop.permute.xlu0 %4464  ;;  %v4460_v27 = vpop.permute.xlu1 %4459 }
0x1b0d   :  { %v4498_v52 = vmul.f32 %v4465_v44, %v7972_v30  ;;  %v4497_v40 = vmul.f32 %v4460_v27, %v7933_v28  ;;  %v5222_v44 = vld [vmem:[#allocation3 + $0x72] ss:$0 sm:$0xff] }
0x1b0f   :  { %v4506_v34 = vsel %vm228_vm2, %v4498_v52, 0.0  ;;  %v4505_v33 = vsel %vm228_vm2, %v4497_v40, 0.0 }
0x1b10   :  { %v4480_v6 = vpop.permute.xlu0 %4479  ;;  %v4470_v0 = vpop.permute.xlu1 %4469  ;;  %v4507_v7 = vadd.f32 %v4506_v34, %v4505_v33 }
0x1b11   :  { %v4499_v8 = vmul.f32 %v4470_v0, %v7939_v49  ;;  %v4501_v17 = vmul.f32 %v4480_v6, %v7976_v60  ;;  %v5214_v60 = vld [vmem:[#allocation3 + $0x74] ss:$0 sm:$0xff]  ;;  %v5223_v0 = vld [vmem:[#allocation3 + $0x73] ss:$0 sm:$0xff] }
0x1b12   :  { %v4611_v2 = vadd.f32 %v5214_v60, %v7996_v31 }
0x1b13   :  { %v4508_v53 = vsel %vm228_vm2, %v4499_v8, 0.0  ;;  %v4512_v46 = vsel %vm228_vm2, %v4501_v17, 0.0 }
0x1b14   :  { %v4490_v20 = vpop.permute.xlu0 %4489  ;;  %v4475_v45 = vpop.permute.xlu1 %4474  ;;  %v4509_v30 = vadd.f32 %v4508_v53, %v4507_v7 }
0x1b15   :  { %v4500_v32 = vmul.f32 %v4475_v45, %v7944_v36  ;;  %v4503_v26 = vmul.f32 %v4490_v20, %v7981_v55 }
0x1b17   :  { %v4510_v28 = vsel %vm228_vm2, %v4500_v32, 0.0  ;;  %v4516_v36 = vsel %vm228_vm2, %v4503_v26, 0.0 }
0x1b18   :  { %v4511_v24 = vadd.f32 %v4510_v28, %v4509_v30  ;;  %v4485_v59 = vpop.permute.xlu1 %4484  ;;  %v5032_v61 = vpop.permute.xlu0 %5031 }
0x1b19   :  { %v4502_v49 = vmul.f32 %v4485_v59, %v7949_v13  ;;  %v4614_v13 = vmax.f32 %v4611_v2, 0.0 }
0x1b1a   :  { %v4513_v1 = vadd.f32 %v4512_v46, %v4511_v24 }
0x1b1b   :  { %v4514_v21 = vsel %vm228_vm2, %v4502_v49, 0.0 }
0x1b1c   :  { %v4515_v23 = vadd.f32 %v4514_v21, %v4513_v1  ;;  %v4495_v11 = vpop.permute.xlu1 %4494  ;;  %v5039_v22 = vpop.permute.xlu0 %5038 }
0x1b1d   :  { %v4504_v15 = vmul.f32 %v4495_v11, %v7991_v43  ;;  %v5076_v31 = vsel %vm228_vm2, %v5032_v61, %v5039_v22 }
0x1b1e   :  { %v4517_v39 = vadd.f32 %v4516_v36, %v4515_v23 }
0x1b1f   :  { %v4518_v16 = vsel %vm228_vm2, %v4504_v15, 0.0 }
0x1b20   :  { %v4519_v55 = vadd.f32 %v4518_v16, %v4517_v39  ;;  %v5034_v50 = vpop.permute.xlu1 %5033  ;;  %v5065_v43 = vpop.permute.xlu0 %5064 }
0x1b21   :  { %v5077_v54 = vsel %vm228_vm2, %v5034_v50, %v5039_v22 }
0x1b22   :  { %5685 = vmatmul.mubr.msk.f32.vlgmr.msra.gmra.mrb[22].mxu1 %vm228_vm2, %v4519_v55  ;;  %v5080_v9 = vsel %vm5078_vm6, %v5077_v54, %v5065_v43 }
0x1b23   :  { %5695 = vmatpush3.msk.msra.mxu1 %vm4856_vm4, %v4625_v5  ;;  %5696 = vmatprep.mubr.msk.f32.mxu1 %vm6598_vm1, %v6599_v18  ;;  %vm5084_vm1 = vcmask 48128  }
0x1b24   :  { %v5063_v38 = vpop.permute.xlu1 %5062 }
0x1b25   :  { %v5079_v29 = vsel %vm5078_vm6, %v5076_v31, %v5063_v38 }
0x1b26   :  { %5697 = vmatmul.mubr.msk.f32.vlgmr.msra.gmra.mrb[24].mxu1 %vm4852_vm5, %v4614_v13 }
0x1b28   :  { %v5071_v4 = vpop.permute.xlu1 %5070 }
0x1b29   :  { %v5082_v14 = vsel %vm5081_vm7, %v5079_v29, %v5071_v4  ;;  %v5083_v56 = vsel %vm5081_vm7, %v5080_v9, %v5071_v4 }
0x1b2a   :  { %v5090_v58 = vrot.slane %v5082_v14, 7  ;;  %v5091_v42 = vrot.slane %v5083_v56, 7 }
0x1b2c   :  { %v5092_v18 = vsel %vm5089_vm8, %v5090_v58, %v5091_v42 }
0x1b2d   :  { %5097 = vst [vmem:[%s8074_s6] sm:$0xff] %v5092_v18 }
0x1b75   :  { %v4847_v57 = vpop.f32.mrb[22].mxu0 }
0x1b76   :  { %v5693_v62 = vpop.f32.mrb[23].mxu0 }
0x1bf5   :  { %v4768_v3 = vpop.f32.mrb[22].mxu1 }
0x1bf6   :  { %v4769_v63 = vadd.f32 %v4768_v3, %v8014_v47  ;;  %v5686_v41 = vpop.f32.mrb[23].mxu1 }
0x1bf8   :  { %v4851_v25 = vadd.f32 %v4847_v57, %v4769_v63 }
0x1bf9   :  { %v4926_v27 = vpop.f32.mrb[24].mxu1 }
0x1bfa   :  { %v4930_v52 = vadd.f32 %v4926_v27, %v4851_v25  ;;  %v5698_v40 = vpop.f32.mrb[25].mxu1 }
0x1bfc   :  { %v4935_v6 = vadd.f32 %v5222_v44, %v4930_v52 }
0x1bfe   :  { %5708 = vmatmul.mubr.msk.f32.vlgmr.msra.gmra.mrb[24].mxu0 %vm228_vm2, %v4935_v6 }
0x1cd1   :  { %v5014_v34 = vpop.f32.mrb[24].mxu0 }
0x1cd2   :  { %v5015_v33 = vadd.f32 %v5223_v0, %v5014_v34  ;;  %v5709_v10 = vpop.f32.mrb[25].mxu0 }
0x1cd4   :  { %v5074_v8 = vrot.slane %v5015_v33, 1 }
0x1cd6   :  { %v5085_v53 = vsel %vm5084_vm1, %v5074_v8, 0.0 }
0x1cd7   :  { %v5093_v7 = vrot.slane %v5085_v53, 7 }
0x1cd9   :  { %5098 = vst [vmem:[%s8074_s6 + $0x8] sm:$0xff] %v5093_v7 }
0x1cda   :  { %5103 = vsyncpa [#allocation4], 1 }
0x1cdb   :  { %5104 = vsyncpa [#allocation6], 1 }

</bundles_post_ra>
